<compile_context>
chip_gen: v7x
topology: tpu7x:2x2x1
jax: 0.10.0
libtpu: 0.0.40
codegen_flags: <defaults>
</compile_context>

<pallas_src>
import jax
import jax.numpy as jnp
from jax.experimental import pallas as pl
from jax.experimental.pallas import tpu as pltpu


def _round_up(x, m):
    return (x + m - 1) // m * m


def _pad2(x, rows, cols):
    r, c = x.shape
    if r == rows and c == cols:
        return x
    return jnp.pad(x, ((0, rows - r), (0, cols - c)))


# ----------------------------------------------------------------------------
# Per-generation tuning (v5e/v6e: 128 MiB VMEM -> big tiles; v7x: 64 MiB/TC)
# ----------------------------------------------------------------------------
def _select_tuning():
    try:
        kind = jax.devices()[0].device_kind.lower()
    except Exception:
        kind = ""
    if ("v5" in kind) or ("v6" in kind):
        return {"tm": 512, "tn": 1024, "tk": 1024, "vmem": 64 * 1024 * 1024}
    # v7x / unknown: conservative scoped budget, moderate tiles.
    return {"tm": 256, "tn": 512, "tk": 512, "vmem": 40 * 1024 * 1024}


_TUNE = _select_tuning()
_VMEM_LIMIT = _TUNE["vmem"]
_TIME_BLOCK = 16          # GRU timesteps per grid step (statically unrolled)


# ----------------------------------------------------------------------------
# Tiled matmul with optional BN+ReLU prologue and affine/activation epilogue
# ----------------------------------------------------------------------------
def _fused_matmul_kernel_factory(act, prologue, out_affine):
    def kernel(*refs):
        idx = 0
        a_ref = refs[idx]; idx += 1
        b_ref = refs[idx]; idx += 1
        if prologue:
            asc_ref = refs[idx]; idx += 1
            ash_ref = refs[idx]; idx += 1
        if out_affine == "scale_shift":
            osc_ref = refs[idx]; idx += 1
        if out_affine in ("scale_shift", "shift"):
            osh_ref = refs[idx]; idx += 1
        o_ref = refs[idx]; idx += 1
        acc_ref = refs[idx]; idx += 1

        k = pl.program_id(2)

        @pl.when(k == 0)
        def _():
            acc_ref[...] = jnp.zeros_like(acc_ref)

        a = a_ref[...]
        if prologue:  # fused eval-mode BatchNorm1d + ReLU on the A tile
            a = jnp.maximum(
                a.astype(jnp.float32) * asc_ref[...] + ash_ref[...], 0.0
            ).astype(jnp.bfloat16)
        acc_ref[...] += jnp.dot(a, b_ref[...], preferred_element_type=jnp.float32)

        @pl.when(k == pl.num_programs(2) - 1)
        def _():
            y = acc_ref[...]
            if out_affine == "scale_shift":
                y = y * osc_ref[...] + osh_ref[...]
            elif out_affine == "shift":
                y = y + osh_ref[...]
            if act == "hardtanh":
                y = jnp.clip(y, 0.0, 20.0)
            elif act == "relu":
                y = jnp.maximum(y, 0.0)
            o_ref[...] = y.astype(o_ref.dtype)

    return kernel


def fused_matmul(a, b, *, a_scale=None, a_shift=None, out_scale=None,
                 out_shift=None, act="none", out_dtype=jnp.float32,
                 tm=None, tn=None, tk=None):
    """act( relu(a*a_scale+a_shift) @ b * out_scale + out_shift ) -> out_dtype."""
    M, K = a.shape
    K2, N = b.shape
    assert K == K2
    prologue = a_scale is not None
    if out_scale is not None:
        out_affine = "scale_shift"
    elif out_shift is not None:
        out_affine = "shift"
    else:
        out_affine = "none"

    tm = _TUNE["tm"] if tm is None else tm
    tn = _TUNE["tn"] if tn is None else tn
    tk = _TUNE["tk"] if tk is None else tk
    tm = min(tm, _round_up(M, 16))          # 16: safe sublane multiple for bf16
    tk = min(tk, _round_up(K, 128))
    tn = min(tn, _round_up(N, 128))
    Mp, Kp, Np = _round_up(M, tm), _round_up(K, tk), _round_up(N, tn)

    a_p = _pad2(a, Mp, Kp).astype(jnp.bfloat16)
    b_p = _pad2(b, Kp, Np).astype(jnp.bfloat16)

    in_specs = [
        pl.BlockSpec((tm, tk), lambda i, j, k: (i, k)),
        pl.BlockSpec((tk, tn), lambda i, j, k: (k, j)),
    ]
    operands = [a_p, b_p]
    if prologue:
        in_specs += [pl.BlockSpec((1, tk), lambda i, j, k: (0, k)),
                     pl.BlockSpec((1, tk), lambda i, j, k: (0, k))]
        operands += [_pad2(a_scale.reshape(1, K).astype(jnp.float32), 1, Kp),
                     _pad2(a_shift.reshape(1, K).astype(jnp.float32), 1, Kp)]
    if out_affine == "scale_shift":
        in_specs.append(pl.BlockSpec((1, tn), lambda i, j, k: (0, j)))
        operands.append(_pad2(out_scale.reshape(1, N).astype(jnp.float32), 1, Np))
    if out_affine in ("scale_shift", "shift"):
        in_specs.append(pl.BlockSpec((1, tn), lambda i, j, k: (0, j)))
        operands.append(_pad2(out_shift.reshape(1, N).astype(jnp.float32), 1, Np))

    out = pl.pallas_call(
        _fused_matmul_kernel_factory(act, prologue, out_affine),
        out_shape=jax.ShapeDtypeStruct((Mp, Np), out_dtype),
        grid=(Mp // tm, Np // tn, Kp // tk),
        in_specs=in_specs,
        out_specs=pl.BlockSpec((tm, tn), lambda i, j, k: (i, j)),
        scratch_shapes=[pltpu.VMEM((tm, tn), jnp.float32)],
        compiler_params=pltpu.CompilerParams(
            dimension_semantics=("parallel", "parallel", "arbitrary"),
            vmem_limit_bytes=_VMEM_LIMIT),
    )(*operands)
    return out[:M, :N]


# ----------------------------------------------------------------------------
# Bidirectional GRU recurrence, time-blocked (both directions per grid step)
# ----------------------------------------------------------------------------
def _make_bigru_kernel(time_block, hidden):
    TB, H = time_block, hidden

    def kernel(xpf_ref, xpb_ref, len_ref, whh_ref, bhn_ref,
               of_ref, ob_ref, hf_ref, hb_ref):
        # xpf/xpb: (TB, B, 6H) bf16  precomputed x@W_ih^T + (b_ih + [b_hr,b_hz,0])
        #                            for [fwd gates | bwd gates], gate-major r|z|n.
        #                            xpf is time block g, xpb is block G-1-g.
        # len_ref: (B, 1) int32      sequence lengths (VMEM-resident, one DMA)
        # whh:     (2, H, 3H) bf16   per-direction W_h{r,z,n}^T (resident)
        # bhn:     (2, 1, H)  f32    per-direction b_hn          (resident)
        # of/ob:   (TB, B, H) bf16   output slabs (fwd block g / bwd block G-1-g)
        # hf/hb:   (B, H) f32        VMEM scratch hidden states (persist over grid)
        g = pl.program_id(0)
        nblk = pl.num_programs(0)

        @pl.when(g == 0)
        def _():
            hf_ref[...] = jnp.zeros_like(hf_ref)
            hb_ref[...] = jnp.zeros_like(hb_ref)

        lens = len_ref[...]                       # (B, 1) int32

        def cell(xg, h, d):
            # one fused (B,H)@(H,3H) dot for all three hidden-state projections
            gh = jnp.dot(h.astype(jnp.bfloat16), whh_ref[d],
                         preferred_element_type=jnp.float32)       # (B, 3H)
            c0 = 3 * H * d
            xr = xg[:, c0:c0 + H].astype(jnp.float32)
            xz = xg[:, c0 + H:c0 + 2 * H].astype(jnp.float32)
            xn = xg[:, c0 + 2 * H:c0 + 3 * H].astype(jnp.float32)
            r = jax.nn.sigmoid(xr + gh[:, 0:H])
            z = jax.nn.sigmoid(xz + gh[:, H:2 * H])
            n = jnp.tanh(xn + r * (gh[:, 2 * H:3 * H] + bhn_ref[d]))
            return (1.0 - z) * n + z * h

        # ---- forward direction: physical times g*TB + s, ascending ----------
        base_f = g * TB
        h = hf_ref[...]
        for s in range(TB):                       # statically unrolled
            h_new = cell(xpf_ref[s], h, 0)
            keep = (base_f + s) < lens            # (B, 1) bool, in-kernel mask
            h = jnp.where(keep, h_new, h)
            of_ref[s] = jnp.where(keep, h_new, 0.0).astype(of_ref.dtype)
        hf_ref[...] = h

        # ---- backward direction: block G-1-g, local rows descending ---------
        base_b = (nblk - 1 - g) * TB
        h = hb_ref[...]
        for s in range(TB):                       # statically unrolled
            r_loc = TB - 1 - s
            h_new = cell(xpb_ref[r_loc], h, 1)
            keep = (base_b + r_loc) < lens
            h = jnp.where(keep, h_new, h)
            ob_ref[r_loc] = jnp.where(keep, h_new, 0.0).astype(ob_ref.dtype)
        hb_ref[...] = h

    return kernel


def bigru_layer(x, lengths, lp, time_block):
    """BNReluRNN: BatchNorm1d(eval)+ReLU fused into the input-projection matmul,
    then a time-blocked bidirectional GRU with in-kernel length masking
    (pack_padded semantics).  x: (Tp, B, D) with Tp % time_block == 0."""
    Tp, B, D = x.shape
    H = lp["w_hh"].shape[1]
    nblk = Tp // time_block
    assert nblk * time_block == Tp

    scale = lp["bn_gamma"] / jnp.sqrt(lp["bn_var"] + 1e-5)
    shift = lp["bn_beta"] - lp["bn_mean"] * scale

    # Fused BN+ReLU prologue + x @ [W_ih_fwd | W_ih_bwd] + folded biases.
    # Stored in bf16: xp is re-read once per direction by the recurrence.
    xp = fused_matmul(x.reshape(Tp * B, D), lp["w_ih_t"],
                      a_scale=scale, a_shift=shift,
                      out_shift=lp["b_proj"], act="none",
                      out_dtype=jnp.bfloat16)
    xp = xp.reshape(Tp, B, 6 * H)

    lens2d = lengths.reshape(B, 1).astype(jnp.int32)
    w_hh = lp["w_hh"].astype(jnp.bfloat16)

    out_f, out_b = pl.pallas_call(
        _make_bigru_kernel(time_block, H),
        out_shape=(jax.ShapeDtypeStruct((Tp, B, H), jnp.bfloat16),
                   jax.ShapeDtypeStruct((Tp, B, H), jnp.bfloat16)),
        grid=(nblk,),
        in_specs=[
            pl.BlockSpec((time_block, B, 6 * H), lambda g: (g, 0, 0)),            # xp fwd
            pl.BlockSpec((time_block, B, 6 * H), lambda g: (nblk - 1 - g, 0, 0)),  # xp bwd
            pl.BlockSpec((B, 1), lambda g: (0, 0)),                               # lengths
            pl.BlockSpec((2, H, 3 * H), lambda g: (0, 0, 0)),                     # w_hh
            pl.BlockSpec((2, 1, H), lambda g: (0, 0, 0)),                         # b_hn
        ],
        out_specs=(
            pl.BlockSpec((time_block, B, H), lambda g: (g, 0, 0)),
            pl.BlockSpec((time_block, B, H), lambda g: (nblk - 1 - g, 0, 0)),
        ),
        scratch_shapes=[pltpu.VMEM((B, H), jnp.float32),
                        pltpu.VMEM((B, H), jnp.float32)],
        compiler_params=pltpu.CompilerParams(
            dimension_semantics=("arbitrary",),
            vmem_limit_bytes=_VMEM_LIMIT),
    )(xp, xp, lens2d, w_hh, lp["b_hn"])
    return jnp.concatenate([out_f, out_b], axis=-1)               # (Tp, B, 2H) bf16


# ----------------------------------------------------------------------------
# Head: Linear -> ReLU -> Linear(no bias) -> log_softmax, tiled over rows
# ----------------------------------------------------------------------------
def _head_kernel(x_ref, w1_ref, b1_ref, w2_ref, b2_ref, o_ref):
    h = jnp.dot(x_ref[...], w1_ref[...], preferred_element_type=jnp.float32)
    h = jnp.maximum(h + b1_ref[...], 0.0)
    logits = jnp.dot(h.astype(jnp.bfloat16), w2_ref[...],
                     preferred_element_type=jnp.float32) + b2_ref[...]
    m = jnp.max(logits, axis=-1, keepdims=True)
    lse = jnp.log(jnp.sum(jnp.exp(logits - m), axis=-1, keepdims=True)) + m
    o_ref[...] = logits - lse


def head(x, w1_t, b1, w2_t, num_classes, tm=256):
    M, F = x.shape
    Hh = w1_t.shape[1]
    Cp = _round_up(num_classes, 128)        # lane-dense class dim
    tm = min(tm, _round_up(M, 16))
    Mp = _round_up(M, tm)

    x_p = _pad2(x, Mp, F).astype(jnp.bfloat16)
    w1_p = w1_t.astype(jnp.bfloat16)
    w2_p = _pad2(w2_t, Hh, Cp).astype(jnp.bfloat16)
    # -1e30 bias on padded classes keeps the log-sum-exp unchanged.
    b2 = jnp.where(jnp.arange(Cp) < num_classes, 0.0, -1e30)
    b2 = b2.reshape(1, Cp).astype(jnp.float32)

    out = pl.pallas_call(
        _head_kernel,
        out_shape=jax.ShapeDtypeStruct((Mp, Cp), jnp.float32),
        grid=(Mp // tm,),
        in_specs=[
            pl.BlockSpec((tm, F), lambda i: (i, 0)),
            pl.BlockSpec((F, Hh), lambda i: (0, 0)),
            pl.BlockSpec((1, Hh), lambda i: (0, 0)),
            pl.BlockSpec((Hh, Cp), lambda i: (0, 0)),
            pl.BlockSpec((1, Cp), lambda i: (0, 0)),
        ],
        out_specs=pl.BlockSpec((tm, Cp), lambda i: (i, 0)),
        compiler_params=pltpu.CompilerParams(
            dimension_semantics=("parallel",),
            vmem_limit_bytes=_VMEM_LIMIT),
    )(x_p, w1_p, b1.reshape(1, Hh).astype(jnp.float32), w2_p, b2)
    return out[:M, :num_classes]


# ----------------------------------------------------------------------------
# Model glue (im2col / parameter folding / masking)
# ----------------------------------------------------------------------------
def conv_block(x, w, bn, stride, padding):
    """Conv2d(bias=False) + BatchNorm2d(eval) + hardtanh(0,20) via tiled Pallas matmul."""
    B, Cin, Hh, Ww = x.shape
    Cout, _, kh, kw = w.shape
    sh, sw = stride
    ph, pw = padding
    Ho = (Hh + 2 * ph - kh) // sh + 1
    Wo = (Ww + 2 * pw - kw) // sw + 1

    # TODO(synk): im2col is materialized in HBM (kh*kw traffic amplification);
    # a streaming windowed-DMA conv (or lax.conv_general_dilated) would remove
    # this intermediate for production spectrogram sizes.
    xp = jnp.pad(x, ((0, 0), (0, 0), (ph, ph), (pw, pw)))
    i_idx = (jnp.arange(Ho) * sh)[:, None] + jnp.arange(kh)[None, :]   # (Ho, kh)
    j_idx = (jnp.arange(Wo) * sw)[:, None] + jnp.arange(kw)[None, :]   # (Wo, kw)
    patches = xp[:, :, i_idx[:, None, :, None], j_idx[None, :, None, :]]
    patches = patches.transpose(0, 2, 3, 1, 4, 5).reshape(B * Ho * Wo, Cin * kh * kw)
    wmat = w.reshape(Cout, Cin * kh * kw).T

    gamma, beta, mean, var = bn
    scale = gamma / jnp.sqrt(var + 1e-5)
    shift = beta - mean * scale
    y = fused_matmul(patches, wmat, out_scale=scale, out_shift=shift,
                     act="hardtanh", out_dtype=jnp.bfloat16)
    # TODO(synk): staying NHWC here would save one full activation transpose.
    return y.reshape(B, Ho, Wo, Cout).transpose(0, 3, 1, 2)            # (B, Cout, Ho, Wo)


def deepspeech2_forward(params, inputs, input_lengths):
    """inputs: (B, T, D) float32, input_lengths: (B,) int32."""
    x = inputs.transpose(0, 2, 1)[:, None]                             # (B, 1, D, T)  NCHW

    # --- DeepSpeech2Extractor (MaskConv of conv+BN+hardtanh blocks) ---
    y = conv_block(x, params["conv1_w"], params["bn1"], stride=(2, 2), padding=(20, 5))
    len1 = (input_lengths + 2 * 5 - (11 - 1) - 1) // 2 + 1
    tmask1 = (jnp.arange(y.shape[-1])[None, :] < len1[:, None]).astype(y.dtype)
    y = y * tmask1[:, None, None, :]

    y = conv_block(y, params["conv2_w"], params["bn2"], stride=(2, 1), padding=(10, 5))
    len2 = (len1 + 2 * 5 - (11 - 1) - 1) // 1 + 1
    tmask2 = (jnp.arange(y.shape[-1])[None, :] < len2[:, None]).astype(y.dtype)
    y = y * tmask2[:, None, None, :]

    Bc, C, D2, T2 = y.shape
    seq = y.reshape(Bc, C * D2, T2).transpose(2, 0, 1)                 # (T2, B, C*D2)

    # Pad the time axis once so the GRU grid processes TB timesteps per step;
    # padded steps are masked inside the recurrence (keep == False).
    TB = min(_TIME_BLOCK, T2)
    Tp = _round_up(T2, TB)
    if Tp != T2:
        seq = jnp.pad(seq, ((0, Tp - T2), (0, 0), (0, 0)))

    # --- BNReluRNN stack ---
    out = seq
    for lp in params["rnn_layers"]:
        out = bigru_layer(out, len2, lp, TB)

    # --- FC head + log_softmax (time-major rows; transpose the small logits) ---
    out = out[:T2]                                                     # drop time padding
    feat = out.shape[-1]
    num_classes = params["fc_w2_t"].shape[1]
    logp = head(out.reshape(T2 * Bc, feat), params["fc_w1_t"], params["fc_b1"],
                params["fc_w2_t"], num_classes)
    logp = logp.reshape(T2, Bc, num_classes).transpose(1, 0, 2)        # (B, T2, C)
    return logp, len2


# ----------------------------------------------------------------------------
# Deterministic synthetic parameters
# ----------------------------------------------------------------------------
def init_params(key, input_dim, num_classes, hidden, num_rnn_layers):
    def nrm(k, shape, scale=0.05):
        return scale * jax.random.normal(k, shape, dtype=jnp.float32)

    keys = iter(jax.random.split(key, 16 + num_rnn_layers * 10))

    def bn_params(k, n):
        k1, k2, k3, k4 = jax.random.split(k, 4)
        gamma = 1.0 + 0.1 * jax.random.normal(k1, (n,), jnp.float32)
        beta = 0.1 * jax.random.normal(k2, (n,), jnp.float32)
        mean = 0.1 * jax.random.normal(k3, (n,), jnp.float32)
        var = 0.5 + jax.random.uniform(k4, (n,), jnp.float32)
        return gamma, beta, mean, var

    p = {
        "conv1_w": nrm(next(keys), (32, 1, 41, 11)),
        "conv2_w": nrm(next(keys), (32, 32, 21, 11)),
        "bn1": bn_params(next(keys), 32),
        "bn2": bn_params(next(keys), 32),
    }

    f1 = (input_dim + 2 * 20 - 41) // 2 + 1
    f2 = (f1 + 2 * 10 - 21) // 2 + 1
    rnn_in0 = f2 * 32                 # == (input_size << 5) in the PyTorch module
    rnn_out = 2 * hidden              # bidirectional
    H = hidden

    layers = []
    for l in range(num_rnn_layers):
        d_in = rnn_in0 if l == 0 else rnn_out
        w_ih = nrm(next(keys), (2, d_in, 3 * H), 0.08)   # per-dir x-proj (gate-major r|z|n)
        b_ih = nrm(next(keys), (2, 3 * H), 0.08)
        w_hh = nrm(next(keys), (2, H, 3 * H), 0.08)      # per-dir W_h{r,z,n}^T
        b_hh = nrm(next(keys), (2, 3 * H), 0.08)
        # Fold b_hr, b_hz into the precomputed input projection; keep b_hn separate
        # (it must be multiplied by the reset gate inside the recurrence).
        b_proj = jnp.concatenate(
            [b_ih[d] + jnp.concatenate([b_hh[d, :2 * H], jnp.zeros((H,), jnp.float32)])
             for d in range(2)], axis=0)                 # (6H,)
        layers.append({
            "bn_gamma": 1.0 + 0.1 * jax.random.normal(next(keys), (d_in,), jnp.float32),
            "bn_beta": 0.1 * jax.random.normal(next(keys), (d_in,), jnp.float32),
            "bn_mean": 0.1 * jax.random.normal(next(keys), (d_in,), jnp.float32),
            "bn_var": 0.5 + jax.random.uniform(next(keys), (d_in,), jnp.float32),
            "w_ih_t": jnp.concatenate([w_ih[0], w_ih[1]], axis=1),   # (d_in, 6H)
            "b_proj": b_proj,                                        # (6H,)
            "w_hh": w_hh,                                            # (2, H, 3H)
            "b_hn": b_hh[:, 2 * H:].reshape(2, 1, H),                # (2, 1, H)
        })
    p["rnn_layers"] = layers

    p["fc_w1_t"] = nrm(next(keys), (rnn_out, H), 0.08)
    p["fc_b1"] = nrm(next(keys), (H,), 0.08)
    p["fc_w2_t"] = nrm(next(keys), (H, num_classes), 0.08)
    return p


# ----------------------------------------------------------------------------
if __name__ == "__main__":
    INPUT_DIM = 20        # spectrogram feature dim
    NUM_CLASSES = 10
    HIDDEN = 32           # rnn_hidden_dim (small synthetic config)
    NUM_RNN_LAYERS = 2
    BATCH = 2
    SEQ = 16

    key = jax.random.PRNGKey(0)
    kp, kx = jax.random.split(key)
    params = init_params(kp, INPUT_DIM, NUM_CLASSES, HIDDEN, NUM_RNN_LAYERS)

    inputs = jax.random.normal(kx, (BATCH, SEQ, INPUT_DIM), dtype=jnp.float32)
    input_lengths = jnp.array([16, 12], dtype=jnp.int32)

    fwd = jax.jit(deepspeech2_forward)
    log_probs, out_lengths = fwd(params, inputs, input_lengths)
    log_probs = jax.block_until_ready(log_probs)
    out_lengths = jax.block_until_ready(out_lengths)

    assert log_probs.shape == (BATCH, 8, NUM_CLASSES), log_probs.shape
    assert bool(jnp.all(jnp.isfinite(log_probs)))
    # log_softmax rows should sum to ~1 in prob space
    assert bool(jnp.allclose(jnp.sum(jnp.exp(log_probs), axis=-1), 1.0, atol=1e-4))
    # TODO(synk): training-mode BatchNorm batch statistics and GRU inter-layer
    # dropout are not modeled (eval-mode / no-op semantics used).
    print("KERNEL_OK")
</pallas_src>

<mosaic_0001>
module attributes {stable_mosaic.version = 11 : i64} {
  func.func @kernel(%arg0: i32, %arg1: i32, %arg2: i32, %arg3: memref<160x512xbf16, #tpu.memory_space<vmem>>, %arg4: memref<512x128xbf16, #tpu.memory_space<vmem>>, %arg5: memref<1x128xf32, #tpu.memory_space<vmem>>, %arg6: memref<1x128xf32, #tpu.memory_space<vmem>>, %arg7: memref<160x128xbf16, #tpu.memory_space<vmem>>, %arg8: memref<160x128xf32, #tpu.memory_space<vmem>>) attributes {dimension_semantics = [#tpu.dimension_semantics<parallel>, #tpu.dimension_semantics<parallel>, #tpu.dimension_semantics<arbitrary>], iteration_bounds = array<i64: 1, 1, 1>, scalar_prefetch = 0 : i64, scratch_operands = 1 : i64, tpu.core_type = #tpu.core_type<tc>, window_params = [{transform_indices = @transform_0, window_bounds = array<i64: 160, 512>}, {transform_indices = @transform_1, window_bounds = array<i64: 512, 128>}, {transform_indices = @transform_2, window_bounds = array<i64: 1, 128>}, {transform_indices = @transform_3, window_bounds = array<i64: 1, 128>}, {transform_indices = @transform_4, window_bounds = array<i64: 160, 128>}]} {
    %c0_i32 = arith.constant 0 : i32
    %0 = arith.cmpi eq, %arg2, %c0_i32 : i32
    %1 = arith.extui %0 : i1 to i32
    %c0_i32_0 = arith.constant 0 : i32
    %2 = arith.cmpi ne, %1, %c0_i32_0 : i32
    scf.if %2 {
      %cst_10 = arith.constant 0.000000e+00 : f32
      %12 = vector.broadcast %cst_10 : f32 to vector<160x128xf32>
      %c0_11 = arith.constant 0 : index
      %c0_12 = arith.constant 0 : index
      %13 = vector.load %arg8[%c0_11, %c0_12] : memref<160x128xf32, #tpu.memory_space<vmem>>, vector<160x128xf32>
      tpu.vector_store %arg8[%c0_11, %c0_12], %12 {strides = array<i32>} : memref<160x128xf32, #tpu.memory_space<vmem>>, vector<160x128xf32>,
    } else {
    }
    %c0 = arith.constant 0 : index
    %c0_1 = arith.constant 0 : index
    %3 = vector.load %arg3[%c0, %c0_1] : memref<160x512xbf16, #tpu.memory_space<vmem>>, vector<160x512xbf16>
    %c0_2 = arith.constant 0 : index
    %c0_3 = arith.constant 0 : index
    %4 = vector.load %arg8[%c0_2, %c0_3] : memref<160x128xf32, #tpu.memory_space<vmem>>, vector<160x128xf32>
    %c0_4 = arith.constant 0 : index
    %c0_5 = arith.constant 0 : index
    %5 = vector.load %arg4[%c0_4, %c0_5] : memref<512x128xbf16, #tpu.memory_space<vmem>>, vector<512x128xbf16>
    %cst = arith.constant dense<0.000000e+00> : vector<160x128xf32>
    %6 = tpu.matmul %3, %5, %cst {dimension_numbers = #tpu.dot_dimension_numbers<[1], [0], [0], [1], [0, 0, 1, 1], [], []>} : vector<160x512xbf16>, vector<512x128xbf16>, vector<160x128xf32> -> vector<160x128xf32>
    %7 = arith.addf %4, %6 : vector<160x128xf32>
    %c0_6 = arith.constant 0 : index
    %c0_7 = arith.constant 0 : index
    %8 = vector.load %arg8[%c0_6, %c0_7] : memref<160x128xf32, #tpu.memory_space<vmem>>, vector<160x128xf32>
    tpu.vector_store %arg8[%c0_6, %c0_7], %7 {strides = array<i32>} : memref<160x128xf32, #tpu.memory_space<vmem>>, vector<160x128xf32>,
    %c0_i32_8 = arith.constant 0 : i32
    %9 = arith.cmpi eq, %arg2, %c0_i32_8 : i32
    %10 = arith.extui %9 : i1 to i32
    %c0_i32_9 = arith.constant 0 : i32
    %11 = arith.cmpi ne, %10, %c0_i32_9 : i32
    scf.if %11 {
      %c0_10 = arith.constant 0 : index
      %c0_11 = arith.constant 0 : index
      %12 = vector.load %arg8[%c0_10, %c0_11] : memref<160x128xf32, #tpu.memory_space<vmem>>, vector<160x128xf32>
      %c0_12 = arith.constant 0 : index
      %c0_13 = arith.constant 0 : index
      %13 = vector.load %arg5[%c0_12, %c0_13] : memref<1x128xf32, #tpu.memory_space<vmem>>, vector<1x128xf32>
      %14 = vector.broadcast %13 : vector<1x128xf32> to vector<160x128xf32>
      %15 = arith.mulf %12, %14 : vector<160x128xf32>
      %c0_14 = arith.constant 0 : index
      %c0_15 = arith.constant 0 : index
      %16 = vector.load %arg6[%c0_14, %c0_15] : memref<1x128xf32, #tpu.memory_space<vmem>>, vector<1x128xf32>
      %17 = vector.broadcast %16 : vector<1x128xf32> to vector<160x128xf32>
      %18 = arith.addf %15, %17 : vector<160x128xf32>
      %cst_16 = arith.constant 0.000000e+00 : f32
      %cst_17 = arith.constant 2.000000e+01 : f32
      %19 = vector.broadcast %cst_16 : f32 to vector<160x128xf32>
      %20 = arith.maximumf %19, %18 : vector<160x128xf32>
      %21 = vector.broadcast %cst_17 : f32 to vector<160x128xf32>
      %22 = arith.minimumf %21, %20 : vector<160x128xf32>
      %23 = arith.truncf %22 : vector<160x128xf32> to vector<160x128xbf16>
      %c0_18 = arith.constant 0 : index
      %c0_19 = arith.constant 0 : index
      %24 = vector.load %arg7[%c0_18, %c0_19] : memref<160x128xbf16, #tpu.memory_space<vmem>>, vector<160x128xbf16>
      tpu.vector_store %arg7[%c0_18, %c0_19], %23 {strides = array<i32>} : memref<160x128xbf16, #tpu.memory_space<vmem>>, vector<160x128xbf16>,
    } else {
    }
    return
  }
  func.func @transform_0(%arg0: i32, %arg1: i32, %arg2: i32) -> (i32, i32) {
    %c0_i32 = arith.constant 0 : i32
    return %arg0, %arg2 : i32, i32
  }
  func.func @transform_1(%arg0: i32, %arg1: i32, %arg2: i32) -> (i32, i32) {
    %c0_i32 = arith.constant 0 : i32
    return %arg2, %arg1 : i32, i32
  }
  func.func @transform_2(%arg0: i32, %arg1: i32, %arg2: i32) -> (i32, i32) {
    %c0_i32 = arith.constant 0 : i32
    %c0_i32_0 = arith.constant 0 : i32
    return %c0_i32, %arg1 : i32, i32
  }
  func.func @transform_3(%arg0: i32, %arg1: i32, %arg2: i32) -> (i32, i32) {
    %c0_i32 = arith.constant 0 : i32
    %c0_i32_0 = arith.constant 0 : i32
    return %c0_i32, %arg1 : i32, i32
  }
  func.func @transform_4(%arg0: i32, %arg1: i32, %arg2: i32) -> (i32, i32) {
    %c0_i32 = arith.constant 0 : i32
    return %arg0, %arg1 : i32, i32
  }
}

module attributes {stable_mosaic.version = 11 : i64} {
  func.func @kernel(%arg0: i32, %arg1: i32, %arg2: i32, %arg3: memref<80x512xbf16, #tpu.memory_space<vmem>>, %arg4: memref<512x128xbf16, #tpu.memory_space<vmem>>, %arg5: memref<1x128xf32, #tpu.memory_space<vmem>>, %arg6: memref<1x128xf32, #tpu.memory_space<vmem>>, %arg7: memref<80x128xbf16, #tpu.memory_space<vmem>>, %arg8: memref<80x128xf32, #tpu.memory_space<vmem>>) attributes {dimension_semantics = [#tpu.dimension_semantics<parallel>, #tpu.dimension_semantics<parallel>, #tpu.dimension_semantics<arbitrary>], iteration_bounds = array<i64: 1, 1, 15>, scalar_prefetch = 0 : i64, scratch_operands = 1 : i64, tpu.core_type = #tpu.core_type<tc>, window_params = [{transform_indices = @transform_0, window_bounds = array<i64: 80, 512>}, {transform_indices = @transform_1, window_bounds = array<i64: 512, 128>}, {transform_indices = @transform_2, window_bounds = array<i64: 1, 128>}, {transform_indices = @transform_3, window_bounds = array<i64: 1, 128>}, {transform_indices = @transform_4, window_bounds = array<i64: 80, 128>}]} {
    %c0_i32 = arith.constant 0 : i32
    %0 = arith.cmpi eq, %arg2, %c0_i32 : i32
    %1 = arith.extui %0 : i1 to i32
    %c0_i32_0 = arith.constant 0 : i32
    %2 = arith.cmpi ne, %1, %c0_i32_0 : i32
    scf.if %2 {
      %cst_9 = arith.constant 0.000000e+00 : f32
      %12 = vector.broadcast %cst_9 : f32 to vector<80x128xf32>
      %c0_10 = arith.constant 0 : index
      %c0_11 = arith.constant 0 : index
      %13 = vector.load %arg8[%c0_10, %c0_11] : memref<80x128xf32, #tpu.memory_space<vmem>>, vector<80x128xf32>
      tpu.vector_store %arg8[%c0_10, %c0_11], %12 {strides = array<i32>} : memref<80x128xf32, #tpu.memory_space<vmem>>, vector<80x128xf32>,
    } else {
    }
    %c0 = arith.constant 0 : index
    %c0_1 = arith.constant 0 : index
    %3 = vector.load %arg3[%c0, %c0_1] : memref<80x512xbf16, #tpu.memory_space<vmem>>, vector<80x512xbf16>
    %c0_2 = arith.constant 0 : index
    %c0_3 = arith.constant 0 : index
    %4 = vector.load %arg8[%c0_2, %c0_3] : memref<80x128xf32, #tpu.memory_space<vmem>>, vector<80x128xf32>
    %c0_4 = arith.constant 0 : index
    %c0_5 = arith.constant 0 : index
    %5 = vector.load %arg4[%c0_4, %c0_5] : memref<512x128xbf16, #tpu.memory_space<vmem>>, vector<512x128xbf16>
    %cst = arith.constant dense<0.000000e+00> : vector<80x128xf32>
    %6 = tpu.matmul %3, %5, %cst {dimension_numbers = #tpu.dot_dimension_numbers<[1], [0], [0], [1], [0, 0, 1, 1], [], []>} : vector<80x512xbf16>, vector<512x128xbf16>, vector<80x128xf32> -> vector<80x128xf32>
    %7 = arith.addf %4, %6 : vector<80x128xf32>
    %c0_6 = arith.constant 0 : index
    %c0_7 = arith.constant 0 : index
    %8 = vector.load %arg8[%c0_6, %c0_7] : memref<80x128xf32, #tpu.memory_space<vmem>>, vector<80x128xf32>
    tpu.vector_store %arg8[%c0_6, %c0_7], %7 {strides = array<i32>} : memref<80x128xf32, #tpu.memory_space<vmem>>, vector<80x128xf32>,
    %c14_i32 = arith.constant 14 : i32
    %9 = arith.cmpi eq, %arg2, %c14_i32 : i32
    %10 = arith.extui %9 : i1 to i32
    %c0_i32_8 = arith.constant 0 : i32
    %11 = arith.cmpi ne, %10, %c0_i32_8 : i32
    scf.if %11 {
      %c0_9 = arith.constant 0 : index
      %c0_10 = arith.constant 0 : index
      %12 = vector.load %arg8[%c0_9, %c0_10] : memref<80x128xf32, #tpu.memory_space<vmem>>, vector<80x128xf32>
      %c0_11 = arith.constant 0 : index
      %c0_12 = arith.constant 0 : index
      %13 = vector.load %arg5[%c0_11, %c0_12] : memref<1x128xf32, #tpu.memory_space<vmem>>, vector<1x128xf32>
      %14 = vector.broadcast %13 : vector<1x128xf32> to vector<80x128xf32>
      %15 = arith.mulf %12, %14 : vector<80x128xf32>
      %c0_13 = arith.constant 0 : index
      %c0_14 = arith.constant 0 : index
      %16 = vector.load %arg6[%c0_13, %c0_14] : memref<1x128xf32, #tpu.memory_space<vmem>>, vector<1x128xf32>
      %17 = vector.broadcast %16 : vector<1x128xf32> to vector<80x128xf32>
      %18 = arith.addf %15, %17 : vector<80x128xf32>
      %cst_15 = arith.constant 0.000000e+00 : f32
      %cst_16 = arith.constant 2.000000e+01 : f32
      %19 = vector.broadcast %cst_15 : f32 to vector<80x128xf32>
      %20 = arith.maximumf %19, %18 : vector<80x128xf32>
      %21 = vector.broadcast %cst_16 : f32 to vector<80x128xf32>
      %22 = arith.minimumf %21, %20 : vector<80x128xf32>
      %23 = arith.truncf %22 : vector<80x128xf32> to vector<80x128xbf16>
      %c0_17 = arith.constant 0 : index
      %c0_18 = arith.constant 0 : index
      %24 = vector.load %arg7[%c0_17, %c0_18] : memref<80x128xbf16, #tpu.memory_space<vmem>>, vector<80x128xbf16>
      tpu.vector_store %arg7[%c0_17, %c0_18], %23 {strides = array<i32>} : memref<80x128xbf16, #tpu.memory_space<vmem>>, vector<80x128xbf16>,
    } else {
    }
    return
  }
  func.func @transform_0(%arg0: i32, %arg1: i32, %arg2: i32) -> (i32, i32) {
    %c0_i32 = arith.constant 0 : i32
    return %arg0, %arg2 : i32, i32
  }
  func.func @transform_1(%arg0: i32, %arg1: i32, %arg2: i32) -> (i32, i32) {
    %c0_i32 = arith.constant 0 : i32
    return %arg2, %arg1 : i32, i32
  }
  func.func @transform_2(%arg0: i32, %arg1: i32, %arg2: i32) -> (i32, i32) {
    %c0_i32 = arith.constant 0 : i32
    %c0_i32_0 = arith.constant 0 : i32
    return %c0_i32, %arg1 : i32, i32
  }
  func.func @transform_3(%arg0: i32, %arg1: i32, %arg2: i32) -> (i32, i32) {
    %c0_i32 = arith.constant 0 : i32
    %c0_i32_0 = arith.constant 0 : i32
    return %c0_i32, %arg1 : i32, i32
  }
  func.func @transform_4(%arg0: i32, %arg1: i32, %arg2: i32) -> (i32, i32) {
    %c0_i32 = arith.constant 0 : i32
    return %arg0, %arg1 : i32, i32
  }
}

module attributes {stable_mosaic.version = 11 : i64} {
  func.func @kernel(%arg0: i32, %arg1: i32, %arg2: i32, %arg3: memref<16x256xbf16, #tpu.memory_space<vmem>>, %arg4: memref<256x256xbf16, #tpu.memory_space<vmem>>, %arg5: memref<1x256xf32, #tpu.memory_space<vmem>>, %arg6: memref<1x256xf32, #tpu.memory_space<vmem>>, %arg7: memref<1x256xf32, #tpu.memory_space<vmem>>, %arg8: memref<16x256xbf16, #tpu.memory_space<vmem>>, %arg9: memref<16x256xf32, #tpu.memory_space<vmem>>) attributes {dimension_semantics = [#tpu.dimension_semantics<parallel>, #tpu.dimension_semantics<parallel>, #tpu.dimension_semantics<arbitrary>], iteration_bounds = array<i64: 1, 1, 1>, scalar_prefetch = 0 : i64, scratch_operands = 1 : i64, tpu.core_type = #tpu.core_type<tc>, window_params = [{transform_indices = @transform_0, window_bounds = array<i64: 16, 256>}, {transform_indices = @transform_1, window_bounds = array<i64: 256, 256>}, {transform_indices = @transform_2, window_bounds = array<i64: 1, 256>}, {transform_indices = @transform_3, window_bounds = array<i64: 1, 256>}, {transform_indices = @transform_4, window_bounds = array<i64: 1, 256>}, {transform_indices = @transform_5, window_bounds = array<i64: 16, 256>}]} {
    %c0_i32 = arith.constant 0 : i32
    %0 = arith.cmpi eq, %arg2, %c0_i32 : i32
    %1 = arith.extui %0 : i1 to i32
    %c0_i32_0 = arith.constant 0 : i32
    %2 = arith.cmpi ne, %1, %c0_i32_0 : i32
    scf.if %2 {
      %cst_15 = arith.constant 0.000000e+00 : f32
      %22 = vector.broadcast %cst_15 : f32 to vector<16x256xf32>
      %c0_16 = arith.constant 0 : index
      %c0_17 = arith.constant 0 : index
      %23 = vector.load %arg9[%c0_16, %c0_17] : memref<16x256xf32, #tpu.memory_space<vmem>>, vector<16x256xf32>
      tpu.vector_store %arg9[%c0_16, %c0_17], %22 {strides = array<i32>} : memref<16x256xf32, #tpu.memory_space<vmem>>, vector<16x256xf32>,
    } else {
    }
    %c0 = arith.constant 0 : index
    %c0_1 = arith.constant 0 : index
    %3 = vector.load %arg3[%c0, %c0_1] : memref<16x256xbf16, #tpu.memory_space<vmem>>, vector<16x256xbf16>
    %4 = arith.extf %3 : vector<16x256xbf16> to vector<16x256xf32>
    %c0_2 = arith.constant 0 : index
    %c0_3 = arith.constant 0 : index
    %5 = vector.load %arg5[%c0_2, %c0_3] : memref<1x256xf32, #tpu.memory_space<vmem>>, vector<1x256xf32>
    %6 = vector.broadcast %5 : vector<1x256xf32> to vector<16x256xf32>
    %7 = arith.mulf %4, %6 : vector<16x256xf32>
    %c0_4 = arith.constant 0 : index
    %c0_5 = arith.constant 0 : index
    %8 = vector.load %arg6[%c0_4, %c0_5] : memref<1x256xf32, #tpu.memory_space<vmem>>, vector<1x256xf32>
    %9 = vector.broadcast %8 : vector<1x256xf32> to vector<16x256xf32>
    %10 = arith.addf %7, %9 : vector<16x256xf32>
    %cst = arith.constant 0.000000e+00 : f32
    %11 = vector.broadcast %cst : f32 to vector<16x256xf32>
    %12 = arith.maximumf %10, %11 : vector<16x256xf32>
    %13 = arith.truncf %12 : vector<16x256xf32> to vector<16x256xbf16>
    %c0_6 = arith.constant 0 : index
    %c0_7 = arith.constant 0 : index
    %14 = vector.load %arg9[%c0_6, %c0_7] : memref<16x256xf32, #tpu.memory_space<vmem>>, vector<16x256xf32>
    %c0_8 = arith.constant 0 : index
    %c0_9 = arith.constant 0 : index
    %15 = vector.load %arg4[%c0_8, %c0_9] : memref<256x256xbf16, #tpu.memory_space<vmem>>, vector<256x256xbf16>
    %cst_10 = arith.constant dense<0.000000e+00> : vector<16x256xf32>
    %16 = tpu.matmul %13, %15, %cst_10 {dimension_numbers = #tpu.dot_dimension_numbers<[1], [0], [0], [1], [0, 0, 1, 1], [], []>} : vector<16x256xbf16>, vector<256x256xbf16>, vector<16x256xf32> -> vector<16x256xf32>
    %17 = arith.addf %14, %16 : vector<16x256xf32>
    %c0_11 = arith.constant 0 : index
    %c0_12 = arith.constant 0 : index
    %18 = vector.load %arg9[%c0_11, %c0_12] : memref<16x256xf32, #tpu.memory_space<vmem>>, vector<16x256xf32>
    tpu.vector_store %arg9[%c0_11, %c0_12], %17 {strides = array<i32>} : memref<16x256xf32, #tpu.memory_space<vmem>>, vector<16x256xf32>,
    %c0_i32_13 = arith.constant 0 : i32
    %19 = arith.cmpi eq, %arg2, %c0_i32_13 : i32
    %20 = arith.extui %19 : i1 to i32
    %c0_i32_14 = arith.constant 0 : i32
    %21 = arith.cmpi ne, %20, %c0_i32_14 : i32
    scf.if %21 {
      %c0_15 = arith.constant 0 : index
      %c0_16 = arith.constant 0 : index
      %22 = vector.load %arg9[%c0_15, %c0_16] : memref<16x256xf32, #tpu.memory_space<vmem>>, vector<16x256xf32>
      %c0_17 = arith.constant 0 : index
      %c0_18 = arith.constant 0 : index
      %23 = vector.load %arg7[%c0_17, %c0_18] : memref<1x256xf32, #tpu.memory_space<vmem>>, vector<1x256xf32>
      %24 = vector.broadcast %23 : vector<1x256xf32> to vector<16x256xf32>
      %25 = arith.addf %22, %24 : vector<16x256xf32>
      %26 = arith.truncf %25 : vector<16x256xf32> to vector<16x256xbf16>
      %c0_19 = arith.constant 0 : index
      %c0_20 = arith.constant 0 : index
      %27 = vector.load %arg8[%c0_19, %c0_20] : memref<16x256xbf16, #tpu.memory_space<vmem>>, vector<16x256xbf16>
      tpu.vector_store %arg8[%c0_19, %c0_20], %26 {strides = array<i32>} : memref<16x256xbf16, #tpu.memory_space<vmem>>, vector<16x256xbf16>,
    } else {
    }
    return
  }
  func.func @transform_0(%arg0: i32, %arg1: i32, %arg2: i32) -> (i32, i32) {
    %c0_i32 = arith.constant 0 : i32
    return %arg0, %arg2 : i32, i32
  }
  func.func @transform_1(%arg0: i32, %arg1: i32, %arg2: i32) -> (i32, i32) {
    %c0_i32 = arith.constant 0 : i32
    return %arg2, %arg1 : i32, i32
  }
  func.func @transform_2(%arg0: i32, %arg1: i32, %arg2: i32) -> (i32, i32) {
    %c0_i32 = arith.constant 0 : i32
    %c0_i32_0 = arith.constant 0 : i32
    return %c0_i32, %arg2 : i32, i32
  }
  func.func @transform_3(%arg0: i32, %arg1: i32, %arg2: i32) -> (i32, i32) {
    %c0_i32 = arith.constant 0 : i32
    %c0_i32_0 = arith.constant 0 : i32
    return %c0_i32, %arg2 : i32, i32
  }
  func.func @transform_4(%arg0: i32, %arg1: i32, %arg2: i32) -> (i32, i32) {
    %c0_i32 = arith.constant 0 : i32
    %c0_i32_0 = arith.constant 0 : i32
    return %c0_i32, %arg1 : i32, i32
  }
  func.func @transform_5(%arg0: i32, %arg1: i32, %arg2: i32) -> (i32, i32) {
    %c0_i32 = arith.constant 0 : i32
    return %arg0, %arg1 : i32, i32
  }
}

module attributes {stable_mosaic.version = 11 : i64} {
  func.func @kernel(%arg0: i32, %arg1: memref<8x2x192xbf16, #tpu.memory_space<vmem>>, %arg2: memref<8x2x192xbf16, #tpu.memory_space<vmem>>, %arg3: memref<2x1xi32, #tpu.memory_space<vmem>>, %arg4: memref<2x32x96xbf16, #tpu.memory_space<vmem>>, %arg5: memref<2x1x32xf32, #tpu.memory_space<vmem>>, %arg6: memref<8x2x32xbf16, #tpu.memory_space<vmem>>, %arg7: memref<8x2x32xbf16, #tpu.memory_space<vmem>>, %arg8: memref<2x32xf32, #tpu.memory_space<vmem>>, %arg9: memref<2x32xf32, #tpu.memory_space<vmem>>) attributes {dimension_semantics = [#tpu.dimension_semantics<arbitrary>], iteration_bounds = array<i64: 1>, scalar_prefetch = 0 : i64, scratch_operands = 2 : i64, tpu.core_type = #tpu.core_type<tc>, window_params = [{transform_indices = @transform_0, window_bounds = array<i64: 8, 2, 192>}, {transform_indices = @transform_1, window_bounds = array<i64: 8, 2, 192>}, {pipeline_mode = #tpu.pipeline_mode<synchronous>, transform_indices = @transform_2, window_bounds = array<i64: 2, 1>}, {pipeline_mode = #tpu.pipeline_mode<synchronous>, transform_indices = @transform_3, window_bounds = array<i64: 2, 32, 96>}, {pipeline_mode = #tpu.pipeline_mode<synchronous>, transform_indices = @transform_4, window_bounds = array<i64: 2, 1, 32>}, {transform_indices = @transform_5, window_bounds = array<i64: 8, 2, 32>}, {transform_indices = @transform_6, window_bounds = array<i64: 8, 2, 32>}]} {
    %c0_i32 = arith.constant 0 : i32
    %0 = arith.cmpi eq, %arg0, %c0_i32 : i32
    %1 = arith.extui %0 : i1 to i32
    %c0_i32_0 = arith.constant 0 : i32
    %2 = arith.cmpi ne, %1, %c0_i32_0 : i32
    scf.if %2 {
      %cst_285 = arith.constant 0.000000e+00 : f32
      %859 = vector.broadcast %cst_285 : f32 to vector<2x32xf32>
      %c0_286 = arith.constant 0 : index
      %c0_287 = arith.constant 0 : index
      %860 = vector.load %arg8[%c0_286, %c0_287] : memref<2x32xf32, #tpu.memory_space<vmem>>, vector<2x32xf32>
      tpu.vector_store %arg8[%c0_286, %c0_287], %859 {strides = array<i32>} : memref<2x32xf32, #tpu.memory_space<vmem>>, vector<2x32xf32>,
      %cst_288 = arith.constant 0.000000e+00 : f32
      %861 = vector.broadcast %cst_288 : f32 to vector<2x32xf32>
      %c0_289 = arith.constant 0 : index
      %c0_290 = arith.constant 0 : index
      %862 = vector.load %arg9[%c0_289, %c0_290] : memref<2x32xf32, #tpu.memory_space<vmem>>, vector<2x32xf32>
      tpu.vector_store %arg9[%c0_289, %c0_290], %861 {strides = array<i32>} : memref<2x32xf32, #tpu.memory_space<vmem>>, vector<2x32xf32>,
    } else {
    }
    %c0 = arith.constant 0 : index
    %c0_1 = arith.constant 0 : index
    %3 = vector.load %arg3[%c0, %c0_1] : memref<2x1xi32, #tpu.memory_space<vmem>>, vector<2x1xi32>
    %c8_i32 = arith.constant 8 : i32
    %4 = arith.muli %arg0, %c8_i32 : i32
    %c0_2 = arith.constant 0 : index
    %c0_3 = arith.constant 0 : index
    %5 = vector.load %arg8[%c0_2, %c0_3] : memref<2x32xf32, #tpu.memory_space<vmem>>, vector<2x32xf32>
    %c0_4 = arith.constant 0 : index
    %c0_5 = arith.constant 0 : index
    %c0_6 = arith.constant 0 : index
    %6 = vector.load %arg1[%c0_4, %c0_5, %c0_6] : memref<8x2x192xbf16, #tpu.memory_space<vmem>>, vector<1x2x192xbf16>
    %7 = vector.shape_cast %6 : vector<1x2x192xbf16> to vector<2x192xbf16>
    %8 = arith.truncf %5 : vector<2x32xf32> to vector<2x32xbf16>
    %c0_7 = arith.constant 0 : index
    %c0_8 = arith.constant 0 : index
    %c0_9 = arith.constant 0 : index
    %9 = vector.load %arg4[%c0_7, %c0_8, %c0_9] : memref<2x32x96xbf16, #tpu.memory_space<vmem>>, vector<1x32x96xbf16>
    %10 = vector.shape_cast %9 : vector<1x32x96xbf16> to vector<32x96xbf16>
    %cst = arith.constant dense<0.000000e+00> : vector<2x96xf32>
    %11 = tpu.matmul %8, %10, %cst {dimension_numbers = #tpu.dot_dimension_numbers<[1], [0], [0], [1], [0, 0, 1, 1], [], []>} : vector<2x32xbf16>, vector<32x96xbf16>, vector<2x96xf32> -> vector<2x96xf32>
    %12 = vector.extract_strided_slice %7 {offsets = [0, 0], sizes = [2, 32], strides = [1, 1]} : vector<2x192xbf16> to vector<2x32xbf16>
    %13 = arith.extf %12 : vector<2x32xbf16> to vector<2x32xf32>
    %14 = vector.extract_strided_slice %7 {offsets = [0, 32], sizes = [2, 32], strides = [1, 1]} : vector<2x192xbf16> to vector<2x32xbf16>
    %15 = arith.extf %14 : vector<2x32xbf16> to vector<2x32xf32>
    %16 = vector.extract_strided_slice %7 {offsets = [0, 64], sizes = [2, 32], strides = [1, 1]} : vector<2x192xbf16> to vector<2x32xbf16>
    %17 = arith.extf %16 : vector<2x32xbf16> to vector<2x32xf32>
    %18 = vector.extract_strided_slice %11 {offsets = [0, 0], sizes = [2, 32], strides = [1, 1]} : vector<2x96xf32> to vector<2x32xf32>
    %19 = arith.addf %13, %18 : vector<2x32xf32>
    %20 = arith.negf %19 : vector<2x32xf32>
    %21 = math.exp %20 : vector<2x32xf32>
    %cst_10 = arith.constant 1.000000e+00 : f32
    %22 = vector.broadcast %cst_10 : f32 to vector<2x32xf32>
    %23 = arith.addf %22, %21 : vector<2x32xf32>
    %24 = arith.divf %22, %23 : vector<2x32xf32>
    %25 = vector.extract_strided_slice %11 {offsets = [0, 32], sizes = [2, 32], strides = [1, 1]} : vector<2x96xf32> to vector<2x32xf32>
    %26 = arith.addf %15, %25 : vector<2x32xf32>
    %27 = arith.negf %26 : vector<2x32xf32>
    %28 = math.exp %27 : vector<2x32xf32>
    %cst_11 = arith.constant 1.000000e+00 : f32
    %29 = vector.broadcast %cst_11 : f32 to vector<2x32xf32>
    %30 = arith.addf %29, %28 : vector<2x32xf32>
    %31 = arith.divf %29, %30 : vector<2x32xf32>
    %32 = vector.extract_strided_slice %11 {offsets = [0, 64], sizes = [2, 32], strides = [1, 1]} : vector<2x96xf32> to vector<2x32xf32>
    %c0_12 = arith.constant 0 : index
    %c0_13 = arith.constant 0 : index
    %c0_14 = arith.constant 0 : index
    %33 = vector.load %arg5[%c0_12, %c0_13, %c0_14] : memref<2x1x32xf32, #tpu.memory_space<vmem>>, vector<1x1x32xf32>
    %34 = vector.shape_cast %33 : vector<1x1x32xf32> to vector<1x32xf32>
    %35 = vector.broadcast %34 : vector<1x32xf32> to vector<2x32xf32>
    %36 = arith.addf %32, %35 : vector<2x32xf32>
    %37 = arith.mulf %24, %36 : vector<2x32xf32>
    %38 = arith.addf %17, %37 : vector<2x32xf32>
    %39 = math.tanh %38 : vector<2x32xf32>
    %cst_15 = arith.constant 1.000000e+00 : f32
    %40 = vector.broadcast %cst_15 : f32 to vector<2x32xf32>
    %41 = arith.subf %40, %31 : vector<2x32xf32>
    %42 = arith.mulf %41, %39 : vector<2x32xf32>
    %43 = arith.mulf %31, %5 : vector<2x32xf32>
    %44 = arith.addf %42, %43 : vector<2x32xf32>
    %c0_i32_16 = arith.constant 0 : i32
    %45 = arith.addi %4, %c0_i32_16 : i32
    %46 = vector.broadcast %45 : i32 to vector<2x1xi32>
    %47 = arith.cmpi slt, %46, %3 : vector<2x1xi32>
    %48 = vector.shape_cast %47 : vector<2x1xi1> to vector<2x1xi1>
    %49 = vector.broadcast %48 : vector<2x1xi1> to vector<2x32xi1>
    %50 = arith.select %49, %44, %5 : vector<2x32xi1>, vector<2x32xf32>
    %cst_17 = arith.constant 0.000000e+00 : f32
    %51 = vector.shape_cast %47 : vector<2x1xi1> to vector<2x1xi1>
    %52 = vector.broadcast %51 : vector<2x1xi1> to vector<2x32xi1>
    %53 = vector.broadcast %cst_17 : f32 to vector<2x32xf32>
    %54 = arith.select %52, %44, %53 : vector<2x32xi1>, vector<2x32xf32>
    %55 = arith.truncf %54 : vector<2x32xf32> to vector<2x32xbf16>
    %c0_18 = arith.constant 0 : index
    %c0_19 = arith.constant 0 : index
    %c0_20 = arith.constant 0 : index
    %56 = vector.load %arg6[%c0_18, %c0_19, %c0_20] : memref<8x2x32xbf16, #tpu.memory_space<vmem>>, vector<1x2x32xbf16>
    %57 = vector.shape_cast %56 : vector<1x2x32xbf16> to vector<2x32xbf16>
    %58 = vector.shape_cast %55 : vector<2x32xbf16> to vector<1x2x32xbf16>
    tpu.vector_store %arg6[%c0_18, %c0_19, %c0_20], %58 {strides = array<i32>} : memref<8x2x32xbf16, #tpu.memory_space<vmem>>, vector<1x2x32xbf16>,
    %c1 = arith.constant 1 : index
    %c0_21 = arith.constant 0 : index
    %c0_22 = arith.constant 0 : index
    %59 = vector.load %arg1[%c1, %c0_21, %c0_22] : memref<8x2x192xbf16, #tpu.memory_space<vmem>>, vector<1x2x192xbf16>
    %60 = vector.shape_cast %59 : vector<1x2x192xbf16> to vector<2x192xbf16>
    %61 = arith.truncf %50 : vector<2x32xf32> to vector<2x32xbf16>
    %c0_23 = arith.constant 0 : index
    %c0_24 = arith.constant 0 : index
    %c0_25 = arith.constant 0 : index
    %62 = vector.load %arg4[%c0_23, %c0_24, %c0_25] : memref<2x32x96xbf16, #tpu.memory_space<vmem>>, vector<1x32x96xbf16>
    %63 = vector.shape_cast %62 : vector<1x32x96xbf16> to vector<32x96xbf16>
    %cst_26 = arith.constant dense<0.000000e+00> : vector<2x96xf32>
    %64 = tpu.matmul %61, %63, %cst_26 {dimension_numbers = #tpu.dot_dimension_numbers<[1], [0], [0], [1], [0, 0, 1, 1], [], []>} : vector<2x32xbf16>, vector<32x96xbf16>, vector<2x96xf32> -> vector<2x96xf32>
    %65 = vector.extract_strided_slice %60 {offsets = [0, 0], sizes = [2, 32], strides = [1, 1]} : vector<2x192xbf16> to vector<2x32xbf16>
    %66 = arith.extf %65 : vector<2x32xbf16> to vector<2x32xf32>
    %67 = vector.extract_strided_slice %60 {offsets = [0, 32], sizes = [2, 32], strides = [1, 1]} : vector<2x192xbf16> to vector<2x32xbf16>
    %68 = arith.extf %67 : vector<2x32xbf16> to vector<2x32xf32>
    %69 = vector.extract_strided_slice %60 {offsets = [0, 64], sizes = [2, 32], strides = [1, 1]} : vector<2x192xbf16> to vector<2x32xbf16>
    %70 = arith.extf %69 : vector<2x32xbf16> to vector<2x32xf32>
    %71 = vector.extract_strided_slice %64 {offsets = [0, 0], sizes = [2, 32], strides = [1, 1]} : vector<2x96xf32> to vector<2x32xf32>
    %72 = arith.addf %66, %71 : vector<2x32xf32>
    %73 = arith.negf %72 : vector<2x32xf32>
    %74 = math.exp %73 : vector<2x32xf32>
    %cst_27 = arith.constant 1.000000e+00 : f32
    %75 = vector.broadcast %cst_27 : f32 to vector<2x32xf32>
    %76 = arith.addf %75, %74 : vector<2x32xf32>
    %77 = arith.divf %75, %76 : vector<2x32xf32>
    %78 = vector.extract_strided_slice %64 {offsets = [0, 32], sizes = [2, 32], strides = [1, 1]} : vector<2x96xf32> to vector<2x32xf32>
    %79 = arith.addf %68, %78 : vector<2x32xf32>
    %80 = arith.negf %79 : vector<2x32xf32>
    %81 = math.exp %80 : vector<2x32xf32>
    %cst_28 = arith.constant 1.000000e+00 : f32
    %82 = vector.broadcast %cst_28 : f32 to vector<2x32xf32>
    %83 = arith.addf %82, %81 : vector<2x32xf32>
    %84 = arith.divf %82, %83 : vector<2x32xf32>
    %85 = vector.extract_strided_slice %64 {offsets = [0, 64], sizes = [2, 32], strides = [1, 1]} : vector<2x96xf32> to vector<2x32xf32>
    %c0_29 = arith.constant 0 : index
    %c0_30 = arith.constant 0 : index
    %c0_31 = arith.constant 0 : index
    %86 = vector.load %arg5[%c0_29, %c0_30, %c0_31] : memref<2x1x32xf32, #tpu.memory_space<vmem>>, vector<1x1x32xf32>
    %87 = vector.shape_cast %86 : vector<1x1x32xf32> to vector<1x32xf32>
    %88 = vector.broadcast %87 : vector<1x32xf32> to vector<2x32xf32>
    %89 = arith.addf %85, %88 : vector<2x32xf32>
    %90 = arith.mulf %77, %89 : vector<2x32xf32>
    %91 = arith.addf %70, %90 : vector<2x32xf32>
    %92 = math.tanh %91 : vector<2x32xf32>
    %cst_32 = arith.constant 1.000000e+00 : f32
    %93 = vector.broadcast %cst_32 : f32 to vector<2x32xf32>
    %94 = arith.subf %93, %84 : vector<2x32xf32>
    %95 = arith.mulf %94, %92 : vector<2x32xf32>
    %96 = arith.mulf %84, %50 : vector<2x32xf32>
    %97 = arith.addf %95, %96 : vector<2x32xf32>
    %c1_i32 = arith.constant 1 : i32
    %98 = arith.addi %4, %c1_i32 : i32
    %99 = vector.broadcast %98 : i32 to vector<2x1xi32>
    %100 = arith.cmpi slt, %99, %3 : vector<2x1xi32>
    %101 = vector.shape_cast %100 : vector<2x1xi1> to vector<2x1xi1>
    %102 = vector.broadcast %101 : vector<2x1xi1> to vector<2x32xi1>
    %103 = arith.select %102, %97, %50 : vector<2x32xi1>, vector<2x32xf32>
    %cst_33 = arith.constant 0.000000e+00 : f32
    %104 = vector.shape_cast %100 : vector<2x1xi1> to vector<2x1xi1>
    %105 = vector.broadcast %104 : vector<2x1xi1> to vector<2x32xi1>
    %106 = vector.broadcast %cst_33 : f32 to vector<2x32xf32>
    %107 = arith.select %105, %97, %106 : vector<2x32xi1>, vector<2x32xf32>
    %108 = arith.truncf %107 : vector<2x32xf32> to vector<2x32xbf16>
    %c1_34 = arith.constant 1 : index
    %c0_35 = arith.constant 0 : index
    %c0_36 = arith.constant 0 : index
    %109 = vector.load %arg6[%c1_34, %c0_35, %c0_36] : memref<8x2x32xbf16, #tpu.memory_space<vmem>>, vector<1x2x32xbf16>
    %110 = vector.shape_cast %109 : vector<1x2x32xbf16> to vector<2x32xbf16>
    %111 = vector.shape_cast %108 : vector<2x32xbf16> to vector<1x2x32xbf16>
    tpu.vector_store %arg6[%c1_34, %c0_35, %c0_36], %111 {strides = array<i32>} : memref<8x2x32xbf16, #tpu.memory_space<vmem>>, vector<1x2x32xbf16>,
    %c2 = arith.constant 2 : index
    %c0_37 = arith.constant 0 : index
    %c0_38 = arith.constant 0 : index
    %112 = vector.load %arg1[%c2, %c0_37, %c0_38] : memref<8x2x192xbf16, #tpu.memory_space<vmem>>, vector<1x2x192xbf16>
    %113 = vector.shape_cast %112 : vector<1x2x192xbf16> to vector<2x192xbf16>
    %114 = arith.truncf %103 : vector<2x32xf32> to vector<2x32xbf16>
    %c0_39 = arith.constant 0 : index
    %c0_40 = arith.constant 0 : index
    %c0_41 = arith.constant 0 : index
    %115 = vector.load %arg4[%c0_39, %c0_40, %c0_41] : memref<2x32x96xbf16, #tpu.memory_space<vmem>>, vector<1x32x96xbf16>
    %116 = vector.shape_cast %115 : vector<1x32x96xbf16> to vector<32x96xbf16>
    %cst_42 = arith.constant dense<0.000000e+00> : vector<2x96xf32>
    %117 = tpu.matmul %114, %116, %cst_42 {dimension_numbers = #tpu.dot_dimension_numbers<[1], [0], [0], [1], [0, 0, 1, 1], [], []>} : vector<2x32xbf16>, vector<32x96xbf16>, vector<2x96xf32> -> vector<2x96xf32>
    %118 = vector.extract_strided_slice %113 {offsets = [0, 0], sizes = [2, 32], strides = [1, 1]} : vector<2x192xbf16> to vector<2x32xbf16>
    %119 = arith.extf %118 : vector<2x32xbf16> to vector<2x32xf32>
    %120 = vector.extract_strided_slice %113 {offsets = [0, 32], sizes = [2, 32], strides = [1, 1]} : vector<2x192xbf16> to vector<2x32xbf16>
    %121 = arith.extf %120 : vector<2x32xbf16> to vector<2x32xf32>
    %122 = vector.extract_strided_slice %113 {offsets = [0, 64], sizes = [2, 32], strides = [1, 1]} : vector<2x192xbf16> to vector<2x32xbf16>
    %123 = arith.extf %122 : vector<2x32xbf16> to vector<2x32xf32>
    %124 = vector.extract_strided_slice %117 {offsets = [0, 0], sizes = [2, 32], strides = [1, 1]} : vector<2x96xf32> to vector<2x32xf32>
    %125 = arith.addf %119, %124 : vector<2x32xf32>
    %126 = arith.negf %125 : vector<2x32xf32>
    %127 = math.exp %126 : vector<2x32xf32>
    %cst_43 = arith.constant 1.000000e+00 : f32
    %128 = vector.broadcast %cst_43 : f32 to vector<2x32xf32>
    %129 = arith.addf %128, %127 : vector<2x32xf32>
    %130 = arith.divf %128, %129 : vector<2x32xf32>
    %131 = vector.extract_strided_slice %117 {offsets = [0, 32], sizes = [2, 32], strides = [1, 1]} : vector<2x96xf32> to vector<2x32xf32>
    %132 = arith.addf %121, %131 : vector<2x32xf32>
    %133 = arith.negf %132 : vector<2x32xf32>
    %134 = math.exp %133 : vector<2x32xf32>
    %cst_44 = arith.constant 1.000000e+00 : f32
    %135 = vector.broadcast %cst_44 : f32 to vector<2x32xf32>
    %136 = arith.addf %135, %134 : vector<2x32xf32>
    %137 = arith.divf %135, %136 : vector<2x32xf32>
    %138 = vector.extract_strided_slice %117 {offsets = [0, 64], sizes = [2, 32], strides = [1, 1]} : vector<2x96xf32> to vector<2x32xf32>
    %c0_45 = arith.constant 0 : index
    %c0_46 = arith.constant 0 : index
    %c0_47 = arith.constant 0 : index
    %139 = vector.load %arg5[%c0_45, %c0_46, %c0_47] : memref<2x1x32xf32, #tpu.memory_space<vmem>>, vector<1x1x32xf32>
    %140 = vector.shape_cast %139 : vector<1x1x32xf32> to vector<1x32xf32>
    %141 = vector.broadcast %140 : vector<1x32xf32> to vector<2x32xf32>
    %142 = arith.addf %138, %141 : vector<2x32xf32>
    %143 = arith.mulf %130, %142 : vector<2x32xf32>
    %144 = arith.addf %123, %143 : vector<2x32xf32>
    %145 = math.tanh %144 : vector<2x32xf32>
    %cst_48 = arith.constant 1.000000e+00 : f32
    %146 = vector.broadcast %cst_48 : f32 to vector<2x32xf32>
    %147 = arith.subf %146, %137 : vector<2x32xf32>
    %148 = arith.mulf %147, %145 : vector<2x32xf32>
    %149 = arith.mulf %137, %103 : vector<2x32xf32>
    %150 = arith.addf %148, %149 : vector<2x32xf32>
    %c2_i32 = arith.constant 2 : i32
    %151 = arith.addi %4, %c2_i32 : i32
    %152 = vector.broadcast %151 : i32 to vector<2x1xi32>
    %153 = arith.cmpi slt, %152, %3 : vector<2x1xi32>
    %154 = vector.shape_cast %153 : vector<2x1xi1> to vector<2x1xi1>
    %155 = vector.broadcast %154 : vector<2x1xi1> to vector<2x32xi1>
    %156 = arith.select %155, %150, %103 : vector<2x32xi1>, vector<2x32xf32>
    %cst_49 = arith.constant 0.000000e+00 : f32
    %157 = vector.shape_cast %153 : vector<2x1xi1> to vector<2x1xi1>
    %158 = vector.broadcast %157 : vector<2x1xi1> to vector<2x32xi1>
    %159 = vector.broadcast %cst_49 : f32 to vector<2x32xf32>
    %160 = arith.select %158, %150, %159 : vector<2x32xi1>, vector<2x32xf32>
    %161 = arith.truncf %160 : vector<2x32xf32> to vector<2x32xbf16>
    %c2_50 = arith.constant 2 : index
    %c0_51 = arith.constant 0 : index
    %c0_52 = arith.constant 0 : index
    %162 = vector.load %arg6[%c2_50, %c0_51, %c0_52] : memref<8x2x32xbf16, #tpu.memory_space<vmem>>, vector<1x2x32xbf16>
    %163 = vector.shape_cast %162 : vector<1x2x32xbf16> to vector<2x32xbf16>
    %164 = vector.shape_cast %161 : vector<2x32xbf16> to vector<1x2x32xbf16>
    tpu.vector_store %arg6[%c2_50, %c0_51, %c0_52], %164 {strides = array<i32>} : memref<8x2x32xbf16, #tpu.memory_space<vmem>>, vector<1x2x32xbf16>,
    %c3 = arith.constant 3 : index
    %c0_53 = arith.constant 0 : index
    %c0_54 = arith.constant 0 : index
    %165 = vector.load %arg1[%c3, %c0_53, %c0_54] : memref<8x2x192xbf16, #tpu.memory_space<vmem>>, vector<1x2x192xbf16>
    %166 = vector.shape_cast %165 : vector<1x2x192xbf16> to vector<2x192xbf16>
    %167 = arith.truncf %156 : vector<2x32xf32> to vector<2x32xbf16>
    %c0_55 = arith.constant 0 : index
    %c0_56 = arith.constant 0 : index
    %c0_57 = arith.constant 0 : index
    %168 = vector.load %arg4[%c0_55, %c0_56, %c0_57] : memref<2x32x96xbf16, #tpu.memory_space<vmem>>, vector<1x32x96xbf16>
    %169 = vector.shape_cast %168 : vector<1x32x96xbf16> to vector<32x96xbf16>
    %cst_58 = arith.constant dense<0.000000e+00> : vector<2x96xf32>
    %170 = tpu.matmul %167, %169, %cst_58 {dimension_numbers = #tpu.dot_dimension_numbers<[1], [0], [0], [1], [0, 0, 1, 1], [], []>} : vector<2x32xbf16>, vector<32x96xbf16>, vector<2x96xf32> -> vector<2x96xf32>
    %171 = vector.extract_strided_slice %166 {offsets = [0, 0], sizes = [2, 32], strides = [1, 1]} : vector<2x192xbf16> to vector<2x32xbf16>
    %172 = arith.extf %171 : vector<2x32xbf16> to vector<2x32xf32>
    %173 = vector.extract_strided_slice %166 {offsets = [0, 32], sizes = [2, 32], strides = [1, 1]} : vector<2x192xbf16> to vector<2x32xbf16>
    %174 = arith.extf %173 : vector<2x32xbf16> to vector<2x32xf32>
    %175 = vector.extract_strided_slice %166 {offsets = [0, 64], sizes = [2, 32], strides = [1, 1]} : vector<2x192xbf16> to vector<2x32xbf16>
    %176 = arith.extf %175 : vector<2x32xbf16> to vector<2x32xf32>
    %177 = vector.extract_strided_slice %170 {offsets = [0, 0], sizes = [2, 32], strides = [1, 1]} : vector<2x96xf32> to vector<2x32xf32>
    %178 = arith.addf %172, %177 : vector<2x32xf32>
    %179 = arith.negf %178 : vector<2x32xf32>
    %180 = math.exp %179 : vector<2x32xf32>
    %cst_59 = arith.constant 1.000000e+00 : f32
    %181 = vector.broadcast %cst_59 : f32 to vector<2x32xf32>
    %182 = arith.addf %181, %180 : vector<2x32xf32>
    %183 = arith.divf %181, %182 : vector<2x32xf32>
    %184 = vector.extract_strided_slice %170 {offsets = [0, 32], sizes = [2, 32], strides = [1, 1]} : vector<2x96xf32> to vector<2x32xf32>
    %185 = arith.addf %174, %184 : vector<2x32xf32>
    %186 = arith.negf %185 : vector<2x32xf32>
    %187 = math.exp %186 : vector<2x32xf32>
    %cst_60 = arith.constant 1.000000e+00 : f32
    %188 = vector.broadcast %cst_60 : f32 to vector<2x32xf32>
    %189 = arith.addf %188, %187 : vector<2x32xf32>
    %190 = arith.divf %188, %189 : vector<2x32xf32>
    %191 = vector.extract_strided_slice %170 {offsets = [0, 64], sizes = [2, 32], strides = [1, 1]} : vector<2x96xf32> to vector<2x32xf32>
    %c0_61 = arith.constant 0 : index
    %c0_62 = arith.constant 0 : index
    %c0_63 = arith.constant 0 : index
    %192 = vector.load %arg5[%c0_61, %c0_62, %c0_63] : memref<2x1x32xf32, #tpu.memory_space<vmem>>, vector<1x1x32xf32>
    %193 = vector.shape_cast %192 : vector<1x1x32xf32> to vector<1x32xf32>
    %194 = vector.broadcast %193 : vector<1x32xf32> to vector<2x32xf32>
    %195 = arith.addf %191, %194 : vector<2x32xf32>
    %196 = arith.mulf %183, %195 : vector<2x32xf32>
    %197 = arith.addf %176, %196 : vector<2x32xf32>
    %198 = math.tanh %197 : vector<2x32xf32>
    %cst_64 = arith.constant 1.000000e+00 : f32
    %199 = vector.broadcast %cst_64 : f32 to vector<2x32xf32>
    %200 = arith.subf %199, %190 : vector<2x32xf32>
    %201 = arith.mulf %200, %198 : vector<2x32xf32>
    %202 = arith.mulf %190, %156 : vector<2x32xf32>
    %203 = arith.addf %201, %202 : vector<2x32xf32>
    %c3_i32 = arith.constant 3 : i32
    %204 = arith.addi %4, %c3_i32 : i32
    %205 = vector.broadcast %204 : i32 to vector<2x1xi32>
    %206 = arith.cmpi slt, %205, %3 : vector<2x1xi32>
    %207 = vector.shape_cast %206 : vector<2x1xi1> to vector<2x1xi1>
    %208 = vector.broadcast %207 : vector<2x1xi1> to vector<2x32xi1>
    %209 = arith.select %208, %203, %156 : vector<2x32xi1>, vector<2x32xf32>
    %cst_65 = arith.constant 0.000000e+00 : f32
    %210 = vector.shape_cast %206 : vector<2x1xi1> to vector<2x1xi1>
    %211 = vector.broadcast %210 : vector<2x1xi1> to vector<2x32xi1>
    %212 = vector.broadcast %cst_65 : f32 to vector<2x32xf32>
    %213 = arith.select %211, %203, %212 : vector<2x32xi1>, vector<2x32xf32>
    %214 = arith.truncf %213 : vector<2x32xf32> to vector<2x32xbf16>
    %c3_66 = arith.constant 3 : index
    %c0_67 = arith.constant 0 : index
    %c0_68 = arith.constant 0 : index
    %215 = vector.load %arg6[%c3_66, %c0_67, %c0_68] : memref<8x2x32xbf16, #tpu.memory_space<vmem>>, vector<1x2x32xbf16>
    %216 = vector.shape_cast %215 : vector<1x2x32xbf16> to vector<2x32xbf16>
    %217 = vector.shape_cast %214 : vector<2x32xbf16> to vector<1x2x32xbf16>
    tpu.vector_store %arg6[%c3_66, %c0_67, %c0_68], %217 {strides = array<i32>} : memref<8x2x32xbf16, #tpu.memory_space<vmem>>, vector<1x2x32xbf16>,
    %c4 = arith.constant 4 : index
    %c0_69 = arith.constant 0 : index
    %c0_70 = arith.constant 0 : index
    %218 = vector.load %arg1[%c4, %c0_69, %c0_70] : memref<8x2x192xbf16, #tpu.memory_space<vmem>>, vector<1x2x192xbf16>
    %219 = vector.shape_cast %218 : vector<1x2x192xbf16> to vector<2x192xbf16>
    %220 = arith.truncf %209 : vector<2x32xf32> to vector<2x32xbf16>
    %c0_71 = arith.constant 0 : index
    %c0_72 = arith.constant 0 : index
    %c0_73 = arith.constant 0 : index
    %221 = vector.load %arg4[%c0_71, %c0_72, %c0_73] : memref<2x32x96xbf16, #tpu.memory_space<vmem>>, vector<1x32x96xbf16>
    %222 = vector.shape_cast %221 : vector<1x32x96xbf16> to vector<32x96xbf16>
    %cst_74 = arith.constant dense<0.000000e+00> : vector<2x96xf32>
    %223 = tpu.matmul %220, %222, %cst_74 {dimension_numbers = #tpu.dot_dimension_numbers<[1], [0], [0], [1], [0, 0, 1, 1], [], []>} : vector<2x32xbf16>, vector<32x96xbf16>, vector<2x96xf32> -> vector<2x96xf32>
    %224 = vector.extract_strided_slice %219 {offsets = [0, 0], sizes = [2, 32], strides = [1, 1]} : vector<2x192xbf16> to vector<2x32xbf16>
    %225 = arith.extf %224 : vector<2x32xbf16> to vector<2x32xf32>
    %226 = vector.extract_strided_slice %219 {offsets = [0, 32], sizes = [2, 32], strides = [1, 1]} : vector<2x192xbf16> to vector<2x32xbf16>
    %227 = arith.extf %226 : vector<2x32xbf16> to vector<2x32xf32>
    %228 = vector.extract_strided_slice %219 {offsets = [0, 64], sizes = [2, 32], strides = [1, 1]} : vector<2x192xbf16> to vector<2x32xbf16>
    %229 = arith.extf %228 : vector<2x32xbf16> to vector<2x32xf32>
    %230 = vector.extract_strided_slice %223 {offsets = [0, 0], sizes = [2, 32], strides = [1, 1]} : vector<2x96xf32> to vector<2x32xf32>
    %231 = arith.addf %225, %230 : vector<2x32xf32>
    %232 = arith.negf %231 : vector<2x32xf32>
    %233 = math.exp %232 : vector<2x32xf32>
    %cst_75 = arith.constant 1.000000e+00 : f32
    %234 = vector.broadcast %cst_75 : f32 to vector<2x32xf32>
    %235 = arith.addf %234, %233 : vector<2x32xf32>
    %236 = arith.divf %234, %235 : vector<2x32xf32>
    %237 = vector.extract_strided_slice %223 {offsets = [0, 32], sizes = [2, 32], strides = [1, 1]} : vector<2x96xf32> to vector<2x32xf32>
    %238 = arith.addf %227, %237 : vector<2x32xf32>
    %239 = arith.negf %238 : vector<2x32xf32>
    %240 = math.exp %239 : vector<2x32xf32>
    %cst_76 = arith.constant 1.000000e+00 : f32
    %241 = vector.broadcast %cst_76 : f32 to vector<2x32xf32>
    %242 = arith.addf %241, %240 : vector<2x32xf32>
    %243 = arith.divf %241, %242 : vector<2x32xf32>
    %244 = vector.extract_strided_slice %223 {offsets = [0, 64], sizes = [2, 32], strides = [1, 1]} : vector<2x96xf32> to vector<2x32xf32>
    %c0_77 = arith.constant 0 : index
    %c0_78 = arith.constant 0 : index
    %c0_79 = arith.constant 0 : index
    %245 = vector.load %arg5[%c0_77, %c0_78, %c0_79] : memref<2x1x32xf32, #tpu.memory_space<vmem>>, vector<1x1x32xf32>
    %246 = vector.shape_cast %245 : vector<1x1x32xf32> to vector<1x32xf32>
    %247 = vector.broadcast %246 : vector<1x32xf32> to vector<2x32xf32>
    %248 = arith.addf %244, %247 : vector<2x32xf32>
    %249 = arith.mulf %236, %248 : vector<2x32xf32>
    %250 = arith.addf %229, %249 : vector<2x32xf32>
    %251 = math.tanh %250 : vector<2x32xf32>
    %cst_80 = arith.constant 1.000000e+00 : f32
    %252 = vector.broadcast %cst_80 : f32 to vector<2x32xf32>
    %253 = arith.subf %252, %243 : vector<2x32xf32>
    %254 = arith.mulf %253, %251 : vector<2x32xf32>
    %255 = arith.mulf %243, %209 : vector<2x32xf32>
    %256 = arith.addf %254, %255 : vector<2x32xf32>
    %c4_i32 = arith.constant 4 : i32
    %257 = arith.addi %4, %c4_i32 : i32
    %258 = vector.broadcast %257 : i32 to vector<2x1xi32>
    %259 = arith.cmpi slt, %258, %3 : vector<2x1xi32>
    %260 = vector.shape_cast %259 : vector<2x1xi1> to vector<2x1xi1>
    %261 = vector.broadcast %260 : vector<2x1xi1> to vector<2x32xi1>
    %262 = arith.select %261, %256, %209 : vector<2x32xi1>, vector<2x32xf32>
    %cst_81 = arith.constant 0.000000e+00 : f32
    %263 = vector.shape_cast %259 : vector<2x1xi1> to vector<2x1xi1>
    %264 = vector.broadcast %263 : vector<2x1xi1> to vector<2x32xi1>
    %265 = vector.broadcast %cst_81 : f32 to vector<2x32xf32>
    %266 = arith.select %264, %256, %265 : vector<2x32xi1>, vector<2x32xf32>
    %267 = arith.truncf %266 : vector<2x32xf32> to vector<2x32xbf16>
    %c4_82 = arith.constant 4 : index
    %c0_83 = arith.constant 0 : index
    %c0_84 = arith.constant 0 : index
    %268 = vector.load %arg6[%c4_82, %c0_83, %c0_84] : memref<8x2x32xbf16, #tpu.memory_space<vmem>>, vector<1x2x32xbf16>
    %269 = vector.shape_cast %268 : vector<1x2x32xbf16> to vector<2x32xbf16>
    %270 = vector.shape_cast %267 : vector<2x32xbf16> to vector<1x2x32xbf16>
    tpu.vector_store %arg6[%c4_82, %c0_83, %c0_84], %270 {strides = array<i32>} : memref<8x2x32xbf16, #tpu.memory_space<vmem>>, vector<1x2x32xbf16>,
    %c5 = arith.constant 5 : index
    %c0_85 = arith.constant 0 : index
    %c0_86 = arith.constant 0 : index
    %271 = vector.load %arg1[%c5, %c0_85, %c0_86] : memref<8x2x192xbf16, #tpu.memory_space<vmem>>, vector<1x2x192xbf16>
    %272 = vector.shape_cast %271 : vector<1x2x192xbf16> to vector<2x192xbf16>
    %273 = arith.truncf %262 : vector<2x32xf32> to vector<2x32xbf16>
    %c0_87 = arith.constant 0 : index
    %c0_88 = arith.constant 0 : index
    %c0_89 = arith.constant 0 : index
    %274 = vector.load %arg4[%c0_87, %c0_88, %c0_89] : memref<2x32x96xbf16, #tpu.memory_space<vmem>>, vector<1x32x96xbf16>
    %275 = vector.shape_cast %274 : vector<1x32x96xbf16> to vector<32x96xbf16>
    %cst_90 = arith.constant dense<0.000000e+00> : vector<2x96xf32>
    %276 = tpu.matmul %273, %275, %cst_90 {dimension_numbers = #tpu.dot_dimension_numbers<[1], [0], [0], [1], [0, 0, 1, 1], [], []>} : vector<2x32xbf16>, vector<32x96xbf16>, vector<2x96xf32> -> vector<2x96xf32>
    %277 = vector.extract_strided_slice %272 {offsets = [0, 0], sizes = [2, 32], strides = [1, 1]} : vector<2x192xbf16> to vector<2x32xbf16>
    %278 = arith.extf %277 : vector<2x32xbf16> to vector<2x32xf32>
    %279 = vector.extract_strided_slice %272 {offsets = [0, 32], sizes = [2, 32], strides = [1, 1]} : vector<2x192xbf16> to vector<2x32xbf16>
    %280 = arith.extf %279 : vector<2x32xbf16> to vector<2x32xf32>
    %281 = vector.extract_strided_slice %272 {offsets = [0, 64], sizes = [2, 32], strides = [1, 1]} : vector<2x192xbf16> to vector<2x32xbf16>
    %282 = arith.extf %281 : vector<2x32xbf16> to vector<2x32xf32>
    %283 = vector.extract_strided_slice %276 {offsets = [0, 0], sizes = [2, 32], strides = [1, 1]} : vector<2x96xf32> to vector<2x32xf32>
    %284 = arith.addf %278, %283 : vector<2x32xf32>
    %285 = arith.negf %284 : vector<2x32xf32>
    %286 = math.exp %285 : vector<2x32xf32>
    %cst_91 = arith.constant 1.000000e+00 : f32
    %287 = vector.broadcast %cst_91 : f32 to vector<2x32xf32>
    %288 = arith.addf %287, %286 : vector<2x32xf32>
    %289 = arith.divf %287, %288 : vector<2x32xf32>
    %290 = vector.extract_strided_slice %276 {offsets = [0, 32], sizes = [2, 32], strides = [1, 1]} : vector<2x96xf32> to vector<2x32xf32>
    %291 = arith.addf %280, %290 : vector<2x32xf32>
    %292 = arith.negf %291 : vector<2x32xf32>
    %293 = math.exp %292 : vector<2x32xf32>
    %cst_92 = arith.constant 1.000000e+00 : f32
    %294 = vector.broadcast %cst_92 : f32 to vector<2x32xf32>
    %295 = arith.addf %294, %293 : vector<2x32xf32>
    %296 = arith.divf %294, %295 : vector<2x32xf32>
    %297 = vector.extract_strided_slice %276 {offsets = [0, 64], sizes = [2, 32], strides = [1, 1]} : vector<2x96xf32> to vector<2x32xf32>
    %c0_93 = arith.constant 0 : index
    %c0_94 = arith.constant 0 : index
    %c0_95 = arith.constant 0 : index
    %298 = vector.load %arg5[%c0_93, %c0_94, %c0_95] : memref<2x1x32xf32, #tpu.memory_space<vmem>>, vector<1x1x32xf32>
    %299 = vector.shape_cast %298 : vector<1x1x32xf32> to vector<1x32xf32>
    %300 = vector.broadcast %299 : vector<1x32xf32> to vector<2x32xf32>
    %301 = arith.addf %297, %300 : vector<2x32xf32>
    %302 = arith.mulf %289, %301 : vector<2x32xf32>
    %303 = arith.addf %282, %302 : vector<2x32xf32>
    %304 = math.tanh %303 : vector<2x32xf32>
    %cst_96 = arith.constant 1.000000e+00 : f32
    %305 = vector.broadcast %cst_96 : f32 to vector<2x32xf32>
    %306 = arith.subf %305, %296 : vector<2x32xf32>
    %307 = arith.mulf %306, %304 : vector<2x32xf32>
    %308 = arith.mulf %296, %262 : vector<2x32xf32>
    %309 = arith.addf %307, %308 : vector<2x32xf32>
    %c5_i32 = arith.constant 5 : i32
    %310 = arith.addi %4, %c5_i32 : i32
    %311 = vector.broadcast %310 : i32 to vector<2x1xi32>
    %312 = arith.cmpi slt, %311, %3 : vector<2x1xi32>
    %313 = vector.shape_cast %312 : vector<2x1xi1> to vector<2x1xi1>
    %314 = vector.broadcast %313 : vector<2x1xi1> to vector<2x32xi1>
    %315 = arith.select %314, %309, %262 : vector<2x32xi1>, vector<2x32xf32>
    %cst_97 = arith.constant 0.000000e+00 : f32
    %316 = vector.shape_cast %312 : vector<2x1xi1> to vector<2x1xi1>
    %317 = vector.broadcast %316 : vector<2x1xi1> to vector<2x32xi1>
    %318 = vector.broadcast %cst_97 : f32 to vector<2x32xf32>
    %319 = arith.select %317, %309, %318 : vector<2x32xi1>, vector<2x32xf32>
    %320 = arith.truncf %319 : vector<2x32xf32> to vector<2x32xbf16>
    %c5_98 = arith.constant 5 : index
    %c0_99 = arith.constant 0 : index
    %c0_100 = arith.constant 0 : index
    %321 = vector.load %arg6[%c5_98, %c0_99, %c0_100] : memref<8x2x32xbf16, #tpu.memory_space<vmem>>, vector<1x2x32xbf16>
    %322 = vector.shape_cast %321 : vector<1x2x32xbf16> to vector<2x32xbf16>
    %323 = vector.shape_cast %320 : vector<2x32xbf16> to vector<1x2x32xbf16>
    tpu.vector_store %arg6[%c5_98, %c0_99, %c0_100], %323 {strides = array<i32>} : memref<8x2x32xbf16, #tpu.memory_space<vmem>>, vector<1x2x32xbf16>,
    %c6 = arith.constant 6 : index
    %c0_101 = arith.constant 0 : index
    %c0_102 = arith.constant 0 : index
    %324 = vector.load %arg1[%c6, %c0_101, %c0_102] : memref<8x2x192xbf16, #tpu.memory_space<vmem>>, vector<1x2x192xbf16>
    %325 = vector.shape_cast %324 : vector<1x2x192xbf16> to vector<2x192xbf16>
    %326 = arith.truncf %315 : vector<2x32xf32> to vector<2x32xbf16>
    %c0_103 = arith.constant 0 : index
    %c0_104 = arith.constant 0 : index
    %c0_105 = arith.constant 0 : index
    %327 = vector.load %arg4[%c0_103, %c0_104, %c0_105] : memref<2x32x96xbf16, #tpu.memory_space<vmem>>, vector<1x32x96xbf16>
    %328 = vector.shape_cast %327 : vector<1x32x96xbf16> to vector<32x96xbf16>
    %cst_106 = arith.constant dense<0.000000e+00> : vector<2x96xf32>
    %329 = tpu.matmul %326, %328, %cst_106 {dimension_numbers = #tpu.dot_dimension_numbers<[1], [0], [0], [1], [0, 0, 1, 1], [], []>} : vector<2x32xbf16>, vector<32x96xbf16>, vector<2x96xf32> -> vector<2x96xf32>
    %330 = vector.extract_strided_slice %325 {offsets = [0, 0], sizes = [2, 32], strides = [1, 1]} : vector<2x192xbf16> to vector<2x32xbf16>
    %331 = arith.extf %330 : vector<2x32xbf16> to vector<2x32xf32>
    %332 = vector.extract_strided_slice %325 {offsets = [0, 32], sizes = [2, 32], strides = [1, 1]} : vector<2x192xbf16> to vector<2x32xbf16>
    %333 = arith.extf %332 : vector<2x32xbf16> to vector<2x32xf32>
    %334 = vector.extract_strided_slice %325 {offsets = [0, 64], sizes = [2, 32], strides = [1, 1]} : vector<2x192xbf16> to vector<2x32xbf16>
    %335 = arith.extf %334 : vector<2x32xbf16> to vector<2x32xf32>
    %336 = vector.extract_strided_slice %329 {offsets = [0, 0], sizes = [2, 32], strides = [1, 1]} : vector<2x96xf32> to vector<2x32xf32>
    %337 = arith.addf %331, %336 : vector<2x32xf32>
    %338 = arith.negf %337 : vector<2x32xf32>
    %339 = math.exp %338 : vector<2x32xf32>
    %cst_107 = arith.constant 1.000000e+00 : f32
    %340 = vector.broadcast %cst_107 : f32 to vector<2x32xf32>
    %341 = arith.addf %340, %339 : vector<2x32xf32>
    %342 = arith.divf %340, %341 : vector<2x32xf32>
    %343 = vector.extract_strided_slice %329 {offsets = [0, 32], sizes = [2, 32], strides = [1, 1]} : vector<2x96xf32> to vector<2x32xf32>
    %344 = arith.addf %333, %343 : vector<2x32xf32>
    %345 = arith.negf %344 : vector<2x32xf32>
    %346 = math.exp %345 : vector<2x32xf32>
    %cst_108 = arith.constant 1.000000e+00 : f32
    %347 = vector.broadcast %cst_108 : f32 to vector<2x32xf32>
    %348 = arith.addf %347, %346 : vector<2x32xf32>
    %349 = arith.divf %347, %348 : vector<2x32xf32>
    %350 = vector.extract_strided_slice %329 {offsets = [0, 64], sizes = [2, 32], strides = [1, 1]} : vector<2x96xf32> to vector<2x32xf32>
    %c0_109 = arith.constant 0 : index
    %c0_110 = arith.constant 0 : index
    %c0_111 = arith.constant 0 : index
    %351 = vector.load %arg5[%c0_109, %c0_110, %c0_111] : memref<2x1x32xf32, #tpu.memory_space<vmem>>, vector<1x1x32xf32>
    %352 = vector.shape_cast %351 : vector<1x1x32xf32> to vector<1x32xf32>
    %353 = vector.broadcast %352 : vector<1x32xf32> to vector<2x32xf32>
    %354 = arith.addf %350, %353 : vector<2x32xf32>
    %355 = arith.mulf %342, %354 : vector<2x32xf32>
    %356 = arith.addf %335, %355 : vector<2x32xf32>
    %357 = math.tanh %356 : vector<2x32xf32>
    %cst_112 = arith.constant 1.000000e+00 : f32
    %358 = vector.broadcast %cst_112 : f32 to vector<2x32xf32>
    %359 = arith.subf %358, %349 : vector<2x32xf32>
    %360 = arith.mulf %359, %357 : vector<2x32xf32>
    %361 = arith.mulf %349, %315 : vector<2x32xf32>
    %362 = arith.addf %360, %361 : vector<2x32xf32>
    %c6_i32 = arith.constant 6 : i32
    %363 = arith.addi %4, %c6_i32 : i32
    %364 = vector.broadcast %363 : i32 to vector<2x1xi32>
    %365 = arith.cmpi slt, %364, %3 : vector<2x1xi32>
    %366 = vector.shape_cast %365 : vector<2x1xi1> to vector<2x1xi1>
    %367 = vector.broadcast %366 : vector<2x1xi1> to vector<2x32xi1>
    %368 = arith.select %367, %362, %315 : vector<2x32xi1>, vector<2x32xf32>
    %cst_113 = arith.constant 0.000000e+00 : f32
    %369 = vector.shape_cast %365 : vector<2x1xi1> to vector<2x1xi1>
    %370 = vector.broadcast %369 : vector<2x1xi1> to vector<2x32xi1>
    %371 = vector.broadcast %cst_113 : f32 to vector<2x32xf32>
    %372 = arith.select %370, %362, %371 : vector<2x32xi1>, vector<2x32xf32>
    %373 = arith.truncf %372 : vector<2x32xf32> to vector<2x32xbf16>
    %c6_114 = arith.constant 6 : index
    %c0_115 = arith.constant 0 : index
    %c0_116 = arith.constant 0 : index
    %374 = vector.load %arg6[%c6_114, %c0_115, %c0_116] : memref<8x2x32xbf16, #tpu.memory_space<vmem>>, vector<1x2x32xbf16>
    %375 = vector.shape_cast %374 : vector<1x2x32xbf16> to vector<2x32xbf16>
    %376 = vector.shape_cast %373 : vector<2x32xbf16> to vector<1x2x32xbf16>
    tpu.vector_store %arg6[%c6_114, %c0_115, %c0_116], %376 {strides = array<i32>} : memref<8x2x32xbf16, #tpu.memory_space<vmem>>, vector<1x2x32xbf16>,
    %c7 = arith.constant 7 : index
    %c0_117 = arith.constant 0 : index
    %c0_118 = arith.constant 0 : index
    %377 = vector.load %arg1[%c7, %c0_117, %c0_118] : memref<8x2x192xbf16, #tpu.memory_space<vmem>>, vector<1x2x192xbf16>
    %378 = vector.shape_cast %377 : vector<1x2x192xbf16> to vector<2x192xbf16>
    %379 = arith.truncf %368 : vector<2x32xf32> to vector<2x32xbf16>
    %c0_119 = arith.constant 0 : index
    %c0_120 = arith.constant 0 : index
    %c0_121 = arith.constant 0 : index
    %380 = vector.load %arg4[%c0_119, %c0_120, %c0_121] : memref<2x32x96xbf16, #tpu.memory_space<vmem>>, vector<1x32x96xbf16>
    %381 = vector.shape_cast %380 : vector<1x32x96xbf16> to vector<32x96xbf16>
    %cst_122 = arith.constant dense<0.000000e+00> : vector<2x96xf32>
    %382 = tpu.matmul %379, %381, %cst_122 {dimension_numbers = #tpu.dot_dimension_numbers<[1], [0], [0], [1], [0, 0, 1, 1], [], []>} : vector<2x32xbf16>, vector<32x96xbf16>, vector<2x96xf32> -> vector<2x96xf32>
    %383 = vector.extract_strided_slice %378 {offsets = [0, 0], sizes = [2, 32], strides = [1, 1]} : vector<2x192xbf16> to vector<2x32xbf16>
    %384 = arith.extf %383 : vector<2x32xbf16> to vector<2x32xf32>
    %385 = vector.extract_strided_slice %378 {offsets = [0, 32], sizes = [2, 32], strides = [1, 1]} : vector<2x192xbf16> to vector<2x32xbf16>
    %386 = arith.extf %385 : vector<2x32xbf16> to vector<2x32xf32>
    %387 = vector.extract_strided_slice %378 {offsets = [0, 64], sizes = [2, 32], strides = [1, 1]} : vector<2x192xbf16> to vector<2x32xbf16>
    %388 = arith.extf %387 : vector<2x32xbf16> to vector<2x32xf32>
    %389 = vector.extract_strided_slice %382 {offsets = [0, 0], sizes = [2, 32], strides = [1, 1]} : vector<2x96xf32> to vector<2x32xf32>
    %390 = arith.addf %384, %389 : vector<2x32xf32>
    %391 = arith.negf %390 : vector<2x32xf32>
    %392 = math.exp %391 : vector<2x32xf32>
    %cst_123 = arith.constant 1.000000e+00 : f32
    %393 = vector.broadcast %cst_123 : f32 to vector<2x32xf32>
    %394 = arith.addf %393, %392 : vector<2x32xf32>
    %395 = arith.divf %393, %394 : vector<2x32xf32>
    %396 = vector.extract_strided_slice %382 {offsets = [0, 32], sizes = [2, 32], strides = [1, 1]} : vector<2x96xf32> to vector<2x32xf32>
    %397 = arith.addf %386, %396 : vector<2x32xf32>
    %398 = arith.negf %397 : vector<2x32xf32>
    %399 = math.exp %398 : vector<2x32xf32>
    %cst_124 = arith.constant 1.000000e+00 : f32
    %400 = vector.broadcast %cst_124 : f32 to vector<2x32xf32>
    %401 = arith.addf %400, %399 : vector<2x32xf32>
    %402 = arith.divf %400, %401 : vector<2x32xf32>
    %403 = vector.extract_strided_slice %382 {offsets = [0, 64], sizes = [2, 32], strides = [1, 1]} : vector<2x96xf32> to vector<2x32xf32>
    %c0_125 = arith.constant 0 : index
    %c0_126 = arith.constant 0 : index
    %c0_127 = arith.constant 0 : index
    %404 = vector.load %arg5[%c0_125, %c0_126, %c0_127] : memref<2x1x32xf32, #tpu.memory_space<vmem>>, vector<1x1x32xf32>
    %405 = vector.shape_cast %404 : vector<1x1x32xf32> to vector<1x32xf32>
    %406 = vector.broadcast %405 : vector<1x32xf32> to vector<2x32xf32>
    %407 = arith.addf %403, %406 : vector<2x32xf32>
    %408 = arith.mulf %395, %407 : vector<2x32xf32>
    %409 = arith.addf %388, %408 : vector<2x32xf32>
    %410 = math.tanh %409 : vector<2x32xf32>
    %cst_128 = arith.constant 1.000000e+00 : f32
    %411 = vector.broadcast %cst_128 : f32 to vector<2x32xf32>
    %412 = arith.subf %411, %402 : vector<2x32xf32>
    %413 = arith.mulf %412, %410 : vector<2x32xf32>
    %414 = arith.mulf %402, %368 : vector<2x32xf32>
    %415 = arith.addf %413, %414 : vector<2x32xf32>
    %c7_i32 = arith.constant 7 : i32
    %416 = arith.addi %4, %c7_i32 : i32
    %417 = vector.broadcast %416 : i32 to vector<2x1xi32>
    %418 = arith.cmpi slt, %417, %3 : vector<2x1xi32>
    %419 = vector.shape_cast %418 : vector<2x1xi1> to vector<2x1xi1>
    %420 = vector.broadcast %419 : vector<2x1xi1> to vector<2x32xi1>
    %421 = arith.select %420, %415, %368 : vector<2x32xi1>, vector<2x32xf32>
    %cst_129 = arith.constant 0.000000e+00 : f32
    %422 = vector.shape_cast %418 : vector<2x1xi1> to vector<2x1xi1>
    %423 = vector.broadcast %422 : vector<2x1xi1> to vector<2x32xi1>
    %424 = vector.broadcast %cst_129 : f32 to vector<2x32xf32>
    %425 = arith.select %423, %415, %424 : vector<2x32xi1>, vector<2x32xf32>
    %426 = arith.truncf %425 : vector<2x32xf32> to vector<2x32xbf16>
    %c7_130 = arith.constant 7 : index
    %c0_131 = arith.constant 0 : index
    %c0_132 = arith.constant 0 : index
    %427 = vector.load %arg6[%c7_130, %c0_131, %c0_132] : memref<8x2x32xbf16, #tpu.memory_space<vmem>>, vector<1x2x32xbf16>
    %428 = vector.shape_cast %427 : vector<1x2x32xbf16> to vector<2x32xbf16>
    %429 = vector.shape_cast %426 : vector<2x32xbf16> to vector<1x2x32xbf16>
    tpu.vector_store %arg6[%c7_130, %c0_131, %c0_132], %429 {strides = array<i32>} : memref<8x2x32xbf16, #tpu.memory_space<vmem>>, vector<1x2x32xbf16>,
    %c0_133 = arith.constant 0 : index
    %c0_134 = arith.constant 0 : index
    %430 = vector.load %arg8[%c0_133, %c0_134] : memref<2x32xf32, #tpu.memory_space<vmem>>, vector<2x32xf32>
    tpu.vector_store %arg8[%c0_133, %c0_134], %421 {strides = array<i32>} : memref<2x32xf32, #tpu.memory_space<vmem>>, vector<2x32xf32>,
    %c0_i32_135 = arith.constant 0 : i32
    %431 = arith.subi %c0_i32_135, %arg0 : i32
    %c8_i32_136 = arith.constant 8 : i32
    %432 = arith.muli %431, %c8_i32_136 : i32
    %c0_137 = arith.constant 0 : index
    %c0_138 = arith.constant 0 : index
    %433 = vector.load %arg9[%c0_137, %c0_138] : memref<2x32xf32, #tpu.memory_space<vmem>>, vector<2x32xf32>
    %c7_139 = arith.constant 7 : index
    %c0_140 = arith.constant 0 : index
    %c0_141 = arith.constant 0 : index
    %434 = vector.load %arg2[%c7_139, %c0_140, %c0_141] : memref<8x2x192xbf16, #tpu.memory_space<vmem>>, vector<1x2x192xbf16>
    %435 = vector.shape_cast %434 : vector<1x2x192xbf16> to vector<2x192xbf16>
    %436 = arith.truncf %433 : vector<2x32xf32> to vector<2x32xbf16>
    %c1_142 = arith.constant 1 : index
    %c0_143 = arith.constant 0 : index
    %c0_144 = arith.constant 0 : index
    %437 = vector.load %arg4[%c1_142, %c0_143, %c0_144] : memref<2x32x96xbf16, #tpu.memory_space<vmem>>, vector<1x32x96xbf16>
    %438 = vector.shape_cast %437 : vector<1x32x96xbf16> to vector<32x96xbf16>
    %cst_145 = arith.constant dense<0.000000e+00> : vector<2x96xf32>
    %439 = tpu.matmul %436, %438, %cst_145 {dimension_numbers = #tpu.dot_dimension_numbers<[1], [0], [0], [1], [0, 0, 1, 1], [], []>} : vector<2x32xbf16>, vector<32x96xbf16>, vector<2x96xf32> -> vector<2x96xf32>
    %440 = vector.extract_strided_slice %435 {offsets = [0, 96], sizes = [2, 32], strides = [1, 1]} : vector<2x192xbf16> to vector<2x32xbf16>
    %441 = arith.extf %440 : vector<2x32xbf16> to vector<2x32xf32>
    %442 = vector.extract_strided_slice %435 {offsets = [0, 128], sizes = [2, 32], strides = [1, 1]} : vector<2x192xbf16> to vector<2x32xbf16>
    %443 = arith.extf %442 : vector<2x32xbf16> to vector<2x32xf32>
    %444 = vector.extract_strided_slice %435 {offsets = [0, 160], sizes = [2, 32], strides = [1, 1]} : vector<2x192xbf16> to vector<2x32xbf16>
    %445 = arith.extf %444 : vector<2x32xbf16> to vector<2x32xf32>
    %446 = vector.extract_strided_slice %439 {offsets = [0, 0], sizes = [2, 32], strides = [1, 1]} : vector<2x96xf32> to vector<2x32xf32>
    %447 = arith.addf %441, %446 : vector<2x32xf32>
    %448 = arith.negf %447 : vector<2x32xf32>
    %449 = math.exp %448 : vector<2x32xf32>
    %cst_146 = arith.constant 1.000000e+00 : f32
    %450 = vector.broadcast %cst_146 : f32 to vector<2x32xf32>
    %451 = arith.addf %450, %449 : vector<2x32xf32>
    %452 = arith.divf %450, %451 : vector<2x32xf32>
    %453 = vector.extract_strided_slice %439 {offsets = [0, 32], sizes = [2, 32], strides = [1, 1]} : vector<2x96xf32> to vector<2x32xf32>
    %454 = arith.addf %443, %453 : vector<2x32xf32>
    %455 = arith.negf %454 : vector<2x32xf32>
    %456 = math.exp %455 : vector<2x32xf32>
    %cst_147 = arith.constant 1.000000e+00 : f32
    %457 = vector.broadcast %cst_147 : f32 to vector<2x32xf32>
    %458 = arith.addf %457, %456 : vector<2x32xf32>
    %459 = arith.divf %457, %458 : vector<2x32xf32>
    %460 = vector.extract_strided_slice %439 {offsets = [0, 64], sizes = [2, 32], strides = [1, 1]} : vector<2x96xf32> to vector<2x32xf32>
    %c1_148 = arith.constant 1 : index
    %c0_149 = arith.constant 0 : index
    %c0_150 = arith.constant 0 : index
    %461 = vector.load %arg5[%c1_148, %c0_149, %c0_150] : memref<2x1x32xf32, #tpu.memory_space<vmem>>, vector<1x1x32xf32>
    %462 = vector.shape_cast %461 : vector<1x1x32xf32> to vector<1x32xf32>
    %463 = vector.broadcast %462 : vector<1x32xf32> to vector<2x32xf32>
    %464 = arith.addf %460, %463 : vector<2x32xf32>
    %465 = arith.mulf %452, %464 : vector<2x32xf32>
    %466 = arith.addf %445, %465 : vector<2x32xf32>
    %467 = math.tanh %466 : vector<2x32xf32>
    %cst_151 = arith.constant 1.000000e+00 : f32
    %468 = vector.broadcast %cst_151 : f32 to vector<2x32xf32>
    %469 = arith.subf %468, %459 : vector<2x32xf32>
    %470 = arith.mulf %469, %467 : vector<2x32xf32>
    %471 = arith.mulf %459, %433 : vector<2x32xf32>
    %472 = arith.addf %470, %471 : vector<2x32xf32>
    %c7_i32_152 = arith.constant 7 : i32
    %473 = arith.addi %432, %c7_i32_152 : i32
    %474 = vector.broadcast %473 : i32 to vector<2x1xi32>
    %475 = arith.cmpi slt, %474, %3 : vector<2x1xi32>
    %476 = vector.shape_cast %475 : vector<2x1xi1> to vector<2x1xi1>
    %477 = vector.broadcast %476 : vector<2x1xi1> to vector<2x32xi1>
    %478 = arith.select %477, %472, %433 : vector<2x32xi1>, vector<2x32xf32>
    %cst_153 = arith.constant 0.000000e+00 : f32
    %479 = vector.shape_cast %475 : vector<2x1xi1> to vector<2x1xi1>
    %480 = vector.broadcast %479 : vector<2x1xi1> to vector<2x32xi1>
    %481 = vector.broadcast %cst_153 : f32 to vector<2x32xf32>
    %482 = arith.select %480, %472, %481 : vector<2x32xi1>, vector<2x32xf32>
    %483 = arith.truncf %482 : vector<2x32xf32> to vector<2x32xbf16>
    %c7_154 = arith.constant 7 : index
    %c0_155 = arith.constant 0 : index
    %c0_156 = arith.constant 0 : index
    %484 = vector.load %arg7[%c7_154, %c0_155, %c0_156] : memref<8x2x32xbf16, #tpu.memory_space<vmem>>, vector<1x2x32xbf16>
    %485 = vector.shape_cast %484 : vector<1x2x32xbf16> to vector<2x32xbf16>
    %486 = vector.shape_cast %483 : vector<2x32xbf16> to vector<1x2x32xbf16>
    tpu.vector_store %arg7[%c7_154, %c0_155, %c0_156], %486 {strides = array<i32>} : memref<8x2x32xbf16, #tpu.memory_space<vmem>>, vector<1x2x32xbf16>,
    %c6_157 = arith.constant 6 : index
    %c0_158 = arith.constant 0 : index
    %c0_159 = arith.constant 0 : index
    %487 = vector.load %arg2[%c6_157, %c0_158, %c0_159] : memref<8x2x192xbf16, #tpu.memory_space<vmem>>, vector<1x2x192xbf16>
    %488 = vector.shape_cast %487 : vector<1x2x192xbf16> to vector<2x192xbf16>
    %489 = arith.truncf %478 : vector<2x32xf32> to vector<2x32xbf16>
    %c1_160 = arith.constant 1 : index
    %c0_161 = arith.constant 0 : index
    %c0_162 = arith.constant 0 : index
    %490 = vector.load %arg4[%c1_160, %c0_161, %c0_162] : memref<2x32x96xbf16, #tpu.memory_space<vmem>>, vector<1x32x96xbf16>
    %491 = vector.shape_cast %490 : vector<1x32x96xbf16> to vector<32x96xbf16>
    %cst_163 = arith.constant dense<0.000000e+00> : vector<2x96xf32>
    %492 = tpu.matmul %489, %491, %cst_163 {dimension_numbers = #tpu.dot_dimension_numbers<[1], [0], [0], [1], [0, 0, 1, 1], [], []>} : vector<2x32xbf16>, vector<32x96xbf16>, vector<2x96xf32> -> vector<2x96xf32>
    %493 = vector.extract_strided_slice %488 {offsets = [0, 96], sizes = [2, 32], strides = [1, 1]} : vector<2x192xbf16> to vector<2x32xbf16>
    %494 = arith.extf %493 : vector<2x32xbf16> to vector<2x32xf32>
    %495 = vector.extract_strided_slice %488 {offsets = [0, 128], sizes = [2, 32], strides = [1, 1]} : vector<2x192xbf16> to vector<2x32xbf16>
    %496 = arith.extf %495 : vector<2x32xbf16> to vector<2x32xf32>
    %497 = vector.extract_strided_slice %488 {offsets = [0, 160], sizes = [2, 32], strides = [1, 1]} : vector<2x192xbf16> to vector<2x32xbf16>
    %498 = arith.extf %497 : vector<2x32xbf16> to vector<2x32xf32>
    %499 = vector.extract_strided_slice %492 {offsets = [0, 0], sizes = [2, 32], strides = [1, 1]} : vector<2x96xf32> to vector<2x32xf32>
    %500 = arith.addf %494, %499 : vector<2x32xf32>
    %501 = arith.negf %500 : vector<2x32xf32>
    %502 = math.exp %501 : vector<2x32xf32>
    %cst_164 = arith.constant 1.000000e+00 : f32
    %503 = vector.broadcast %cst_164 : f32 to vector<2x32xf32>
    %504 = arith.addf %503, %502 : vector<2x32xf32>
    %505 = arith.divf %503, %504 : vector<2x32xf32>
    %506 = vector.extract_strided_slice %492 {offsets = [0, 32], sizes = [2, 32], strides = [1, 1]} : vector<2x96xf32> to vector<2x32xf32>
    %507 = arith.addf %496, %506 : vector<2x32xf32>
    %508 = arith.negf %507 : vector<2x32xf32>
    %509 = math.exp %508 : vector<2x32xf32>
    %cst_165 = arith.constant 1.000000e+00 : f32
    %510 = vector.broadcast %cst_165 : f32 to vector<2x32xf32>
    %511 = arith.addf %510, %509 : vector<2x32xf32>
    %512 = arith.divf %510, %511 : vector<2x32xf32>
    %513 = vector.extract_strided_slice %492 {offsets = [0, 64], sizes = [2, 32], strides = [1, 1]} : vector<2x96xf32> to vector<2x32xf32>
    %c1_166 = arith.constant 1 : index
    %c0_167 = arith.constant 0 : index
    %c0_168 = arith.constant 0 : index
    %514 = vector.load %arg5[%c1_166, %c0_167, %c0_168] : memref<2x1x32xf32, #tpu.memory_space<vmem>>, vector<1x1x32xf32>
    %515 = vector.shape_cast %514 : vector<1x1x32xf32> to vector<1x32xf32>
    %516 = vector.broadcast %515 : vector<1x32xf32> to vector<2x32xf32>
    %517 = arith.addf %513, %516 : vector<2x32xf32>
    %518 = arith.mulf %505, %517 : vector<2x32xf32>
    %519 = arith.addf %498, %518 : vector<2x32xf32>
    %520 = math.tanh %519 : vector<2x32xf32>
    %cst_169 = arith.constant 1.000000e+00 : f32
    %521 = vector.broadcast %cst_169 : f32 to vector<2x32xf32>
    %522 = arith.subf %521, %512 : vector<2x32xf32>
    %523 = arith.mulf %522, %520 : vector<2x32xf32>
    %524 = arith.mulf %512, %478 : vector<2x32xf32>
    %525 = arith.addf %523, %524 : vector<2x32xf32>
    %c6_i32_170 = arith.constant 6 : i32
    %526 = arith.addi %432, %c6_i32_170 : i32
    %527 = vector.broadcast %526 : i32 to vector<2x1xi32>
    %528 = arith.cmpi slt, %527, %3 : vector<2x1xi32>
    %529 = vector.shape_cast %528 : vector<2x1xi1> to vector<2x1xi1>
    %530 = vector.broadcast %529 : vector<2x1xi1> to vector<2x32xi1>
    %531 = arith.select %530, %525, %478 : vector<2x32xi1>, vector<2x32xf32>
    %cst_171 = arith.constant 0.000000e+00 : f32
    %532 = vector.shape_cast %528 : vector<2x1xi1> to vector<2x1xi1>
    %533 = vector.broadcast %532 : vector<2x1xi1> to vector<2x32xi1>
    %534 = vector.broadcast %cst_171 : f32 to vector<2x32xf32>
    %535 = arith.select %533, %525, %534 : vector<2x32xi1>, vector<2x32xf32>
    %536 = arith.truncf %535 : vector<2x32xf32> to vector<2x32xbf16>
    %c6_172 = arith.constant 6 : index
    %c0_173 = arith.constant 0 : index
    %c0_174 = arith.constant 0 : index
    %537 = vector.load %arg7[%c6_172, %c0_173, %c0_174] : memref<8x2x32xbf16, #tpu.memory_space<vmem>>, vector<1x2x32xbf16>
    %538 = vector.shape_cast %537 : vector<1x2x32xbf16> to vector<2x32xbf16>
    %539 = vector.shape_cast %536 : vector<2x32xbf16> to vector<1x2x32xbf16>
    tpu.vector_store %arg7[%c6_172, %c0_173, %c0_174], %539 {strides = array<i32>} : memref<8x2x32xbf16, #tpu.memory_space<vmem>>, vector<1x2x32xbf16>,
    %c5_175 = arith.constant 5 : index
    %c0_176 = arith.constant 0 : index
    %c0_177 = arith.constant 0 : index
    %540 = vector.load %arg2[%c5_175, %c0_176, %c0_177] : memref<8x2x192xbf16, #tpu.memory_space<vmem>>, vector<1x2x192xbf16>
    %541 = vector.shape_cast %540 : vector<1x2x192xbf16> to vector<2x192xbf16>
    %542 = arith.truncf %531 : vector<2x32xf32> to vector<2x32xbf16>
    %c1_178 = arith.constant 1 : index
    %c0_179 = arith.constant 0 : index
    %c0_180 = arith.constant 0 : index
    %543 = vector.load %arg4[%c1_178, %c0_179, %c0_180] : memref<2x32x96xbf16, #tpu.memory_space<vmem>>, vector<1x32x96xbf16>
    %544 = vector.shape_cast %543 : vector<1x32x96xbf16> to vector<32x96xbf16>
    %cst_181 = arith.constant dense<0.000000e+00> : vector<2x96xf32>
    %545 = tpu.matmul %542, %544, %cst_181 {dimension_numbers = #tpu.dot_dimension_numbers<[1], [0], [0], [1], [0, 0, 1, 1], [], []>} : vector<2x32xbf16>, vector<32x96xbf16>, vector<2x96xf32> -> vector<2x96xf32>
    %546 = vector.extract_strided_slice %541 {offsets = [0, 96], sizes = [2, 32], strides = [1, 1]} : vector<2x192xbf16> to vector<2x32xbf16>
    %547 = arith.extf %546 : vector<2x32xbf16> to vector<2x32xf32>
    %548 = vector.extract_strided_slice %541 {offsets = [0, 128], sizes = [2, 32], strides = [1, 1]} : vector<2x192xbf16> to vector<2x32xbf16>
    %549 = arith.extf %548 : vector<2x32xbf16> to vector<2x32xf32>
    %550 = vector.extract_strided_slice %541 {offsets = [0, 160], sizes = [2, 32], strides = [1, 1]} : vector<2x192xbf16> to vector<2x32xbf16>
    %551 = arith.extf %550 : vector<2x32xbf16> to vector<2x32xf32>
    %552 = vector.extract_strided_slice %545 {offsets = [0, 0], sizes = [2, 32], strides = [1, 1]} : vector<2x96xf32> to vector<2x32xf32>
    %553 = arith.addf %547, %552 : vector<2x32xf32>
    %554 = arith.negf %553 : vector<2x32xf32>
    %555 = math.exp %554 : vector<2x32xf32>
    %cst_182 = arith.constant 1.000000e+00 : f32
    %556 = vector.broadcast %cst_182 : f32 to vector<2x32xf32>
    %557 = arith.addf %556, %555 : vector<2x32xf32>
    %558 = arith.divf %556, %557 : vector<2x32xf32>
    %559 = vector.extract_strided_slice %545 {offsets = [0, 32], sizes = [2, 32], strides = [1, 1]} : vector<2x96xf32> to vector<2x32xf32>
    %560 = arith.addf %549, %559 : vector<2x32xf32>
    %561 = arith.negf %560 : vector<2x32xf32>
    %562 = math.exp %561 : vector<2x32xf32>
    %cst_183 = arith.constant 1.000000e+00 : f32
    %563 = vector.broadcast %cst_183 : f32 to vector<2x32xf32>
    %564 = arith.addf %563, %562 : vector<2x32xf32>
    %565 = arith.divf %563, %564 : vector<2x32xf32>
    %566 = vector.extract_strided_slice %545 {offsets = [0, 64], sizes = [2, 32], strides = [1, 1]} : vector<2x96xf32> to vector<2x32xf32>
    %c1_184 = arith.constant 1 : index
    %c0_185 = arith.constant 0 : index
    %c0_186 = arith.constant 0 : index
    %567 = vector.load %arg5[%c1_184, %c0_185, %c0_186] : memref<2x1x32xf32, #tpu.memory_space<vmem>>, vector<1x1x32xf32>
    %568 = vector.shape_cast %567 : vector<1x1x32xf32> to vector<1x32xf32>
    %569 = vector.broadcast %568 : vector<1x32xf32> to vector<2x32xf32>
    %570 = arith.addf %566, %569 : vector<2x32xf32>
    %571 = arith.mulf %558, %570 : vector<2x32xf32>
    %572 = arith.addf %551, %571 : vector<2x32xf32>
    %573 = math.tanh %572 : vector<2x32xf32>
    %cst_187 = arith.constant 1.000000e+00 : f32
    %574 = vector.broadcast %cst_187 : f32 to vector<2x32xf32>
    %575 = arith.subf %574, %565 : vector<2x32xf32>
    %576 = arith.mulf %575, %573 : vector<2x32xf32>
    %577 = arith.mulf %565, %531 : vector<2x32xf32>
    %578 = arith.addf %576, %577 : vector<2x32xf32>
    %c5_i32_188 = arith.constant 5 : i32
    %579 = arith.addi %432, %c5_i32_188 : i32
    %580 = vector.broadcast %579 : i32 to vector<2x1xi32>
    %581 = arith.cmpi slt, %580, %3 : vector<2x1xi32>
    %582 = vector.shape_cast %581 : vector<2x1xi1> to vector<2x1xi1>
    %583 = vector.broadcast %582 : vector<2x1xi1> to vector<2x32xi1>
    %584 = arith.select %583, %578, %531 : vector<2x32xi1>, vector<2x32xf32>
    %cst_189 = arith.constant 0.000000e+00 : f32
    %585 = vector.shape_cast %581 : vector<2x1xi1> to vector<2x1xi1>
    %586 = vector.broadcast %585 : vector<2x1xi1> to vector<2x32xi1>
    %587 = vector.broadcast %cst_189 : f32 to vector<2x32xf32>
    %588 = arith.select %586, %578, %587 : vector<2x32xi1>, vector<2x32xf32>
    %589 = arith.truncf %588 : vector<2x32xf32> to vector<2x32xbf16>
    %c5_190 = arith.constant 5 : index
    %c0_191 = arith.constant 0 : index
    %c0_192 = arith.constant 0 : index
    %590 = vector.load %arg7[%c5_190, %c0_191, %c0_192] : memref<8x2x32xbf16, #tpu.memory_space<vmem>>, vector<1x2x32xbf16>
    %591 = vector.shape_cast %590 : vector<1x2x32xbf16> to vector<2x32xbf16>
    %592 = vector.shape_cast %589 : vector<2x32xbf16> to vector<1x2x32xbf16>
    tpu.vector_store %arg7[%c5_190, %c0_191, %c0_192], %592 {strides = array<i32>} : memref<8x2x32xbf16, #tpu.memory_space<vmem>>, vector<1x2x32xbf16>,
    %c4_193 = arith.constant 4 : index
    %c0_194 = arith.constant 0 : index
    %c0_195 = arith.constant 0 : index
    %593 = vector.load %arg2[%c4_193, %c0_194, %c0_195] : memref<8x2x192xbf16, #tpu.memory_space<vmem>>, vector<1x2x192xbf16>
    %594 = vector.shape_cast %593 : vector<1x2x192xbf16> to vector<2x192xbf16>
    %595 = arith.truncf %584 : vector<2x32xf32> to vector<2x32xbf16>
    %c1_196 = arith.constant 1 : index
    %c0_197 = arith.constant 0 : index
    %c0_198 = arith.constant 0 : index
    %596 = vector.load %arg4[%c1_196, %c0_197, %c0_198] : memref<2x32x96xbf16, #tpu.memory_space<vmem>>, vector<1x32x96xbf16>
    %597 = vector.shape_cast %596 : vector<1x32x96xbf16> to vector<32x96xbf16>
    %cst_199 = arith.constant dense<0.000000e+00> : vector<2x96xf32>
    %598 = tpu.matmul %595, %597, %cst_199 {dimension_numbers = #tpu.dot_dimension_numbers<[1], [0], [0], [1], [0, 0, 1, 1], [], []>} : vector<2x32xbf16>, vector<32x96xbf16>, vector<2x96xf32> -> vector<2x96xf32>
    %599 = vector.extract_strided_slice %594 {offsets = [0, 96], sizes = [2, 32], strides = [1, 1]} : vector<2x192xbf16> to vector<2x32xbf16>
    %600 = arith.extf %599 : vector<2x32xbf16> to vector<2x32xf32>
    %601 = vector.extract_strided_slice %594 {offsets = [0, 128], sizes = [2, 32], strides = [1, 1]} : vector<2x192xbf16> to vector<2x32xbf16>
    %602 = arith.extf %601 : vector<2x32xbf16> to vector<2x32xf32>
    %603 = vector.extract_strided_slice %594 {offsets = [0, 160], sizes = [2, 32], strides = [1, 1]} : vector<2x192xbf16> to vector<2x32xbf16>
    %604 = arith.extf %603 : vector<2x32xbf16> to vector<2x32xf32>
    %605 = vector.extract_strided_slice %598 {offsets = [0, 0], sizes = [2, 32], strides = [1, 1]} : vector<2x96xf32> to vector<2x32xf32>
    %606 = arith.addf %600, %605 : vector<2x32xf32>
    %607 = arith.negf %606 : vector<2x32xf32>
    %608 = math.exp %607 : vector<2x32xf32>
    %cst_200 = arith.constant 1.000000e+00 : f32
    %609 = vector.broadcast %cst_200 : f32 to vector<2x32xf32>
    %610 = arith.addf %609, %608 : vector<2x32xf32>
    %611 = arith.divf %609, %610 : vector<2x32xf32>
    %612 = vector.extract_strided_slice %598 {offsets = [0, 32], sizes = [2, 32], strides = [1, 1]} : vector<2x96xf32> to vector<2x32xf32>
    %613 = arith.addf %602, %612 : vector<2x32xf32>
    %614 = arith.negf %613 : vector<2x32xf32>
    %615 = math.exp %614 : vector<2x32xf32>
    %cst_201 = arith.constant 1.000000e+00 : f32
    %616 = vector.broadcast %cst_201 : f32 to vector<2x32xf32>
    %617 = arith.addf %616, %615 : vector<2x32xf32>
    %618 = arith.divf %616, %617 : vector<2x32xf32>
    %619 = vector.extract_strided_slice %598 {offsets = [0, 64], sizes = [2, 32], strides = [1, 1]} : vector<2x96xf32> to vector<2x32xf32>
    %c1_202 = arith.constant 1 : index
    %c0_203 = arith.constant 0 : index
    %c0_204 = arith.constant 0 : index
    %620 = vector.load %arg5[%c1_202, %c0_203, %c0_204] : memref<2x1x32xf32, #tpu.memory_space<vmem>>, vector<1x1x32xf32>
    %621 = vector.shape_cast %620 : vector<1x1x32xf32> to vector<1x32xf32>
    %622 = vector.broadcast %621 : vector<1x32xf32> to vector<2x32xf32>
    %623 = arith.addf %619, %622 : vector<2x32xf32>
    %624 = arith.mulf %611, %623 : vector<2x32xf32>
    %625 = arith.addf %604, %624 : vector<2x32xf32>
    %626 = math.tanh %625 : vector<2x32xf32>
    %cst_205 = arith.constant 1.000000e+00 : f32
    %627 = vector.broadcast %cst_205 : f32 to vector<2x32xf32>
    %628 = arith.subf %627, %618 : vector<2x32xf32>
    %629 = arith.mulf %628, %626 : vector<2x32xf32>
    %630 = arith.mulf %618, %584 : vector<2x32xf32>
    %631 = arith.addf %629, %630 : vector<2x32xf32>
    %c4_i32_206 = arith.constant 4 : i32
    %632 = arith.addi %432, %c4_i32_206 : i32
    %633 = vector.broadcast %632 : i32 to vector<2x1xi32>
    %634 = arith.cmpi slt, %633, %3 : vector<2x1xi32>
    %635 = vector.shape_cast %634 : vector<2x1xi1> to vector<2x1xi1>
    %636 = vector.broadcast %635 : vector<2x1xi1> to vector<2x32xi1>
    %637 = arith.select %636, %631, %584 : vector<2x32xi1>, vector<2x32xf32>
    %cst_207 = arith.constant 0.000000e+00 : f32
    %638 = vector.shape_cast %634 : vector<2x1xi1> to vector<2x1xi1>
    %639 = vector.broadcast %638 : vector<2x1xi1> to vector<2x32xi1>
    %640 = vector.broadcast %cst_207 : f32 to vector<2x32xf32>
    %641 = arith.select %639, %631, %640 : vector<2x32xi1>, vector<2x32xf32>
    %642 = arith.truncf %641 : vector<2x32xf32> to vector<2x32xbf16>
    %c4_208 = arith.constant 4 : index
    %c0_209 = arith.constant 0 : index
    %c0_210 = arith.constant 0 : index
    %643 = vector.load %arg7[%c4_208, %c0_209, %c0_210] : memref<8x2x32xbf16, #tpu.memory_space<vmem>>, vector<1x2x32xbf16>
    %644 = vector.shape_cast %643 : vector<1x2x32xbf16> to vector<2x32xbf16>
    %645 = vector.shape_cast %642 : vector<2x32xbf16> to vector<1x2x32xbf16>
    tpu.vector_store %arg7[%c4_208, %c0_209, %c0_210], %645 {strides = array<i32>} : memref<8x2x32xbf16, #tpu.memory_space<vmem>>, vector<1x2x32xbf16>,
    %c3_211 = arith.constant 3 : index
    %c0_212 = arith.constant 0 : index
    %c0_213 = arith.constant 0 : index
    %646 = vector.load %arg2[%c3_211, %c0_212, %c0_213] : memref<8x2x192xbf16, #tpu.memory_space<vmem>>, vector<1x2x192xbf16>
    %647 = vector.shape_cast %646 : vector<1x2x192xbf16> to vector<2x192xbf16>
    %648 = arith.truncf %637 : vector<2x32xf32> to vector<2x32xbf16>
    %c1_214 = arith.constant 1 : index
    %c0_215 = arith.constant 0 : index
    %c0_216 = arith.constant 0 : index
    %649 = vector.load %arg4[%c1_214, %c0_215, %c0_216] : memref<2x32x96xbf16, #tpu.memory_space<vmem>>, vector<1x32x96xbf16>
    %650 = vector.shape_cast %649 : vector<1x32x96xbf16> to vector<32x96xbf16>
    %cst_217 = arith.constant dense<0.000000e+00> : vector<2x96xf32>
    %651 = tpu.matmul %648, %650, %cst_217 {dimension_numbers = #tpu.dot_dimension_numbers<[1], [0], [0], [1], [0, 0, 1, 1], [], []>} : vector<2x32xbf16>, vector<32x96xbf16>, vector<2x96xf32> -> vector<2x96xf32>
    %652 = vector.extract_strided_slice %647 {offsets = [0, 96], sizes = [2, 32], strides = [1, 1]} : vector<2x192xbf16> to vector<2x32xbf16>
    %653 = arith.extf %652 : vector<2x32xbf16> to vector<2x32xf32>
    %654 = vector.extract_strided_slice %647 {offsets = [0, 128], sizes = [2, 32], strides = [1, 1]} : vector<2x192xbf16> to vector<2x32xbf16>
    %655 = arith.extf %654 : vector<2x32xbf16> to vector<2x32xf32>
    %656 = vector.extract_strided_slice %647 {offsets = [0, 160], sizes = [2, 32], strides = [1, 1]} : vector<2x192xbf16> to vector<2x32xbf16>
    %657 = arith.extf %656 : vector<2x32xbf16> to vector<2x32xf32>
    %658 = vector.extract_strided_slice %651 {offsets = [0, 0], sizes = [2, 32], strides = [1, 1]} : vector<2x96xf32> to vector<2x32xf32>
    %659 = arith.addf %653, %658 : vector<2x32xf32>
    %660 = arith.negf %659 : vector<2x32xf32>
    %661 = math.exp %660 : vector<2x32xf32>
    %cst_218 = arith.constant 1.000000e+00 : f32
    %662 = vector.broadcast %cst_218 : f32 to vector<2x32xf32>
    %663 = arith.addf %662, %661 : vector<2x32xf32>
    %664 = arith.divf %662, %663 : vector<2x32xf32>
    %665 = vector.extract_strided_slice %651 {offsets = [0, 32], sizes = [2, 32], strides = [1, 1]} : vector<2x96xf32> to vector<2x32xf32>
    %666 = arith.addf %655, %665 : vector<2x32xf32>
    %667 = arith.negf %666 : vector<2x32xf32>
    %668 = math.exp %667 : vector<2x32xf32>
    %cst_219 = arith.constant 1.000000e+00 : f32
    %669 = vector.broadcast %cst_219 : f32 to vector<2x32xf32>
    %670 = arith.addf %669, %668 : vector<2x32xf32>
    %671 = arith.divf %669, %670 : vector<2x32xf32>
    %672 = vector.extract_strided_slice %651 {offsets = [0, 64], sizes = [2, 32], strides = [1, 1]} : vector<2x96xf32> to vector<2x32xf32>
    %c1_220 = arith.constant 1 : index
    %c0_221 = arith.constant 0 : index
    %c0_222 = arith.constant 0 : index
    %673 = vector.load %arg5[%c1_220, %c0_221, %c0_222] : memref<2x1x32xf32, #tpu.memory_space<vmem>>, vector<1x1x32xf32>
    %674 = vector.shape_cast %673 : vector<1x1x32xf32> to vector<1x32xf32>
    %675 = vector.broadcast %674 : vector<1x32xf32> to vector<2x32xf32>
    %676 = arith.addf %672, %675 : vector<2x32xf32>
    %677 = arith.mulf %664, %676 : vector<2x32xf32>
    %678 = arith.addf %657, %677 : vector<2x32xf32>
    %679 = math.tanh %678 : vector<2x32xf32>
    %cst_223 = arith.constant 1.000000e+00 : f32
    %680 = vector.broadcast %cst_223 : f32 to vector<2x32xf32>
    %681 = arith.subf %680, %671 : vector<2x32xf32>
    %682 = arith.mulf %681, %679 : vector<2x32xf32>
    %683 = arith.mulf %671, %637 : vector<2x32xf32>
    %684 = arith.addf %682, %683 : vector<2x32xf32>
    %c3_i32_224 = arith.constant 3 : i32
    %685 = arith.addi %432, %c3_i32_224 : i32
    %686 = vector.broadcast %685 : i32 to vector<2x1xi32>
    %687 = arith.cmpi slt, %686, %3 : vector<2x1xi32>
    %688 = vector.shape_cast %687 : vector<2x1xi1> to vector<2x1xi1>
    %689 = vector.broadcast %688 : vector<2x1xi1> to vector<2x32xi1>
    %690 = arith.select %689, %684, %637 : vector<2x32xi1>, vector<2x32xf32>
    %cst_225 = arith.constant 0.000000e+00 : f32
    %691 = vector.shape_cast %687 : vector<2x1xi1> to vector<2x1xi1>
    %692 = vector.broadcast %691 : vector<2x1xi1> to vector<2x32xi1>
    %693 = vector.broadcast %cst_225 : f32 to vector<2x32xf32>
    %694 = arith.select %692, %684, %693 : vector<2x32xi1>, vector<2x32xf32>
    %695 = arith.truncf %694 : vector<2x32xf32> to vector<2x32xbf16>
    %c3_226 = arith.constant 3 : index
    %c0_227 = arith.constant 0 : index
    %c0_228 = arith.constant 0 : index
    %696 = vector.load %arg7[%c3_226, %c0_227, %c0_228] : memref<8x2x32xbf16, #tpu.memory_space<vmem>>, vector<1x2x32xbf16>
    %697 = vector.shape_cast %696 : vector<1x2x32xbf16> to vector<2x32xbf16>
    %698 = vector.shape_cast %695 : vector<2x32xbf16> to vector<1x2x32xbf16>
    tpu.vector_store %arg7[%c3_226, %c0_227, %c0_228], %698 {strides = array<i32>} : memref<8x2x32xbf16, #tpu.memory_space<vmem>>, vector<1x2x32xbf16>,
    %c2_229 = arith.constant 2 : index
    %c0_230 = arith.constant 0 : index
    %c0_231 = arith.constant 0 : index
    %699 = vector.load %arg2[%c2_229, %c0_230, %c0_231] : memref<8x2x192xbf16, #tpu.memory_space<vmem>>, vector<1x2x192xbf16>
    %700 = vector.shape_cast %699 : vector<1x2x192xbf16> to vector<2x192xbf16>
    %701 = arith.truncf %690 : vector<2x32xf32> to vector<2x32xbf16>
    %c1_232 = arith.constant 1 : index
    %c0_233 = arith.constant 0 : index
    %c0_234 = arith.constant 0 : index
    %702 = vector.load %arg4[%c1_232, %c0_233, %c0_234] : memref<2x32x96xbf16, #tpu.memory_space<vmem>>, vector<1x32x96xbf16>
    %703 = vector.shape_cast %702 : vector<1x32x96xbf16> to vector<32x96xbf16>
    %cst_235 = arith.constant dense<0.000000e+00> : vector<2x96xf32>
    %704 = tpu.matmul %701, %703, %cst_235 {dimension_numbers = #tpu.dot_dimension_numbers<[1], [0], [0], [1], [0, 0, 1, 1], [], []>} : vector<2x32xbf16>, vector<32x96xbf16>, vector<2x96xf32> -> vector<2x96xf32>
    %705 = vector.extract_strided_slice %700 {offsets = [0, 96], sizes = [2, 32], strides = [1, 1]} : vector<2x192xbf16> to vector<2x32xbf16>
    %706 = arith.extf %705 : vector<2x32xbf16> to vector<2x32xf32>
    %707 = vector.extract_strided_slice %700 {offsets = [0, 128], sizes = [2, 32], strides = [1, 1]} : vector<2x192xbf16> to vector<2x32xbf16>
    %708 = arith.extf %707 : vector<2x32xbf16> to vector<2x32xf32>
    %709 = vector.extract_strided_slice %700 {offsets = [0, 160], sizes = [2, 32], strides = [1, 1]} : vector<2x192xbf16> to vector<2x32xbf16>
    %710 = arith.extf %709 : vector<2x32xbf16> to vector<2x32xf32>
    %711 = vector.extract_strided_slice %704 {offsets = [0, 0], sizes = [2, 32], strides = [1, 1]} : vector<2x96xf32> to vector<2x32xf32>
    %712 = arith.addf %706, %711 : vector<2x32xf32>
    %713 = arith.negf %712 : vector<2x32xf32>
    %714 = math.exp %713 : vector<2x32xf32>
    %cst_236 = arith.constant 1.000000e+00 : f32
    %715 = vector.broadcast %cst_236 : f32 to vector<2x32xf32>
    %716 = arith.addf %715, %714 : vector<2x32xf32>
    %717 = arith.divf %715, %716 : vector<2x32xf32>
    %718 = vector.extract_strided_slice %704 {offsets = [0, 32], sizes = [2, 32], strides = [1, 1]} : vector<2x96xf32> to vector<2x32xf32>
    %719 = arith.addf %708, %718 : vector<2x32xf32>
    %720 = arith.negf %719 : vector<2x32xf32>
    %721 = math.exp %720 : vector<2x32xf32>
    %cst_237 = arith.constant 1.000000e+00 : f32
    %722 = vector.broadcast %cst_237 : f32 to vector<2x32xf32>
    %723 = arith.addf %722, %721 : vector<2x32xf32>
    %724 = arith.divf %722, %723 : vector<2x32xf32>
    %725 = vector.extract_strided_slice %704 {offsets = [0, 64], sizes = [2, 32], strides = [1, 1]} : vector<2x96xf32> to vector<2x32xf32>
    %c1_238 = arith.constant 1 : index
    %c0_239 = arith.constant 0 : index
    %c0_240 = arith.constant 0 : index
    %726 = vector.load %arg5[%c1_238, %c0_239, %c0_240] : memref<2x1x32xf32, #tpu.memory_space<vmem>>, vector<1x1x32xf32>
    %727 = vector.shape_cast %726 : vector<1x1x32xf32> to vector<1x32xf32>
    %728 = vector.broadcast %727 : vector<1x32xf32> to vector<2x32xf32>
    %729 = arith.addf %725, %728 : vector<2x32xf32>
    %730 = arith.mulf %717, %729 : vector<2x32xf32>
    %731 = arith.addf %710, %730 : vector<2x32xf32>
    %732 = math.tanh %731 : vector<2x32xf32>
    %cst_241 = arith.constant 1.000000e+00 : f32
    %733 = vector.broadcast %cst_241 : f32 to vector<2x32xf32>
    %734 = arith.subf %733, %724 : vector<2x32xf32>
    %735 = arith.mulf %734, %732 : vector<2x32xf32>
    %736 = arith.mulf %724, %690 : vector<2x32xf32>
    %737 = arith.addf %735, %736 : vector<2x32xf32>
    %c2_i32_242 = arith.constant 2 : i32
    %738 = arith.addi %432, %c2_i32_242 : i32
    %739 = vector.broadcast %738 : i32 to vector<2x1xi32>
    %740 = arith.cmpi slt, %739, %3 : vector<2x1xi32>
    %741 = vector.shape_cast %740 : vector<2x1xi1> to vector<2x1xi1>
    %742 = vector.broadcast %741 : vector<2x1xi1> to vector<2x32xi1>
    %743 = arith.select %742, %737, %690 : vector<2x32xi1>, vector<2x32xf32>
    %cst_243 = arith.constant 0.000000e+00 : f32
    %744 = vector.shape_cast %740 : vector<2x1xi1> to vector<2x1xi1>
    %745 = vector.broadcast %744 : vector<2x1xi1> to vector<2x32xi1>
    %746 = vector.broadcast %cst_243 : f32 to vector<2x32xf32>
    %747 = arith.select %745, %737, %746 : vector<2x32xi1>, vector<2x32xf32>
    %748 = arith.truncf %747 : vector<2x32xf32> to vector<2x32xbf16>
    %c2_244 = arith.constant 2 : index
    %c0_245 = arith.constant 0 : index
    %c0_246 = arith.constant 0 : index
    %749 = vector.load %arg7[%c2_244, %c0_245, %c0_246] : memref<8x2x32xbf16, #tpu.memory_space<vmem>>, vector<1x2x32xbf16>
    %750 = vector.shape_cast %749 : vector<1x2x32xbf16> to vector<2x32xbf16>
    %751 = vector.shape_cast %748 : vector<2x32xbf16> to vector<1x2x32xbf16>
    tpu.vector_store %arg7[%c2_244, %c0_245, %c0_246], %751 {strides = array<i32>} : memref<8x2x32xbf16, #tpu.memory_space<vmem>>, vector<1x2x32xbf16>,
    %c1_247 = arith.constant 1 : index
    %c0_248 = arith.constant 0 : index
    %c0_249 = arith.constant 0 : index
    %752 = vector.load %arg2[%c1_247, %c0_248, %c0_249] : memref<8x2x192xbf16, #tpu.memory_space<vmem>>, vector<1x2x192xbf16>
    %753 = vector.shape_cast %752 : vector<1x2x192xbf16> to vector<2x192xbf16>
    %754 = arith.truncf %743 : vector<2x32xf32> to vector<2x32xbf16>
    %c1_250 = arith.constant 1 : index
    %c0_251 = arith.constant 0 : index
    %c0_252 = arith.constant 0 : index
    %755 = vector.load %arg4[%c1_250, %c0_251, %c0_252] : memref<2x32x96xbf16, #tpu.memory_space<vmem>>, vector<1x32x96xbf16>
    %756 = vector.shape_cast %755 : vector<1x32x96xbf16> to vector<32x96xbf16>
    %cst_253 = arith.constant dense<0.000000e+00> : vector<2x96xf32>
    %757 = tpu.matmul %754, %756, %cst_253 {dimension_numbers = #tpu.dot_dimension_numbers<[1], [0], [0], [1], [0, 0, 1, 1], [], []>} : vector<2x32xbf16>, vector<32x96xbf16>, vector<2x96xf32> -> vector<2x96xf32>
    %758 = vector.extract_strided_slice %753 {offsets = [0, 96], sizes = [2, 32], strides = [1, 1]} : vector<2x192xbf16> to vector<2x32xbf16>
    %759 = arith.extf %758 : vector<2x32xbf16> to vector<2x32xf32>
    %760 = vector.extract_strided_slice %753 {offsets = [0, 128], sizes = [2, 32], strides = [1, 1]} : vector<2x192xbf16> to vector<2x32xbf16>
    %761 = arith.extf %760 : vector<2x32xbf16> to vector<2x32xf32>
    %762 = vector.extract_strided_slice %753 {offsets = [0, 160], sizes = [2, 32], strides = [1, 1]} : vector<2x192xbf16> to vector<2x32xbf16>
    %763 = arith.extf %762 : vector<2x32xbf16> to vector<2x32xf32>
    %764 = vector.extract_strided_slice %757 {offsets = [0, 0], sizes = [2, 32], strides = [1, 1]} : vector<2x96xf32> to vector<2x32xf32>
    %765 = arith.addf %759, %764 : vector<2x32xf32>
    %766 = arith.negf %765 : vector<2x32xf32>
    %767 = math.exp %766 : vector<2x32xf32>
    %cst_254 = arith.constant 1.000000e+00 : f32
    %768 = vector.broadcast %cst_254 : f32 to vector<2x32xf32>
    %769 = arith.addf %768, %767 : vector<2x32xf32>
    %770 = arith.divf %768, %769 : vector<2x32xf32>
    %771 = vector.extract_strided_slice %757 {offsets = [0, 32], sizes = [2, 32], strides = [1, 1]} : vector<2x96xf32> to vector<2x32xf32>
    %772 = arith.addf %761, %771 : vector<2x32xf32>
    %773 = arith.negf %772 : vector<2x32xf32>
    %774 = math.exp %773 : vector<2x32xf32>
    %cst_255 = arith.constant 1.000000e+00 : f32
    %775 = vector.broadcast %cst_255 : f32 to vector<2x32xf32>
    %776 = arith.addf %775, %774 : vector<2x32xf32>
    %777 = arith.divf %775, %776 : vector<2x32xf32>
    %778 = vector.extract_strided_slice %757 {offsets = [0, 64], sizes = [2, 32], strides = [1, 1]} : vector<2x96xf32> to vector<2x32xf32>
    %c1_256 = arith.constant 1 : index
    %c0_257 = arith.constant 0 : index
    %c0_258 = arith.constant 0 : index
    %779 = vector.load %arg5[%c1_256, %c0_257, %c0_258] : memref<2x1x32xf32, #tpu.memory_space<vmem>>, vector<1x1x32xf32>
    %780 = vector.shape_cast %779 : vector<1x1x32xf32> to vector<1x32xf32>
    %781 = vector.broadcast %780 : vector<1x32xf32> to vector<2x32xf32>
    %782 = arith.addf %778, %781 : vector<2x32xf32>
    %783 = arith.mulf %770, %782 : vector<2x32xf32>
    %784 = arith.addf %763, %783 : vector<2x32xf32>
    %785 = math.tanh %784 : vector<2x32xf32>
    %cst_259 = arith.constant 1.000000e+00 : f32
    %786 = vector.broadcast %cst_259 : f32 to vector<2x32xf32>
    %787 = arith.subf %786, %777 : vector<2x32xf32>
    %788 = arith.mulf %787, %785 : vector<2x32xf32>
    %789 = arith.mulf %777, %743 : vector<2x32xf32>
    %790 = arith.addf %788, %789 : vector<2x32xf32>
    %c1_i32_260 = arith.constant 1 : i32
    %791 = arith.addi %432, %c1_i32_260 : i32
    %792 = vector.broadcast %791 : i32 to vector<2x1xi32>
    %793 = arith.cmpi slt, %792, %3 : vector<2x1xi32>
    %794 = vector.shape_cast %793 : vector<2x1xi1> to vector<2x1xi1>
    %795 = vector.broadcast %794 : vector<2x1xi1> to vector<2x32xi1>
    %796 = arith.select %795, %790, %743 : vector<2x32xi1>, vector<2x32xf32>
    %cst_261 = arith.constant 0.000000e+00 : f32
    %797 = vector.shape_cast %793 : vector<2x1xi1> to vector<2x1xi1>
    %798 = vector.broadcast %797 : vector<2x1xi1> to vector<2x32xi1>
    %799 = vector.broadcast %cst_261 : f32 to vector<2x32xf32>
    %800 = arith.select %798, %790, %799 : vector<2x32xi1>, vector<2x32xf32>
    %801 = arith.truncf %800 : vector<2x32xf32> to vector<2x32xbf16>
    %c1_262 = arith.constant 1 : index
    %c0_263 = arith.constant 0 : index
    %c0_264 = arith.constant 0 : index
    %802 = vector.load %arg7[%c1_262, %c0_263, %c0_264] : memref<8x2x32xbf16, #tpu.memory_space<vmem>>, vector<1x2x32xbf16>
    %803 = vector.shape_cast %802 : vector<1x2x32xbf16> to vector<2x32xbf16>
    %804 = vector.shape_cast %801 : vector<2x32xbf16> to vector<1x2x32xbf16>
    tpu.vector_store %arg7[%c1_262, %c0_263, %c0_264], %804 {strides = array<i32>} : memref<8x2x32xbf16, #tpu.memory_space<vmem>>, vector<1x2x32xbf16>,
    %c0_265 = arith.constant 0 : index
    %c0_266 = arith.constant 0 : index
    %c0_267 = arith.constant 0 : index
    %805 = vector.load %arg2[%c0_265, %c0_266, %c0_267] : memref<8x2x192xbf16, #tpu.memory_space<vmem>>, vector<1x2x192xbf16>
    %806 = vector.shape_cast %805 : vector<1x2x192xbf16> to vector<2x192xbf16>
    %807 = arith.truncf %796 : vector<2x32xf32> to vector<2x32xbf16>
    %c1_268 = arith.constant 1 : index
    %c0_269 = arith.constant 0 : index
    %c0_270 = arith.constant 0 : index
    %808 = vector.load %arg4[%c1_268, %c0_269, %c0_270] : memref<2x32x96xbf16, #tpu.memory_space<vmem>>, vector<1x32x96xbf16>
    %809 = vector.shape_cast %808 : vector<1x32x96xbf16> to vector<32x96xbf16>
    %cst_271 = arith.constant dense<0.000000e+00> : vector<2x96xf32>
    %810 = tpu.matmul %807, %809, %cst_271 {dimension_numbers = #tpu.dot_dimension_numbers<[1], [0], [0], [1], [0, 0, 1, 1], [], []>} : vector<2x32xbf16>, vector<32x96xbf16>, vector<2x96xf32> -> vector<2x96xf32>
    %811 = vector.extract_strided_slice %806 {offsets = [0, 96], sizes = [2, 32], strides = [1, 1]} : vector<2x192xbf16> to vector<2x32xbf16>
    %812 = arith.extf %811 : vector<2x32xbf16> to vector<2x32xf32>
    %813 = vector.extract_strided_slice %806 {offsets = [0, 128], sizes = [2, 32], strides = [1, 1]} : vector<2x192xbf16> to vector<2x32xbf16>
    %814 = arith.extf %813 : vector<2x32xbf16> to vector<2x32xf32>
    %815 = vector.extract_strided_slice %806 {offsets = [0, 160], sizes = [2, 32], strides = [1, 1]} : vector<2x192xbf16> to vector<2x32xbf16>
    %816 = arith.extf %815 : vector<2x32xbf16> to vector<2x32xf32>
    %817 = vector.extract_strided_slice %810 {offsets = [0, 0], sizes = [2, 32], strides = [1, 1]} : vector<2x96xf32> to vector<2x32xf32>
    %818 = arith.addf %812, %817 : vector<2x32xf32>
    %819 = arith.negf %818 : vector<2x32xf32>
    %820 = math.exp %819 : vector<2x32xf32>
    %cst_272 = arith.constant 1.000000e+00 : f32
    %821 = vector.broadcast %cst_272 : f32 to vector<2x32xf32>
    %822 = arith.addf %821, %820 : vector<2x32xf32>
    %823 = arith.divf %821, %822 : vector<2x32xf32>
    %824 = vector.extract_strided_slice %810 {offsets = [0, 32], sizes = [2, 32], strides = [1, 1]} : vector<2x96xf32> to vector<2x32xf32>
    %825 = arith.addf %814, %824 : vector<2x32xf32>
    %826 = arith.negf %825 : vector<2x32xf32>
    %827 = math.exp %826 : vector<2x32xf32>
    %cst_273 = arith.constant 1.000000e+00 : f32
    %828 = vector.broadcast %cst_273 : f32 to vector<2x32xf32>
    %829 = arith.addf %828, %827 : vector<2x32xf32>
    %830 = arith.divf %828, %829 : vector<2x32xf32>
    %831 = vector.extract_strided_slice %810 {offsets = [0, 64], sizes = [2, 32], strides = [1, 1]} : vector<2x96xf32> to vector<2x32xf32>
    %c1_274 = arith.constant 1 : index
    %c0_275 = arith.constant 0 : index
    %c0_276 = arith.constant 0 : index
    %832 = vector.load %arg5[%c1_274, %c0_275, %c0_276] : memref<2x1x32xf32, #tpu.memory_space<vmem>>, vector<1x1x32xf32>
    %833 = vector.shape_cast %832 : vector<1x1x32xf32> to vector<1x32xf32>
    %834 = vector.broadcast %833 : vector<1x32xf32> to vector<2x32xf32>
    %835 = arith.addf %831, %834 : vector<2x32xf32>
    %836 = arith.mulf %823, %835 : vector<2x32xf32>
    %837 = arith.addf %816, %836 : vector<2x32xf32>
    %838 = math.tanh %837 : vector<2x32xf32>
    %cst_277 = arith.constant 1.000000e+00 : f32
    %839 = vector.broadcast %cst_277 : f32 to vector<2x32xf32>
    %840 = arith.subf %839, %830 : vector<2x32xf32>
    %841 = arith.mulf %840, %838 : vector<2x32xf32>
    %842 = arith.mulf %830, %796 : vector<2x32xf32>
    %843 = arith.addf %841, %842 : vector<2x32xf32>
    %c0_i32_278 = arith.constant 0 : i32
    %844 = arith.addi %432, %c0_i32_278 : i32
    %845 = vector.broadcast %844 : i32 to vector<2x1xi32>
    %846 = arith.cmpi slt, %845, %3 : vector<2x1xi32>
    %847 = vector.shape_cast %846 : vector<2x1xi1> to vector<2x1xi1>
    %848 = vector.broadcast %847 : vector<2x1xi1> to vector<2x32xi1>
    %849 = arith.select %848, %843, %796 : vector<2x32xi1>, vector<2x32xf32>
    %cst_279 = arith.constant 0.000000e+00 : f32
    %850 = vector.shape_cast %846 : vector<2x1xi1> to vector<2x1xi1>
    %851 = vector.broadcast %850 : vector<2x1xi1> to vector<2x32xi1>
    %852 = vector.broadcast %cst_279 : f32 to vector<2x32xf32>
    %853 = arith.select %851, %843, %852 : vector<2x32xi1>, vector<2x32xf32>
    %854 = arith.truncf %853 : vector<2x32xf32> to vector<2x32xbf16>
    %c0_280 = arith.constant 0 : index
    %c0_281 = arith.constant 0 : index
    %c0_282 = arith.constant 0 : index
    %855 = vector.load %arg7[%c0_280, %c0_281, %c0_282] : memref<8x2x32xbf16, #tpu.memory_space<vmem>>, vector<1x2x32xbf16>
    %856 = vector.shape_cast %855 : vector<1x2x32xbf16> to vector<2x32xbf16>
    %857 = vector.shape_cast %854 : vector<2x32xbf16> to vector<1x2x32xbf16>
    tpu.vector_store %arg7[%c0_280, %c0_281, %c0_282], %857 {strides = array<i32>} : memref<8x2x32xbf16, #tpu.memory_space<vmem>>, vector<1x2x32xbf16>,
    %c0_283 = arith.constant 0 : index
    %c0_284 = arith.constant 0 : index
    %858 = vector.load %arg9[%c0_283, %c0_284] : memref<2x32xf32, #tpu.memory_space<vmem>>, vector<2x32xf32>
    tpu.vector_store %arg9[%c0_283, %c0_284], %849 {strides = array<i32>} : memref<2x32xf32, #tpu.memory_space<vmem>>, vector<2x32xf32>,
    return
  }
  func.func @transform_0(%arg0: i32) -> (i32, i32, i32) {
    %c0_i32 = arith.constant 0 : i32
    %c0_i32_0 = arith.constant 0 : i32
    %c0_i32_1 = arith.constant 0 : i32
    return %arg0, %c0_i32, %c0_i32_0 : i32, i32, i32
  }
  func.func @transform_1(%arg0: i32) -> (i32, i32, i32) {
    %c0_i32 = arith.constant 0 : i32
    %0 = arith.subi %c0_i32, %arg0 : i32
    %c0_i32_0 = arith.constant 0 : i32
    %c0_i32_1 = arith.constant 0 : i32
    %c0_i32_2 = arith.constant 0 : i32
    return %0, %c0_i32_0, %c0_i32_1 : i32, i32, i32
  }
  func.func @transform_2(%arg0: i32) -> (i32, i32) {
    %c0_i32 = arith.constant 0 : i32
    %c0_i32_0 = arith.constant 0 : i32
    %c0_i32_1 = arith.constant 0 : i32
    return %c0_i32, %c0_i32_0 : i32, i32
  }
  func.func @transform_3(%arg0: i32) -> (i32, i32, i32) {
    %c0_i32 = arith.constant 0 : i32
    %c0_i32_0 = arith.constant 0 : i32
    %c0_i32_1 = arith.constant 0 : i32
    %c0_i32_2 = arith.constant 0 : i32
    return %c0_i32, %c0_i32_0, %c0_i32_1 : i32, i32, i32
  }
  func.func @transform_4(%arg0: i32) -> (i32, i32, i32) {
    %c0_i32 = arith.constant 0 : i32
    %c0_i32_0 = arith.constant 0 : i32
    %c0_i32_1 = arith.constant 0 : i32
    %c0_i32_2 = arith.constant 0 : i32
    return %c0_i32, %c0_i32_0, %c0_i32_1 : i32, i32, i32
  }
  func.func @transform_5(%arg0: i32) -> (i32, i32, i32) {
    %c0_i32 = arith.constant 0 : i32
    %c0_i32_0 = arith.constant 0 : i32
    %c0_i32_1 = arith.constant 0 : i32
    return %arg0, %c0_i32, %c0_i32_0 : i32, i32, i32
  }
  func.func @transform_6(%arg0: i32) -> (i32, i32, i32) {
    %c0_i32 = arith.constant 0 : i32
    %0 = arith.subi %c0_i32, %arg0 : i32
    %c0_i32_0 = arith.constant 0 : i32
    %c0_i32_1 = arith.constant 0 : i32
    %c0_i32_2 = arith.constant 0 : i32
    return %0, %c0_i32_0, %c0_i32_1 : i32, i32, i32
  }
}

module attributes {stable_mosaic.version = 11 : i64} {
  func.func @kernel(%arg0: i32, %arg1: i32, %arg2: i32, %arg3: memref<16x128xbf16, #tpu.memory_space<vmem>>, %arg4: memref<128x256xbf16, #tpu.memory_space<vmem>>, %arg5: memref<1x128xf32, #tpu.memory_space<vmem>>, %arg6: memref<1x128xf32, #tpu.memory_space<vmem>>, %arg7: memref<1x256xf32, #tpu.memory_space<vmem>>, %arg8: memref<16x256xbf16, #tpu.memory_space<vmem>>, %arg9: memref<16x256xf32, #tpu.memory_space<vmem>>) attributes {dimension_semantics = [#tpu.dimension_semantics<parallel>, #tpu.dimension_semantics<parallel>, #tpu.dimension_semantics<arbitrary>], iteration_bounds = array<i64: 1, 1, 1>, scalar_prefetch = 0 : i64, scratch_operands = 1 : i64, tpu.core_type = #tpu.core_type<tc>, window_params = [{transform_indices = @transform_0, window_bounds = array<i64: 16, 128>}, {transform_indices = @transform_1, window_bounds = array<i64: 128, 256>}, {transform_indices = @transform_2, window_bounds = array<i64: 1, 128>}, {transform_indices = @transform_3, window_bounds = array<i64: 1, 128>}, {transform_indices = @transform_4, window_bounds = array<i64: 1, 256>}, {transform_indices = @transform_5, window_bounds = array<i64: 16, 256>}]} {
    %c0_i32 = arith.constant 0 : i32
    %0 = arith.cmpi eq, %arg2, %c0_i32 : i32
    %1 = arith.extui %0 : i1 to i32
    %c0_i32_0 = arith.constant 0 : i32
    %2 = arith.cmpi ne, %1, %c0_i32_0 : i32
    scf.if %2 {
      %cst_15 = arith.constant 0.000000e+00 : f32
      %22 = vector.broadcast %cst_15 : f32 to vector<16x256xf32>
      %c0_16 = arith.constant 0 : index
      %c0_17 = arith.constant 0 : index
      %23 = vector.load %arg9[%c0_16, %c0_17] : memref<16x256xf32, #tpu.memory_space<vmem>>, vector<16x256xf32>
      tpu.vector_store %arg9[%c0_16, %c0_17], %22 {strides = array<i32>} : memref<16x256xf32, #tpu.memory_space<vmem>>, vector<16x256xf32>,
    } else {
    }
    %c0 = arith.constant 0 : index
    %c0_1 = arith.constant 0 : index
    %3 = vector.load %arg3[%c0, %c0_1] : memref<16x128xbf16, #tpu.memory_space<vmem>>, vector<16x128xbf16>
    %4 = arith.extf %3 : vector<16x128xbf16> to vector<16x128xf32>
    %c0_2 = arith.constant 0 : index
    %c0_3 = arith.constant 0 : index
    %5 = vector.load %arg5[%c0_2, %c0_3] : memref<1x128xf32, #tpu.memory_space<vmem>>, vector<1x128xf32>
    %6 = vector.broadcast %5 : vector<1x128xf32> to vector<16x128xf32>
    %7 = arith.mulf %4, %6 : vector<16x128xf32>
    %c0_4 = arith.constant 0 : index
    %c0_5 = arith.constant 0 : index
    %8 = vector.load %arg6[%c0_4, %c0_5] : memref<1x128xf32, #tpu.memory_space<vmem>>, vector<1x128xf32>
    %9 = vector.broadcast %8 : vector<1x128xf32> to vector<16x128xf32>
    %10 = arith.addf %7, %9 : vector<16x128xf32>
    %cst = arith.constant 0.000000e+00 : f32
    %11 = vector.broadcast %cst : f32 to vector<16x128xf32>
    %12 = arith.maximumf %10, %11 : vector<16x128xf32>
    %13 = arith.truncf %12 : vector<16x128xf32> to vector<16x128xbf16>
    %c0_6 = arith.constant 0 : index
    %c0_7 = arith.constant 0 : index
    %14 = vector.load %arg9[%c0_6, %c0_7] : memref<16x256xf32, #tpu.memory_space<vmem>>, vector<16x256xf32>
    %c0_8 = arith.constant 0 : index
    %c0_9 = arith.constant 0 : index
    %15 = vector.load %arg4[%c0_8, %c0_9] : memref<128x256xbf16, #tpu.memory_space<vmem>>, vector<128x256xbf16>
    %cst_10 = arith.constant dense<0.000000e+00> : vector<16x256xf32>
    %16 = tpu.matmul %13, %15, %cst_10 {dimension_numbers = #tpu.dot_dimension_numbers<[1], [0], [0], [1], [0, 0, 1, 1], [], []>} : vector<16x128xbf16>, vector<128x256xbf16>, vector<16x256xf32> -> vector<16x256xf32>
    %17 = arith.addf %14, %16 : vector<16x256xf32>
    %c0_11 = arith.constant 0 : index
    %c0_12 = arith.constant 0 : index
    %18 = vector.load %arg9[%c0_11, %c0_12] : memref<16x256xf32, #tpu.memory_space<vmem>>, vector<16x256xf32>
    tpu.vector_store %arg9[%c0_11, %c0_12], %17 {strides = array<i32>} : memref<16x256xf32, #tpu.memory_space<vmem>>, vector<16x256xf32>,
    %c0_i32_13 = arith.constant 0 : i32
    %19 = arith.cmpi eq, %arg2, %c0_i32_13 : i32
    %20 = arith.extui %19 : i1 to i32
    %c0_i32_14 = arith.constant 0 : i32
    %21 = arith.cmpi ne, %20, %c0_i32_14 : i32
    scf.if %21 {
      %c0_15 = arith.constant 0 : index
      %c0_16 = arith.constant 0 : index
      %22 = vector.load %arg9[%c0_15, %c0_16] : memref<16x256xf32, #tpu.memory_space<vmem>>, vector<16x256xf32>
      %c0_17 = arith.constant 0 : index
      %c0_18 = arith.constant 0 : index
      %23 = vector.load %arg7[%c0_17, %c0_18] : memref<1x256xf32, #tpu.memory_space<vmem>>, vector<1x256xf32>
      %24 = vector.broadcast %23 : vector<1x256xf32> to vector<16x256xf32>
      %25 = arith.addf %22, %24 : vector<16x256xf32>
      %26 = arith.truncf %25 : vector<16x256xf32> to vector<16x256xbf16>
      %c0_19 = arith.constant 0 : index
      %c0_20 = arith.constant 0 : index
      %27 = vector.load %arg8[%c0_19, %c0_20] : memref<16x256xbf16, #tpu.memory_space<vmem>>, vector<16x256xbf16>
      tpu.vector_store %arg8[%c0_19, %c0_20], %26 {strides = array<i32>} : memref<16x256xbf16, #tpu.memory_space<vmem>>, vector<16x256xbf16>,
    } else {
    }
    return
  }
  func.func @transform_0(%arg0: i32, %arg1: i32, %arg2: i32) -> (i32, i32) {
    %c0_i32 = arith.constant 0 : i32
    return %arg0, %arg2 : i32, i32
  }
  func.func @transform_1(%arg0: i32, %arg1: i32, %arg2: i32) -> (i32, i32) {
    %c0_i32 = arith.constant 0 : i32
    return %arg2, %arg1 : i32, i32
  }
  func.func @transform_2(%arg0: i32, %arg1: i32, %arg2: i32) -> (i32, i32) {
    %c0_i32 = arith.constant 0 : i32
    %c0_i32_0 = arith.constant 0 : i32
    return %c0_i32, %arg2 : i32, i32
  }
  func.func @transform_3(%arg0: i32, %arg1: i32, %arg2: i32) -> (i32, i32) {
    %c0_i32 = arith.constant 0 : i32
    %c0_i32_0 = arith.constant 0 : i32
    return %c0_i32, %arg2 : i32, i32
  }
  func.func @transform_4(%arg0: i32, %arg1: i32, %arg2: i32) -> (i32, i32) {
    %c0_i32 = arith.constant 0 : i32
    %c0_i32_0 = arith.constant 0 : i32
    return %c0_i32, %arg1 : i32, i32
  }
  func.func @transform_5(%arg0: i32, %arg1: i32, %arg2: i32) -> (i32, i32) {
    %c0_i32 = arith.constant 0 : i32
    return %arg0, %arg1 : i32, i32
  }
}

module attributes {stable_mosaic.version = 11 : i64} {
  func.func @_head_kernel(%arg0: i32, %arg1: memref<16x64xbf16, #tpu.memory_space<vmem>>, %arg2: memref<64x32xbf16, #tpu.memory_space<vmem>>, %arg3: memref<1x32xf32, #tpu.memory_space<vmem>>, %arg4: memref<32x128xbf16, #tpu.memory_space<vmem>>, %arg5: memref<1x128xf32, #tpu.memory_space<vmem>>, %arg6: memref<16x128xf32, #tpu.memory_space<vmem>>) attributes {dimension_semantics = [#tpu.dimension_semantics<parallel>], iteration_bounds = array<i64: 1>, scalar_prefetch = 0 : i64, scratch_operands = 0 : i64, tpu.core_type = #tpu.core_type<tc>, window_params = [{transform_indices = @transform_0, window_bounds = array<i64: 16, 64>}, {pipeline_mode = #tpu.pipeline_mode<synchronous>, transform_indices = @transform_1, window_bounds = array<i64: 64, 32>}, {pipeline_mode = #tpu.pipeline_mode<synchronous>, transform_indices = @transform_2, window_bounds = array<i64: 1, 32>}, {pipeline_mode = #tpu.pipeline_mode<synchronous>, transform_indices = @transform_3, window_bounds = array<i64: 32, 128>}, {pipeline_mode = #tpu.pipeline_mode<synchronous>, transform_indices = @transform_4, window_bounds = array<i64: 1, 128>}, {transform_indices = @transform_5, window_bounds = array<i64: 16, 128>}]} {
    %c0 = arith.constant 0 : index
    %c0_0 = arith.constant 0 : index
    %0 = vector.load %arg1[%c0, %c0_0] : memref<16x64xbf16, #tpu.memory_space<vmem>>, vector<16x64xbf16>
    %c0_1 = arith.constant 0 : index
    %c0_2 = arith.constant 0 : index
    %1 = vector.load %arg2[%c0_1, %c0_2] : memref<64x32xbf16, #tpu.memory_space<vmem>>, vector<64x32xbf16>
    %cst = arith.constant dense<0.000000e+00> : vector<16x32xf32>
    %2 = tpu.matmul %0, %1, %cst {dimension_numbers = #tpu.dot_dimension_numbers<[1], [0], [0], [1], [0, 0, 1, 1], [], []>} : vector<16x64xbf16>, vector<64x32xbf16>, vector<16x32xf32> -> vector<16x32xf32>
    %c0_3 = arith.constant 0 : index
    %c0_4 = arith.constant 0 : index
    %3 = vector.load %arg3[%c0_3, %c0_4] : memref<1x32xf32, #tpu.memory_space<vmem>>, vector<1x32xf32>
    %4 = vector.broadcast %3 : vector<1x32xf32> to vector<16x32xf32>
    %5 = arith.addf %2, %4 : vector<16x32xf32>
    %cst_5 = arith.constant 0.000000e+00 : f32
    %6 = vector.broadcast %cst_5 : f32 to vector<16x32xf32>
    %7 = arith.maximumf %5, %6 : vector<16x32xf32>
    %8 = arith.truncf %7 : vector<16x32xf32> to vector<16x32xbf16>
    %c0_6 = arith.constant 0 : index
    %c0_7 = arith.constant 0 : index
    %9 = vector.load %arg4[%c0_6, %c0_7] : memref<32x128xbf16, #tpu.memory_space<vmem>>, vector<32x128xbf16>
    %cst_8 = arith.constant dense<0.000000e+00> : vector<16x128xf32>
    %10 = tpu.matmul %8, %9, %cst_8 {dimension_numbers = #tpu.dot_dimension_numbers<[1], [0], [0], [1], [0, 0, 1, 1], [], []>} : vector<16x32xbf16>, vector<32x128xbf16>, vector<16x128xf32> -> vector<16x128xf32>
    %c0_9 = arith.constant 0 : index
    %c0_10 = arith.constant 0 : index
    %11 = vector.load %arg5[%c0_9, %c0_10] : memref<1x128xf32, #tpu.memory_space<vmem>>, vector<1x128xf32>
    %12 = vector.broadcast %11 : vector<1x128xf32> to vector<16x128xf32>
    %13 = arith.addf %10, %12 : vector<16x128xf32>
    %cst_11 = arith.constant dense<0xFF800000> : vector<16xf32>
    %14 = vector.multi_reduction <maximumf>, %13, %cst_11 [1] : vector<16x128xf32> to vector<16xf32>
    %15 = vector.shape_cast %14 : vector<16xf32> to vector<16x1xf32>
    %16 = vector.broadcast %15 : vector<16x1xf32> to vector<16x128xf32>
    %17 = arith.subf %13, %16 : vector<16x128xf32>
    %18 = math.exp %17 : vector<16x128xf32>
    %cst_12 = arith.constant dense<0.000000e+00> : vector<16xf32>
    %19 = vector.multi_reduction <add>, %18, %cst_12 [1] : vector<16x128xf32> to vector<16xf32>
    %20 = vector.shape_cast %19 : vector<16xf32> to vector<16x1xf32>
    %21 = math.log %20 : vector<16x1xf32>
    %22 = arith.addf %21, %15 : vector<16x1xf32>
    %23 = vector.broadcast %22 : vector<16x1xf32> to vector<16x128xf32>
    %24 = arith.subf %13, %23 : vector<16x128xf32>
    %c0_13 = arith.constant 0 : index
    %c0_14 = arith.constant 0 : index
    %25 = vector.load %arg6[%c0_13, %c0_14] : memref<16x128xf32, #tpu.memory_space<vmem>>, vector<16x128xf32>
    tpu.vector_store %arg6[%c0_13, %c0_14], %24 {strides = array<i32>} : memref<16x128xf32, #tpu.memory_space<vmem>>, vector<16x128xf32>,
    return
  }
  func.func @transform_0(%arg0: i32) -> (i32, i32) {
    %c0_i32 = arith.constant 0 : i32
    %c0_i32_0 = arith.constant 0 : i32
    return %arg0, %c0_i32 : i32, i32
  }
  func.func @transform_1(%arg0: i32) -> (i32, i32) {
    %c0_i32 = arith.constant 0 : i32
    %c0_i32_0 = arith.constant 0 : i32
    %c0_i32_1 = arith.constant 0 : i32
    return %c0_i32, %c0_i32_0 : i32, i32
  }
  func.func @transform_2(%arg0: i32) -> (i32, i32) {
    %c0_i32 = arith.constant 0 : i32
    %c0_i32_0 = arith.constant 0 : i32
    %c0_i32_1 = arith.constant 0 : i32
    return %c0_i32, %c0_i32_0 : i32, i32
  }
  func.func @transform_3(%arg0: i32) -> (i32, i32) {
    %c0_i32 = arith.constant 0 : i32
    %c0_i32_0 = arith.constant 0 : i32
    %c0_i32_1 = arith.constant 0 : i32
    return %c0_i32, %c0_i32_0 : i32, i32
  }
  func.func @transform_4(%arg0: i32) -> (i32, i32) {
    %c0_i32 = arith.constant 0 : i32
    %c0_i32_0 = arith.constant 0 : i32
    %c0_i32_1 = arith.constant 0 : i32
    return %c0_i32, %c0_i32_0 : i32, i32
  }
  func.func @transform_5(%arg0: i32) -> (i32, i32) {
    %c0_i32 = arith.constant 0 : i32
    %c0_i32_0 = arith.constant 0 : i32
    return %arg0, %c0_i32 : i32, i32
  }
}

</mosaic_0001>

<bundles_post_ra>
// kernel: deepspeech2_forward.7
= control target key start
LH: loop header
LB: loop body
LE: loop exit
PB: predicated region body
PF: predicated region fallthrough
CT: control target
= control target key end

     0   :  { %s1783_s1 = inlined_call_operand.vmem [shape: bf16[512,128], index: 1, kind: input, shape index: {}]   ;;  %s1784_s0 = inlined_call_operand.vmem [shape: bf16[160,512], index: 0, kind: input, shape index: {}]   ;;  %s1785_s2 = inlined_call_operand.vmem [shape: f32[1,128], index: 2, kind: input, shape index: {}]   ;;  %s1786_s3 = inlined_call_operand.vmem [shape: f32[1,128], index: 3, kind: input, shape index: {}]   ;;  %s1787_s4 = inlined_call_operand.vmem [shape: bf16[160,128], index: 4, kind: output, shape index: {}]  }
   0x1   :  { %v1370_v0 = vld [vmem:[%s1783_s1 + $0x40] sm:$0xff]   ;;  %v1374_v4 = vld [vmem:[%s1783_s1 + $0x48] sm:$0xff]   ;;  %v1378_v8 = vld [vmem:[%s1783_s1 + $0x50] sm:$0xff]  }
   0x2   :  { %v1371_v1 = vld [vmem:[%s1783_s1 + $0xc0] sm:$0xff]   ;;  %1218 = vmatprep.subr.bf16.mxu0 %v1370_v0  ;;  %v1375_v5 = vld [vmem:[%s1783_s1 + $0xc8] sm:$0xff]   ;;  %v1379_v9 = vld [vmem:[%s1783_s1 + $0xd0] sm:$0xff]  }
   0x3   :  { %v1372_v2 = vld [vmem:[%s1783_s1] sm:$0xff]   ;;  %1294 = vmatprep.subr.bf16.mxu1 %v1371_v1  ;;  %v1376_v6 = vld [vmem:[%s1783_s1 + $0x8] sm:$0xff]   ;;  %v1380_v10 = vld [vmem:[%s1783_s1 + $0x10] sm:$0xff]  }
   0x4   :  { %v1373_v3 = vld [vmem:[%s1783_s1 + $0x80] sm:$0xff]   ;;  %1219 = vmatpush3.bf16.msra.mxu0 %v1372_v2  ;;  %v1377_v7 = vld [vmem:[%s1783_s1 + $0x88] sm:$0xff]   ;;  %v1381_v11 = vld [vmem:[%s1783_s1 + $0x90] sm:$0xff]  }
   0x5   :  { %1295 = vmatpush3.bf16.msra.mxu1 %v1373_v3  ;;  %1220 = vmatprep.subr.bf16.mxu0 %v1374_v4  ;;  %v1382_v12 = vld [vmem:[%s1783_s1 + $0x58] sm:$0xff]   ;;  %v1386_v16 = vld [vmem:[%s1783_s1 + $0x60] sm:$0xff]   ;;  %v1390_v20 = vld [vmem:[%s1783_s1 + $0x68] sm:$0xff]  }
   0x6   :  { %1296 = vmatprep.subr.bf16.mxu1 %v1375_v5  ;;  %v1383_v13 = vld [vmem:[%s1783_s1 + $0xd8] sm:$0xff]   ;;  %v1387_v17 = vld [vmem:[%s1783_s1 + $0xe0] sm:$0xff]   ;;  %v1391_v21 = vld [vmem:[%s1783_s1 + $0xe8] sm:$0xff]  }
   0x7   :  { %v1384_v14 = vld [vmem:[%s1783_s1 + $0x18] sm:$0xff]   ;;  %v1388_v18 = vld [vmem:[%s1783_s1 + $0x20] sm:$0xff]   ;;  %v1392_v22 = vld [vmem:[%s1783_s1 + $0x28] sm:$0xff]  }
   0x8   :  { %1221 = vmatpush3.bf16.msra.mxu0 %v1376_v6  ;;  %v1385_v15 = vld [vmem:[%s1783_s1 + $0x98] sm:$0xff]   ;;  %v1389_v19 = vld [vmem:[%s1783_s1 + $0xa0] sm:$0xff]   ;;  %v1393_v23 = vld [vmem:[%s1783_s1 + $0xa8] sm:$0xff]  }
   0x9   :  { %1297 = vmatpush3.bf16.msra.mxu1 %v1377_v7  ;;  %1222 = vmatprep.subr.bf16.mxu0 %v1378_v8  ;;  %v1394_v24 = vld [vmem:[%s1783_s1 + $0x70] sm:$0xff]   ;;  %v1398_v28 = vld [vmem:[%s1783_s1 + $0x78] sm:$0xff]  }
   0xa   :  { %1298 = vmatprep.subr.bf16.mxu1 %v1379_v9  ;;  %v1395_v25 = vld [vmem:[%s1783_s1 + $0xf0] sm:$0xff]   ;;  %v1399_v29 = vld [vmem:[%s1783_s1 + $0xf8] sm:$0xff]  }
   0xb   :  { %v1396_v26 = vld [vmem:[%s1783_s1 + $0x30] sm:$0xff]   ;;  %v1400_v30 = vld [vmem:[%s1783_s1 + $0x38] sm:$0xff]  }
   0xc   :  { %1223 = vmatpush3.bf16.msra.mxu0 %v1380_v10  ;;  %v1397_v27 = vld [vmem:[%s1783_s1 + $0xb0] sm:$0xff]   ;;  %v1401_v31 = vld [vmem:[%s1783_s1 + $0xb8] sm:$0xff]  }
   0xd   :  { %1299 = vmatpush3.bf16.msra.mxu1 %v1381_v11  ;;  %1224 = vmatprep.subr.bf16.mxu0 %v1382_v12  ;;  %v1402_v32 = vld [vmem:[%s1784_s0] ss:$16 sps:$4 sm:$0xff]   ;;  %v1404_v33 = vld [vmem:[%s1784_s0 + $0x4] ss:$16 sps:$4 sm:$0xff]   ;;  %v1405_v34 = vld [vmem:[%s1784_s0 + $0x8] ss:$16 sps:$4 sm:$0xff]  }
   0xe   :  { %1300 = vmatprep.subr.bf16.mxu1 %v1383_v13  ;;  %v1407_v35 = vld [vmem:[%s1784_s0 + $0xc] ss:$16 sps:$4 sm:$0xff]   ;;  %590 = vmatprep.mubr.bf16.mxu0 %v1404_v33  ;;  %v1408_v36 = vld [vmem:[%s1784_s0 + $0x24] ss:$16 sps:$4 sm:$0xff]   ;;  %v1412_v38 = vld [vmem:[%s1784_s0 + $0x20] ss:$16 sps:$4 sm:$0xff]  }
   0xf   :  { %703 = vmatprep.mubr.bf16.mxu1 %v1407_v35  ;;  %v1410_v37 = vld [vmem:[%s1784_s0 + $0x2c] ss:$16 sps:$4 sm:$0xff]   ;;  %v1413_v39 = vld [vmem:[%s1784_s0 + $0x28] ss:$16 sps:$4 sm:$0xff]   ;;  %v1414_v40 = vld [vmem:[%s1784_s0 + $0x44] ss:$16 sps:$4 sm:$0xff]  }
  0x10   :  { %1225 = vmatpush3.bf16.msra.mxu0 %v1384_v14  ;;  %v1416_v41 = vld [vmem:[%s1784_s0 + $0x4c] ss:$16 sps:$4 sm:$0xff]   ;;  %v1418_v42 = vld [vmem:[%s1784_s0 + $0x40] ss:$16 sps:$4 sm:$0xff]   ;;  %v1419_v43 = vld [vmem:[%s1784_s0 + $0x48] ss:$16 sps:$4 sm:$0xff]  }
  0x11   :  { %1301 = vmatpush3.bf16.msra.mxu1 %v1385_v15  ;;  %1226 = vmatprep.subr.bf16.mxu0 %v1386_v16  ;;  %v1420_v44 = vld [vmem:[%s1784_s0 + $0x64] ss:$16 sps:$4 sm:$0xff]   ;;  %v1422_v45 = vld [vmem:[%s1784_s0 + $0x6c] ss:$16 sps:$4 sm:$0xff]   ;;  %v1424_v46 = vld [vmem:[%s1784_s0 + $0x60] ss:$16 sps:$4 sm:$0xff]  }
  0x12   :  { %1302 = vmatprep.subr.bf16.mxu1 %v1387_v17  ;;  %v1425_v47 = vld [vmem:[%s1784_s0 + $0x68] ss:$16 sps:$4 sm:$0xff]   ;;  %v1426_v48 = vld [vmem:[%s1784_s0 + $0x84] ss:$16 sps:$4 sm:$0xff]   ;;  %v1428_v49 = vld [vmem:[%s1784_s0 + $0x8c] ss:$16 sps:$4 sm:$0xff]  }
  0x13   :  { %v1430_v50 = vld [vmem:[%s1784_s0 + $0x80] ss:$16 sps:$4 sm:$0xff]   ;;  %v1431_v51 = vld [vmem:[%s1784_s0 + $0x88] ss:$16 sps:$4 sm:$0xff]   ;;  %v1432_v52 = vld [vmem:[%s1784_s0 + $0xa4] ss:$16 sps:$4 sm:$0xff]  }
  0x14   :  { %1227 = vmatpush3.bf16.msra.mxu0 %v1388_v18  ;;  %v1434_v53 = vld [vmem:[%s1784_s0 + $0xac] ss:$16 sps:$4 sm:$0xff]   ;;  %v1436_v54 = vld [vmem:[%s1784_s0 + $0xa0] ss:$16 sps:$4 sm:$0xff]   ;;  %v1437_v55 = vld [vmem:[%s1784_s0 + $0xa8] ss:$16 sps:$4 sm:$0xff]  }
  0x15   :  { %1303 = vmatpush3.bf16.msra.mxu1 %v1389_v19  ;;  %1228 = vmatprep.subr.bf16.mxu0 %v1390_v20  ;;  %v1438_v56 = vld [vmem:[%s1784_s0 + $0xc4] ss:$16 sps:$4 sm:$0xff]   ;;  %v1440_v57 = vld [vmem:[%s1784_s0 + $0xcc] ss:$16 sps:$4 sm:$0xff]   ;;  %v1442_v58 = vld [vmem:[%s1784_s0 + $0xc0] ss:$16 sps:$4 sm:$0xff]  }
  0x16   :  { %1304 = vmatprep.subr.bf16.mxu1 %v1391_v21  ;;  %v1443_v59 = vld [vmem:[%s1784_s0 + $0xc8] ss:$16 sps:$4 sm:$0xff]   ;;  %v1444_v60 = vld [vmem:[%s1784_s0 + $0xe4] ss:$16 sps:$4 sm:$0xff]   ;;  %v1446_v61 = vld [vmem:[%s1784_s0 + $0xec] ss:$16 sps:$4 sm:$0xff]  }
  0x17   :  { %v1448_v62 = vld [vmem:[%s1784_s0 + $0xe0] ss:$16 sps:$4 sm:$0xff]   ;;  %v1449_v63 = vld [vmem:[%s1784_s0 + $0xe8] ss:$16 sps:$4 sm:$0xff]   ;;  %v1450_v0 = vld [vmem:[%s1784_s0 + $0x104] ss:$16 sps:$4 sm:$0xff]  }
  0x18   :  { %1229 = vmatpush3.bf16.msra.mxu0 %v1392_v22  ;;  %v1452_v1 = vld [vmem:[%s1784_s0 + $0x10c] ss:$16 sps:$4 sm:$0xff]   ;;  %v1454_v2 = vld [vmem:[%s1784_s0 + $0x100] ss:$16 sps:$4 sm:$0xff]   ;;  %v1455_v3 = vld [vmem:[%s1784_s0 + $0x108] ss:$16 sps:$4 sm:$0xff]  }
  0x19   :  { %1305 = vmatpush3.bf16.msra.mxu1 %v1393_v23  ;;  %1230 = vmatprep.subr.bf16.mxu0 %v1394_v24  ;;  %v1456_v4 = vld [vmem:[%s1784_s0 + $0x124] ss:$16 sps:$4 sm:$0xff]   ;;  %v1458_v5 = vld [vmem:[%s1784_s0 + $0x12c] ss:$16 sps:$4 sm:$0xff]   ;;  %v1460_v6 = vld [vmem:[%s1784_s0 + $0x120] ss:$16 sps:$4 sm:$0xff]  }
  0x1a   :  { %1306 = vmatprep.subr.bf16.mxu1 %v1395_v25  ;;  %v1461_v7 = vld [vmem:[%s1784_s0 + $0x128] ss:$16 sps:$4 sm:$0xff]   ;;  %v1706_v17 = vld [vmem:[%s1785_s2] ss:$0 sm:$0xff] }
  0x1b   :  { %v1711_v22 = vld [vmem:[%s1786_s3] ss:$0 sm:$0xff] }
  0x1c   :  { %1231 = vmatpush3.bf16.msra.mxu0 %v1396_v26 }
  0x1d   :  { %1307 = vmatpush3.bf16.msra.mxu1 %v1397_v27  ;;  %1232 = vmatprep.subr.bf16.mxu0 %v1398_v28 }
  0x1e   :  { %1308 = vmatprep.subr.bf16.mxu1 %v1399_v29 }
  0x20   :  { %1233 = vmatpush3.bf16.msra.mxu0 %v1400_v30 }
  0x21   :  { %1309 = vmatpush3.bf16.msra.mxu1 %v1401_v31 }
  0x23   :  { %591 = vmatmul.mubr.bf16.vlgmr.msra.gmra.mrb[0].mxu0 %v1402_v32 }
  0x24   :  { %704 = vmatmul.mubr.bf16.vlgmr.msra.gmra.mrb[0].mxu1 %v1405_v34  ;;  %598 = vmatprep.mubr.bf16.mxu0 %v1408_v36 }
  0x25   :  { %711 = vmatprep.mubr.bf16.mxu1 %v1410_v37 }
  0x2b   :  { %599 = vmatmul.mubr.bf16.gmra.mrb[4].mxu0 %v1412_v38 }
  0x2c   :  { %712 = vmatmul.mubr.bf16.gmra.mrb[4].mxu1 %v1413_v39  ;;  %606 = vmatprep.mubr.bf16.mxu0 %v1414_v40 }
  0x2d   :  { %719 = vmatprep.mubr.bf16.mxu1 %v1416_v41 }
  0x33   :  { %607 = vmatmul.mubr.bf16.gmra.mrb[8].mxu0 %v1418_v42 }
  0x34   :  { %720 = vmatmul.mubr.bf16.gmra.mrb[8].mxu1 %v1419_v43  ;;  %614 = vmatprep.mubr.bf16.mxu0 %v1420_v44 }
  0x35   :  { %727 = vmatprep.mubr.bf16.mxu1 %v1422_v45 }
  0x3b   :  { %615 = vmatmul.mubr.bf16.gmra.mrb[12].mxu0 %v1424_v46 }
  0x3c   :  { %728 = vmatmul.mubr.bf16.gmra.mrb[12].mxu1 %v1425_v47  ;;  %622 = vmatprep.mubr.bf16.mxu0 %v1426_v48 }
  0x3d   :  { %735 = vmatprep.mubr.bf16.mxu1 %v1428_v49 }
  0x43   :  { %623 = vmatmul.mubr.bf16.gmra.mrb[16].mxu0 %v1430_v50 }
  0x44   :  { %736 = vmatmul.mubr.bf16.gmra.mrb[16].mxu1 %v1431_v51  ;;  %630 = vmatprep.mubr.bf16.mxu0 %v1432_v52 }
  0x45   :  { %743 = vmatprep.mubr.bf16.mxu1 %v1434_v53 }
  0x4b   :  { %631 = vmatmul.mubr.bf16.gmra.mrb[20].mxu0 %v1436_v54 }
  0x4c   :  { %744 = vmatmul.mubr.bf16.gmra.mrb[20].mxu1 %v1437_v55  ;;  %638 = vmatprep.mubr.bf16.mxu0 %v1438_v56 }
  0x4d   :  { %751 = vmatprep.mubr.bf16.mxu1 %v1440_v57 }
  0x53   :  { %639 = vmatmul.mubr.bf16.gmra.mrb[24].mxu0 %v1442_v58 }
  0x54   :  { %752 = vmatmul.mubr.bf16.gmra.mrb[24].mxu1 %v1443_v59  ;;  %646 = vmatprep.mubr.bf16.mxu0 %v1444_v60 }
  0x55   :  { %759 = vmatprep.mubr.bf16.mxu1 %v1446_v61 }
  0x5b   :  { %647 = vmatmul.mubr.bf16.gmra.mrb[28].mxu0 %v1448_v62 }
  0x5c   :  { %760 = vmatmul.mubr.bf16.gmra.mrb[28].mxu1 %v1449_v63  ;;  %654 = vmatprep.mubr.bf16.mxu0 %v1450_v0 }
  0x5d   :  { %767 = vmatprep.mubr.bf16.mxu1 %v1452_v1 }
  0x63   :  { %655 = vmatmul.mubr.bf16.gmra.mrb[32].mxu0 %v1454_v2 }
  0x64   :  { %768 = vmatmul.mubr.bf16.gmra.mrb[32].mxu1 %v1455_v3  ;;  %662 = vmatprep.mubr.bf16.mxu0 %v1456_v4 }
  0x65   :  { %775 = vmatprep.mubr.bf16.mxu1 %v1458_v5 }
  0x6b   :  { %663 = vmatmul.mubr.bf16.gmra.mrb[36].mxu0 %v1460_v6 }
  0x6c   :  { %776 = vmatmul.mubr.bf16.gmra.mrb[36].mxu1 %v1461_v7 }
  0xf6   :  { %v1234_v8 = vpop.f32.mrb[0].mxu0 }
  0xf7   :  { %v1310_v9 = vpop.f32.mrb[0].mxu1  ;;  %v1235_v10 = vpop.f32.mrb[1].mxu0 }
  0xf8   :  { %v1236_v11 = vadd.f32 %v1235_v10, %v1234_v8  ;;  %v1311_v12 = vpop.f32.mrb[1].mxu1  ;;  %v1237_v13 = vpop.f32.mrb[2].mxu0 }
  0xf9   :  { %v1312_v14 = vadd.f32 %v1311_v12, %v1310_v9  ;;  %v1313_v15 = vpop.f32.mrb[2].mxu1  ;;  %v1238_v16 = vpop.f32.mrb[3].mxu0 }
  0xfa   :  { %v1239_v18 = vadd.f32 %v1238_v16, %v1237_v13  ;;  %v1314_v19 = vpop.f32.mrb[3].mxu1 }
  0xfb   :  { %v706_v20 = vadd.f32 %v1312_v14, %v1236_v11  ;;  %v1315_v21 = vadd.f32 %v1314_v19, %v1313_v15 }
  0xfd   :  { %v854_v23 = vmul.f32 %v1706_v17, %v706_v20  ;;  %v709_v24 = vadd.f32 %v1315_v21, %v1239_v18 }
  0xfe   :  { %v1240_v25 = vpop.f32.mrb[4].mxu0 }
  0xff   :  { %v881_v26 = vadd.f32 %v1711_v22, %v854_v23  ;;  %v855_v27 = vmul.f32 %v1706_v17, %v709_v24  ;;  %v1316_v28 = vpop.f32.mrb[4].mxu1  ;;  %v1241_v29 = vpop.f32.mrb[5].mxu0 }
 0x100   :  { %v1242_v30 = vadd.f32 %v1241_v29, %v1240_v25  ;;  %v1317_v31 = vpop.f32.mrb[5].mxu1  ;;  %v1243_v32 = vpop.f32.mrb[6].mxu0 }
 0x101   :  { %v901_v33 = vmax.f32 %v881_v26, 0.0  ;;  %v882_v34 = vadd.f32 %v1711_v22, %v855_v27  ;;  %v1318_v35 = vadd.f32 %v1317_v31, %v1316_v28  ;;  %v1319_v36 = vpop.f32.mrb[6].mxu1  ;;  %v1244_v37 = vpop.f32.mrb[7].mxu0 }
 0x102   :  { %v1245_v38 = vadd.f32 %v1244_v37, %v1243_v32  ;;  %v1320_v39 = vpop.f32.mrb[7].mxu1 }
 0x103   :  { %v902_v40 = vmax.f32 %v882_v34, 0.0  ;;  %v714_v41 = vadd.f32 %v1318_v35, %v1242_v30  ;;  %v1321_v42 = vadd.f32 %v1320_v39, %v1319_v36  ;;  %v921_v43 = vmin.f32 %v901_v33, 20.0 }
 0x105   :  { %v922_v44 = vmin.f32 %v902_v40, 20.0  ;;  %v856_v45 = vmul.f32 %v1706_v17, %v714_v41  ;;  %v717_v46 = vadd.f32 %v1321_v42, %v1245_v38 }
 0x106   :  { %v1246_v47 = vpop.f32.mrb[8].mxu0 }
 0x107   :  { %v1162_v48 = vpack.c.bf16 %v922_v44, %v921_v43  ;;  %v883_v49 = vadd.f32 %v1711_v22, %v856_v45  ;;  %v857_v50 = vmul.f32 %v1706_v17, %v717_v46  ;;  %v1322_v51 = vpop.f32.mrb[8].mxu1  ;;  %v1247_v52 = vpop.f32.mrb[9].mxu0 }
 0x108   :  { %v1248_v53 = vadd.f32 %v1247_v52, %v1246_v47  ;;  %v1323_v54 = vpop.f32.mrb[9].mxu1  ;;  %v1249_v55 = vpop.f32.mrb[10].mxu0 }
 0x109   :  { %1163 = vst [vmem:[%s1787_s4] sm:$0xff] %v1162_v48   ;;  %v903_v56 = vmax.f32 %v883_v49, 0.0  ;;  %v884_v57 = vadd.f32 %v1711_v22, %v857_v50  ;;  %v1324_v58 = vadd.f32 %v1323_v54, %v1322_v51  ;;  %v1325_v59 = vpop.f32.mrb[10].mxu1  ;;  %v1250_v60 = vpop.f32.mrb[11].mxu0 }
 0x10a   :  { %v1251_v61 = vadd.f32 %v1250_v60, %v1249_v55  ;;  %v1326_v62 = vpop.f32.mrb[11].mxu1 }
 0x10b   :  { %v904_v63 = vmax.f32 %v884_v57, 0.0  ;;  %v722_v0 = vadd.f32 %v1324_v58, %v1248_v53  ;;  %v1327_v1 = vadd.f32 %v1326_v62, %v1325_v59  ;;  %v923_v2 = vmin.f32 %v903_v56, 20.0 }
 0x10d   :  { %v924_v3 = vmin.f32 %v904_v63, 20.0  ;;  %v858_v4 = vmul.f32 %v1706_v17, %v722_v0  ;;  %v725_v5 = vadd.f32 %v1327_v1, %v1251_v61 }
 0x10e   :  { %v1252_v6 = vpop.f32.mrb[12].mxu0 }
 0x10f   :  { %v1167_v7 = vpack.c.bf16 %v924_v3, %v923_v2  ;;  %v885_v8 = vadd.f32 %v1711_v22, %v858_v4  ;;  %v859_v9 = vmul.f32 %v1706_v17, %v725_v5  ;;  %v1328_v10 = vpop.f32.mrb[12].mxu1  ;;  %v1253_v11 = vpop.f32.mrb[13].mxu0 }
 0x110   :  { %v1254_v12 = vadd.f32 %v1253_v11, %v1252_v6  ;;  %v1329_v13 = vpop.f32.mrb[13].mxu1  ;;  %v1255_v14 = vpop.f32.mrb[14].mxu0 }
 0x111   :  { %1209 = vst [vmem:[%s1787_s4 + $0x8] sm:$0xff] %v1167_v7   ;;  %v905_v15 = vmax.f32 %v885_v8, 0.0  ;;  %v886_v16 = vadd.f32 %v1711_v22, %v859_v9  ;;  %v1330_v18 = vadd.f32 %v1329_v13, %v1328_v10  ;;  %v1331_v19 = vpop.f32.mrb[14].mxu1  ;;  %v1256_v20 = vpop.f32.mrb[15].mxu0 }
 0x112   :  { %v1257_v21 = vadd.f32 %v1256_v20, %v1255_v14  ;;  %v1332_v23 = vpop.f32.mrb[15].mxu1 }
 0x113   :  { %v906_v24 = vmax.f32 %v886_v16, 0.0  ;;  %v730_v25 = vadd.f32 %v1330_v18, %v1254_v12  ;;  %v1333_v26 = vadd.f32 %v1332_v23, %v1331_v19  ;;  %v925_v27 = vmin.f32 %v905_v15, 20.0 }
 0x115   :  { %v926_v28 = vmin.f32 %v906_v24, 20.0  ;;  %v860_v29 = vmul.f32 %v1706_v17, %v730_v25  ;;  %v733_v30 = vadd.f32 %v1333_v26, %v1257_v21 }
 0x116   :  { %v1258_v31 = vpop.f32.mrb[16].mxu0 }
 0x117   :  { %v1172_v32 = vpack.c.bf16 %v926_v28, %v925_v27  ;;  %v887_v33 = vadd.f32 %v1711_v22, %v860_v29  ;;  %v861_v34 = vmul.f32 %v1706_v17, %v733_v30  ;;  %v1334_v35 = vpop.f32.mrb[16].mxu1  ;;  %v1259_v36 = vpop.f32.mrb[17].mxu0 }
 0x118   :  { %v1260_v37 = vadd.f32 %v1259_v36, %v1258_v31  ;;  %v1335_v38 = vpop.f32.mrb[17].mxu1  ;;  %v1261_v39 = vpop.f32.mrb[18].mxu0 }
 0x119   :  { %1210 = vst [vmem:[%s1787_s4 + $0x10] sm:$0xff] %v1172_v32   ;;  %v907_v40 = vmax.f32 %v887_v33, 0.0  ;;  %v888_v41 = vadd.f32 %v1711_v22, %v861_v34  ;;  %v1336_v42 = vadd.f32 %v1335_v38, %v1334_v35  ;;  %v1337_v43 = vpop.f32.mrb[18].mxu1  ;;  %v1262_v44 = vpop.f32.mrb[19].mxu0 }
 0x11a   :  { %v1263_v45 = vadd.f32 %v1262_v44, %v1261_v39  ;;  %v1338_v46 = vpop.f32.mrb[19].mxu1 }
 0x11b   :  { %v908_v47 = vmax.f32 %v888_v41, 0.0  ;;  %v738_v48 = vadd.f32 %v1336_v42, %v1260_v37  ;;  %v1339_v49 = vadd.f32 %v1338_v46, %v1337_v43  ;;  %v927_v50 = vmin.f32 %v907_v40, 20.0 }
 0x11d   :  { %v928_v51 = vmin.f32 %v908_v47, 20.0  ;;  %v862_v52 = vmul.f32 %v1706_v17, %v738_v48  ;;  %v741_v53 = vadd.f32 %v1339_v49, %v1263_v45 }
 0x11e   :  { %v1264_v54 = vpop.f32.mrb[20].mxu0 }
 0x11f   :  { %v1177_v55 = vpack.c.bf16 %v928_v51, %v927_v50  ;;  %v889_v56 = vadd.f32 %v1711_v22, %v862_v52  ;;  %v863_v57 = vmul.f32 %v1706_v17, %v741_v53  ;;  %v1340_v58 = vpop.f32.mrb[20].mxu1  ;;  %v1265_v59 = vpop.f32.mrb[21].mxu0 }
 0x120   :  { %v1266_v60 = vadd.f32 %v1265_v59, %v1264_v54  ;;  %v1341_v61 = vpop.f32.mrb[21].mxu1  ;;  %v1267_v62 = vpop.f32.mrb[22].mxu0 }
 0x121   :  { %1211 = vst [vmem:[%s1787_s4 + $0x18] sm:$0xff] %v1177_v55   ;;  %v909_v63 = vmax.f32 %v889_v56, 0.0  ;;  %v890_v0 = vadd.f32 %v1711_v22, %v863_v57  ;;  %v1342_v1 = vadd.f32 %v1341_v61, %v1340_v58  ;;  %v1343_v2 = vpop.f32.mrb[22].mxu1  ;;  %v1268_v3 = vpop.f32.mrb[23].mxu0 }
 0x122   :  { %v1269_v4 = vadd.f32 %v1268_v3, %v1267_v62  ;;  %v1344_v5 = vpop.f32.mrb[23].mxu1 }
 0x123   :  { %v910_v6 = vmax.f32 %v890_v0, 0.0  ;;  %v746_v7 = vadd.f32 %v1342_v1, %v1266_v60  ;;  %v1345_v8 = vadd.f32 %v1344_v5, %v1343_v2  ;;  %v929_v9 = vmin.f32 %v909_v63, 20.0 }
 0x125   :  { %v930_v10 = vmin.f32 %v910_v6, 20.0  ;;  %v864_v11 = vmul.f32 %v1706_v17, %v746_v7  ;;  %v749_v12 = vadd.f32 %v1345_v8, %v1269_v4 }
 0x126   :  { %v1270_v13 = vpop.f32.mrb[24].mxu0 }
 0x127   :  { %v1182_v14 = vpack.c.bf16 %v930_v10, %v929_v9  ;;  %v891_v15 = vadd.f32 %v1711_v22, %v864_v11  ;;  %v865_v16 = vmul.f32 %v1706_v17, %v749_v12  ;;  %v1346_v18 = vpop.f32.mrb[24].mxu1  ;;  %v1271_v19 = vpop.f32.mrb[25].mxu0 }
 0x128   :  { %v1272_v20 = vadd.f32 %v1271_v19, %v1270_v13  ;;  %v1347_v21 = vpop.f32.mrb[25].mxu1  ;;  %v1273_v23 = vpop.f32.mrb[26].mxu0 }
 0x129   :  { %1212 = vst [vmem:[%s1787_s4 + $0x20] sm:$0xff] %v1182_v14   ;;  %v911_v24 = vmax.f32 %v891_v15, 0.0  ;;  %v892_v25 = vadd.f32 %v1711_v22, %v865_v16  ;;  %v1348_v26 = vadd.f32 %v1347_v21, %v1346_v18  ;;  %v1349_v27 = vpop.f32.mrb[26].mxu1  ;;  %v1274_v28 = vpop.f32.mrb[27].mxu0 }
 0x12a   :  { %v1275_v29 = vadd.f32 %v1274_v28, %v1273_v23  ;;  %v1350_v30 = vpop.f32.mrb[27].mxu1 }
 0x12b   :  { %v912_v31 = vmax.f32 %v892_v25, 0.0  ;;  %v754_v32 = vadd.f32 %v1348_v26, %v1272_v20  ;;  %v1351_v33 = vadd.f32 %v1350_v30, %v1349_v27  ;;  %v931_v34 = vmin.f32 %v911_v24, 20.0 }
 0x12d   :  { %v932_v35 = vmin.f32 %v912_v31, 20.0  ;;  %v866_v36 = vmul.f32 %v1706_v17, %v754_v32  ;;  %v757_v37 = vadd.f32 %v1351_v33, %v1275_v29 }
 0x12e   :  { %v1276_v38 = vpop.f32.mrb[28].mxu0 }
 0x12f   :  { %v1187_v39 = vpack.c.bf16 %v932_v35, %v931_v34  ;;  %v893_v40 = vadd.f32 %v1711_v22, %v866_v36  ;;  %v867_v41 = vmul.f32 %v1706_v17, %v757_v37  ;;  %v1352_v42 = vpop.f32.mrb[28].mxu1  ;;  %v1277_v43 = vpop.f32.mrb[29].mxu0 }
 0x130   :  { %v1278_v44 = vadd.f32 %v1277_v43, %v1276_v38  ;;  %v1353_v45 = vpop.f32.mrb[29].mxu1  ;;  %v1279_v46 = vpop.f32.mrb[30].mxu0 }
 0x131   :  { %1213 = vst [vmem:[%s1787_s4 + $0x28] sm:$0xff] %v1187_v39   ;;  %v913_v47 = vmax.f32 %v893_v40, 0.0  ;;  %v894_v48 = vadd.f32 %v1711_v22, %v867_v41  ;;  %v1354_v49 = vadd.f32 %v1353_v45, %v1352_v42  ;;  %v1355_v50 = vpop.f32.mrb[30].mxu1  ;;  %v1280_v51 = vpop.f32.mrb[31].mxu0 }
 0x132   :  { %v1281_v52 = vadd.f32 %v1280_v51, %v1279_v46  ;;  %v1356_v53 = vpop.f32.mrb[31].mxu1 }
 0x133   :  { %v914_v54 = vmax.f32 %v894_v48, 0.0  ;;  %v762_v55 = vadd.f32 %v1354_v49, %v1278_v44  ;;  %v1357_v56 = vadd.f32 %v1356_v53, %v1355_v50  ;;  %v933_v57 = vmin.f32 %v913_v47, 20.0 }
 0x135   :  { %v934_v58 = vmin.f32 %v914_v54, 20.0  ;;  %v868_v59 = vmul.f32 %v1706_v17, %v762_v55  ;;  %v765_v60 = vadd.f32 %v1357_v56, %v1281_v52 }
 0x136   :  { %v1282_v61 = vpop.f32.mrb[32].mxu0 }
 0x137   :  { %v1192_v62 = vpack.c.bf16 %v934_v58, %v933_v57  ;;  %v895_v63 = vadd.f32 %v1711_v22, %v868_v59  ;;  %v869_v0 = vmul.f32 %v1706_v17, %v765_v60  ;;  %v1358_v1 = vpop.f32.mrb[32].mxu1  ;;  %v1283_v2 = vpop.f32.mrb[33].mxu0 }
 0x138   :  { %v1284_v3 = vadd.f32 %v1283_v2, %v1282_v61  ;;  %v1359_v4 = vpop.f32.mrb[33].mxu1  ;;  %v1285_v5 = vpop.f32.mrb[34].mxu0 }
 0x139   :  { %1214 = vst [vmem:[%s1787_s4 + $0x30] sm:$0xff] %v1192_v62   ;;  %v915_v6 = vmax.f32 %v895_v63, 0.0  ;;  %v896_v7 = vadd.f32 %v1711_v22, %v869_v0  ;;  %v1360_v8 = vadd.f32 %v1359_v4, %v1358_v1  ;;  %v1361_v9 = vpop.f32.mrb[34].mxu1  ;;  %v1286_v10 = vpop.f32.mrb[35].mxu0 }
 0x13a   :  { %v1287_v11 = vadd.f32 %v1286_v10, %v1285_v5  ;;  %v1362_v12 = vpop.f32.mrb[35].mxu1 }
 0x13b   :  { %v916_v13 = vmax.f32 %v896_v7, 0.0  ;;  %v770_v14 = vadd.f32 %v1360_v8, %v1284_v3  ;;  %v1363_v15 = vadd.f32 %v1362_v12, %v1361_v9  ;;  %v935_v16 = vmin.f32 %v915_v6, 20.0 }
 0x13d   :  { %v936_v18 = vmin.f32 %v916_v13, 20.0  ;;  %v870_v19 = vmul.f32 %v1706_v17, %v770_v14  ;;  %v773_v20 = vadd.f32 %v1363_v15, %v1287_v11 }
 0x13e   :  { %v1288_v21 = vpop.f32.mrb[36].mxu0 }
 0x13f   :  { %v1197_v23 = vpack.c.bf16 %v936_v18, %v935_v16  ;;  %v897_v24 = vadd.f32 %v1711_v22, %v870_v19  ;;  %v871_v25 = vmul.f32 %v1706_v17, %v773_v20  ;;  %v1364_v26 = vpop.f32.mrb[36].mxu1  ;;  %v1289_v27 = vpop.f32.mrb[37].mxu0 }
 0x140   :  { %v1290_v28 = vadd.f32 %v1289_v27, %v1288_v21  ;;  %v1365_v29 = vpop.f32.mrb[37].mxu1  ;;  %v1291_v30 = vpop.f32.mrb[38].mxu0 }
 0x141   :  { %1215 = vst [vmem:[%s1787_s4 + $0x38] sm:$0xff] %v1197_v23   ;;  %v917_v31 = vmax.f32 %v897_v24, 0.0  ;;  %v898_v32 = vadd.f32 %v1711_v22, %v871_v25  ;;  %v1366_v33 = vadd.f32 %v1365_v29, %v1364_v26  ;;  %v1367_v34 = vpop.f32.mrb[38].mxu1  ;;  %v1292_v35 = vpop.f32.mrb[39].mxu0 }
 0x142   :  { %v1293_v36 = vadd.f32 %v1292_v35, %v1291_v30  ;;  %v1368_v37 = vpop.f32.mrb[39].mxu1 }
 0x143   :  { %v918_v38 = vmax.f32 %v898_v32, 0.0  ;;  %v778_v39 = vadd.f32 %v1366_v33, %v1290_v28  ;;  %v1369_v40 = vadd.f32 %v1368_v37, %v1367_v34  ;;  %v937_v41 = vmin.f32 %v917_v31, 20.0 }
 0x145   :  { %v938_v42 = vmin.f32 %v918_v38, 20.0  ;;  %v872_v43 = vmul.f32 %v1706_v17, %v778_v39  ;;  %v781_v44 = vadd.f32 %v1369_v40, %v1293_v36 }
 0x147   :  { %v1202_v45 = vpack.c.bf16 %v938_v42, %v937_v41  ;;  %v899_v46 = vadd.f32 %v1711_v22, %v872_v43  ;;  %v873_v47 = vmul.f32 %v1706_v17, %v781_v44 }
 0x149   :  { %1216 = vst [vmem:[%s1787_s4 + $0x40] sm:$0xff] %v1202_v45   ;;  %v919_v48 = vmax.f32 %v899_v46, 0.0  ;;  %v900_v49 = vadd.f32 %v1711_v22, %v873_v47 }
 0x14b   :  { %v920_v50 = vmax.f32 %v900_v49, 0.0  ;;  %v939_v51 = vmin.f32 %v919_v48, 20.0 }
 0x14d   :  { %v940_v52 = vmin.f32 %v920_v50, 20.0 }
 0x14f   :  { %v1207_v53 = vpack.c.bf16 %v940_v52, %v939_v51 }
 0x151   :  { %1217 = vst [vmem:[%s1787_s4 + $0x48] sm:$0xff] %v1207_v53  }

// kernel: deepspeech2_forward.8
= control target key start
LH: loop header
LB: loop body
LE: loop exit
PB: predicated region body
PF: predicated region fallthrough
CT: control target
= control target key end

     0   :  { %s1543_s15 = smov 0   ;;  %s1545_s16 = smov 0   ;;  %s1731_s0 = inlined_call_operand.vmem [shape: bf16[80,7680], index: 0, kind: input, shape index: {}]   ;;  %s1732_s1 = inlined_call_operand.vmem [shape: bf16[7680,128], index: 1, kind: input, shape index: {}]   ;;  %s1733_s2 = inlined_call_operand.vmem [shape: f32[1,128], index: 2, kind: input, shape index: {}]   ;;  %s1734_s3 = inlined_call_operand.vmem [shape: f32[1,128], index: 3, kind: input, shape index: {}]   ;;  %s1735_s4 = inlined_call_operand.vmem [shape: bf16[80,128], index: 4, kind: output, shape index: {}]  }
   0x1   :  { %s1547_s17 = smov 0   ;;  %s1549_s18 = smov 0  }
   0x2   :  { %s1551_s19 = smov 0  }
   0x3 LB: > { %s26_s20 = sadd.s32 1, %s1511_s18  ;;  %p49_p1 = scmp.ne.s32.totalorder %s1503_s16, %s1499_s15  ;;  %s1515_s19 = sphi %s1551_s19, %s14_s19   ;;  %s1511_s18 = sphi %s1549_s18, %s1739_s18   ;;  %s1507_s17 = sphi %s1547_s17, %s1738_s17   ;;  %s1503_s16 = sphi %s1545_s16, %s1737_s16   ;;  %s1499_s15 = sphi %s1543_s15, %s1736_s15  }
   0x4   : > { %p27_p0 = scmp.ge.s32.totalorder %s26_s20, 15  ;;  %p50_p2 = scmp.eq.s32.totalorder %s1515_s19, 0 }
   0x5   : > { %s42_s22 = sadd.s32 1, %s1503_s16  ;;  %p1164_p5 = scmp.ge.s32.totalorder %s1515_s19, 15 }
   0x6   : > { %s1741_s20 = smov (%p27_p0, %s26_s20), 0  ;;  %p51_p3 = por %p50_p2, %p49_p1 }
   0x7   : > { %s38_s21 = ssub.s32 %s1511_s18, %s1741_s20  ;;  %195 = sbr.rel (%p1164_p5) target bundleno = 29 (0x1d), region = 24 }
   0x8   : > { %p40_p4 = scmp.eq.s32.totalorder %s38_s21, 0 }
   0xa   : > { %s1578_s23 = scalar_select %p40_p4, %s1503_s16, %s42_s22  }
   0xe   : > { %198 = sbr.rel (!%p51_p3) target bundleno = 29 (0x1d), region = 28  ;;  %s200_s24 = sand.u32 (%p51_p3), 1, %s1503_s16  }
   0xf   : > { %s1240_s25 = sshll.u32 (%p51_p3), %s1511_s18, 4  ;;  %s1372_s26 = smul.u32 (%p51_p3), 160, %s200_s24 }
  0x10   : > { %s1586_s29 = scalar_lea.vmem (%p51_p3), %s1731_s0, %s1240_s25 }
  0x11   : > { %v221_v0 = vld [vmem:[%s1586_s29] sm:$0xff] (%p51_p3)  ;;  %v223_v1 = vld [vmem:[%s1586_s29 + $0x8] sm:$0xff] (%p51_p3)  ;;  %v225_v2 = vld [vmem:[%s1586_s29 + $0xf0] sm:$0xff] (%p51_p3)  ;;  %s1594_s30 = scalar_lea.vmem (%p51_p3), [#allocation3], %s1372_s26 }
  0x12   : > { %v227_v3 = vld [vmem:[%s1586_s29 + $0xf8] sm:$0xff] (%p51_p3)  ;;  %v229_v4 = vld [vmem:[%s1586_s29 + $0x1e0] sm:$0xff] (%p51_p3)  ;;  %v231_v5 = vld [vmem:[%s1586_s29 + $0x1e8] sm:$0xff] (%p51_p3)  ;;  %222 = vst [vmem:[%s1594_s30] sm:$0xff] (%p51_p3), %v221_v0 }
  0x13   : > { %224 = vst [vmem:[%s1594_s30 + $0x8] sm:$0xff] (%p51_p3), %v223_v1  ;;  %226 = vst [vmem:[%s1594_s30 + $0x10] sm:$0xff] (%p51_p3), %v225_v2  ;;  %v233_v6 = vld [vmem:[%s1586_s29 + $0x2d0] sm:$0xff] (%p51_p3)  ;;  %v235_v7 = vld [vmem:[%s1586_s29 + $0x2d8] sm:$0xff] (%p51_p3) }
  0x14   : > { %228 = vst [vmem:[%s1594_s30 + $0x18] sm:$0xff] (%p51_p3), %v227_v3  ;;  %230 = vst [vmem:[%s1594_s30 + $0x20] sm:$0xff] (%p51_p3), %v229_v4  ;;  %v237_v8 = vld [vmem:[%s1586_s29 + $0x3c0] sm:$0xff] (%p51_p3)  ;;  %v239_v9 = vld [vmem:[%s1586_s29 + $0x3c8] sm:$0xff] (%p51_p3) }
  0x15   : > { %232 = vst [vmem:[%s1594_s30 + $0x28] sm:$0xff] %v231_v5  ;;  %234 = vst [vmem:[%s1594_s30 + $0x30] sm:$0xff] %v233_v6  ;;  %v241_v10 = vld [vmem:[%s1586_s29 + $0x4b0] sm:$0xff]  ;;  %v243_v11 = vld [vmem:[%s1586_s29 + $0x4b8] sm:$0xff] }
  0x16   : > { %236 = vst [vmem:[%s1594_s30 + $0x38] sm:$0xff] %v235_v7  ;;  %238 = vst [vmem:[%s1594_s30 + $0x40] sm:$0xff] %v237_v8  ;;  %v245_v12 = vld [vmem:[%s1586_s29 + $0x5a0] sm:$0xff]  ;;  %v247_v13 = vld [vmem:[%s1586_s29 + $0x5a8] sm:$0xff] }
  0x17   : > { %240 = vst [vmem:[%s1594_s30 + $0x48] sm:$0xff] %v239_v9  ;;  %242 = vst [vmem:[%s1594_s30 + $0x50] sm:$0xff] %v241_v10  ;;  %v249_v14 = vld [vmem:[%s1586_s29 + $0x690] sm:$0xff]  ;;  %v251_v15 = vld [vmem:[%s1586_s29 + $0x698] sm:$0xff] }
  0x18   : > { %244 = vst [vmem:[%s1594_s30 + $0x58] sm:$0xff] %v243_v11  ;;  %246 = vst [vmem:[%s1594_s30 + $0x60] sm:$0xff] %v245_v12  ;;  %v253_v16 = vld [vmem:[%s1586_s29 + $0x780] sm:$0xff]  ;;  %v255_v17 = vld [vmem:[%s1586_s29 + $0x788] sm:$0xff] }
  0x19   : > { %248 = vst [vmem:[%s1594_s30 + $0x68] sm:$0xff] %v247_v13  ;;  %250 = vst [vmem:[%s1594_s30 + $0x70] sm:$0xff] %v249_v14  ;;  %v257_v18 = vld [vmem:[%s1586_s29 + $0x870] sm:$0xff]  ;;  %v259_v19 = vld [vmem:[%s1586_s29 + $0x878] sm:$0xff] }
  0x1a   : > { %252 = vst [vmem:[%s1594_s30 + $0x78] sm:$0xff] %v251_v15  ;;  %254 = vst [vmem:[%s1594_s30 + $0x80] sm:$0xff] %v253_v16 }
  0x1b   : > { %256 = vst [vmem:[%s1594_s30 + $0x88] sm:$0xff] %v255_v17  ;;  %258 = vst [vmem:[%s1594_s30 + $0x90] sm:$0xff] %v257_v18 }
  0x1c   : > { %260 = vst [vmem:[%s1594_s30 + $0x98] sm:$0xff] %v259_v19 }
  0x1d PF: > { %p1167_p6 = scmp.ge.s32.totalorder %s1515_s19, 1  ;;  %p277_p7 = scmp.lt.s32.totalorder %s1515_s19, 16 }
  0x1f   : > { %p278_p8 = pnand %p1167_p6, %p277_p7 }
  0x20   : > { %s284_s5 = sand.u32 (!%p278_p8), 1, %s1499_s15   ;;  %s1168_s6 = sshll.u32 (!%p278_p8), %s1507_s17, 6 }
  0x21   : > { %281 = sbr.rel (%p278_p8) target bundleno = 354 (0x162), region = 55  ;;  %p329_p9 = scmp.lt.s32.totalorder (!%p278_p8), %s1168_s6, 959 }
  0x22   : > { %s1373_s7 = smul.u32 (!%p278_p8), 160, %s284_s5  ;;  %p1170_p10 = scmp.ne.s32.totalorder (!%p278_p8), %s1507_s17, 0 }
  0x24   : > { %s1639_s12 = scalar_lea.vmem (!%p278_p8), [#allocation3], %s1373_s7 }
  0x28   : > { %s1743_s6 = smov (!%p329_p9, %s1168_s6), 959  ;;  %356 = sbr.rel (%p1170_p10) target bundleno = 47 (0x2f), region = 63 }
  0x29   : > { %s1169_s8 = sshll.u32 %s1743_s6, 2  ;;  %v1517_v20 = vmov (!%p1170_p10), 0.0  }
  0x2a   : > { %s1637_s11 = scalar_lea.vmem %s1732_s1, %s1169_s8  ;;  %357 = vst [vmem:[#allocation2] sm:$0xff] (!%p1170_p10), %v1517_v20  ;;  %358 = vst [vmem:[#allocation2 + $0x8] sm:$0xff] (!%p1170_p10), %v1517_v20 }
  0x2b   : > { %359 = vst [vmem:[#allocation2 + $0x10] sm:$0xff] (!%p1170_p10), %v1517_v20  ;;  %360 = vst [vmem:[#allocation2 + $0x18] sm:$0xff] (!%p1170_p10), %v1517_v20 }
  0x2c   : > { %361 = vst [vmem:[#allocation2 + $0x20] sm:$0xff] (!%p1170_p10), %v1517_v20  ;;  %362 = vst [vmem:[#allocation2 + $0x28] sm:$0xff] (!%p1170_p10), %v1517_v20 }
  0x2d   : > { %363 = vst [vmem:[#allocation2 + $0x30] sm:$0xff] (!%p1170_p10), %v1517_v20  ;;  %364 = vst [vmem:[#allocation2 + $0x38] sm:$0xff] (!%p1170_p10), %v1517_v20 }
  0x2e   : > { %365 = vst [vmem:[#allocation2 + $0x40] sm:$0xff] (!%p1170_p10), %v1517_v20  ;;  %366 = vst [vmem:[#allocation2 + $0x48] sm:$0xff] (!%p1170_p10), %v1517_v20 }
  0x2f PF: > { %v1415_v21 = vld [vmem:[%s1637_s11 + $0x40] sm:$0xff]   ;;  %v1419_v25 = vld [vmem:[%s1637_s11 + $0x48] sm:$0xff]   ;;  %v1423_v29 = vld [vmem:[%s1637_s11 + $0x50] sm:$0xff]   ;;  %p1223_p11 = scmp.ne.s32.totalorder %s1507_s17, 14 }
  0x30   : > { %v1416_v22 = vld [vmem:[%s1637_s11 + $0xc0] sm:$0xff]   ;;  %1280 = vmatprep.subr.bf16.mxu0 %v1415_v21  ;;  %v1420_v26 = vld [vmem:[%s1637_s11 + $0xc8] sm:$0xff]   ;;  %v1424_v30 = vld [vmem:[%s1637_s11 + $0xd0] sm:$0xff]  }
  0x31   : > { %v1417_v23 = vld [vmem:[%s1637_s11] sm:$0xff]   ;;  %1326 = vmatprep.subr.bf16.mxu1 %v1416_v22  ;;  %v1421_v27 = vld [vmem:[%s1637_s11 + $0x8] sm:$0xff]   ;;  %v1425_v31 = vld [vmem:[%s1637_s11 + $0x10] sm:$0xff]  }
  0x32   : > { %v1418_v24 = vld [vmem:[%s1637_s11 + $0x80] sm:$0xff]   ;;  %1281 = vmatpush3.bf16.msra.mxu0 %v1417_v23  ;;  %v1422_v28 = vld [vmem:[%s1637_s11 + $0x88] sm:$0xff]   ;;  %v1426_v32 = vld [vmem:[%s1637_s11 + $0x90] sm:$0xff]  }
  0x33   : > { %1327 = vmatpush3.bf16.msra.mxu1 %v1418_v24  ;;  %1282 = vmatprep.subr.bf16.mxu0 %v1419_v25  ;;  %v1427_v33 = vld [vmem:[%s1637_s11 + $0x58] sm:$0xff]   ;;  %v1431_v37 = vld [vmem:[%s1637_s11 + $0x60] sm:$0xff]   ;;  %v1435_v41 = vld [vmem:[%s1637_s11 + $0x68] sm:$0xff]  }
  0x34   : > { %1328 = vmatprep.subr.bf16.mxu1 %v1420_v26  ;;  %v1428_v34 = vld [vmem:[%s1637_s11 + $0xd8] sm:$0xff]   ;;  %v1432_v38 = vld [vmem:[%s1637_s11 + $0xe0] sm:$0xff]   ;;  %v1436_v42 = vld [vmem:[%s1637_s11 + $0xe8] sm:$0xff]  }
  0x35   : > { %v1429_v35 = vld [vmem:[%s1637_s11 + $0x18] sm:$0xff]   ;;  %v1433_v39 = vld [vmem:[%s1637_s11 + $0x20] sm:$0xff]   ;;  %v1437_v43 = vld [vmem:[%s1637_s11 + $0x28] sm:$0xff]  }
  0x36   : > { %1283 = vmatpush3.bf16.msra.mxu0 %v1421_v27  ;;  %v1430_v36 = vld [vmem:[%s1637_s11 + $0x98] sm:$0xff]   ;;  %v1434_v40 = vld [vmem:[%s1637_s11 + $0xa0] sm:$0xff]   ;;  %v1438_v44 = vld [vmem:[%s1637_s11 + $0xa8] sm:$0xff]  }
  0x37   : > { %1329 = vmatpush3.bf16.msra.mxu1 %v1422_v28  ;;  %1284 = vmatprep.subr.bf16.mxu0 %v1423_v29  ;;  %v1439_v45 = vld [vmem:[%s1637_s11 + $0x70] sm:$0xff]   ;;  %v1443_v49 = vld [vmem:[%s1637_s11 + $0x78] sm:$0xff]   ;;  %v387_v18 = vld [vmem:[#allocation2] sm:$0xff] }
  0x38   : > { %1330 = vmatprep.subr.bf16.mxu1 %v1424_v30  ;;  %v1440_v46 = vld [vmem:[%s1637_s11 + $0xf0] sm:$0xff]   ;;  %v1444_v50 = vld [vmem:[%s1637_s11 + $0xf8] sm:$0xff]   ;;  %v388_v23 = vld [vmem:[#allocation2 + $0x8] sm:$0xff] }
  0x39   : > { %v1441_v47 = vld [vmem:[%s1637_s11 + $0x30] sm:$0xff]   ;;  %v1445_v51 = vld [vmem:[%s1637_s11 + $0x38] sm:$0xff]  }
  0x3a   : > { %1285 = vmatpush3.bf16.msra.mxu0 %v1425_v31  ;;  %v1442_v48 = vld [vmem:[%s1637_s11 + $0xb0] sm:$0xff]   ;;  %v1446_v52 = vld [vmem:[%s1637_s11 + $0xb8] sm:$0xff]  }
  0x3b   : > { %1331 = vmatpush3.bf16.msra.mxu1 %v1426_v32  ;;  %1286 = vmatprep.subr.bf16.mxu0 %v1427_v33  ;;  %v1447_v53 = vld [vmem:[%s1639_s12] ss:$16 sps:$4 sm:$0xff]   ;;  %v1449_v54 = vld [vmem:[%s1639_s12 + $0x4] ss:$16 sps:$4 sm:$0xff]   ;;  %v1450_v55 = vld [vmem:[%s1639_s12 + $0x8] ss:$16 sps:$4 sm:$0xff]  }
  0x3c   : > { %1332 = vmatprep.subr.bf16.mxu1 %v1428_v34  ;;  %v1452_v56 = vld [vmem:[%s1639_s12 + $0xc] ss:$16 sps:$4 sm:$0xff]   ;;  %785 = vmatprep.mubr.bf16.mxu0 %v1449_v54  ;;  %v1453_v57 = vld [vmem:[%s1639_s12 + $0x24] ss:$16 sps:$4 sm:$0xff]   ;;  %v1457_v59 = vld [vmem:[%s1639_s12 + $0x20] ss:$16 sps:$4 sm:$0xff]  }
  0x3d   : > { %858 = vmatprep.mubr.bf16.mxu1 %v1452_v56  ;;  %v1455_v58 = vld [vmem:[%s1639_s12 + $0x2c] ss:$16 sps:$4 sm:$0xff]   ;;  %v1458_v60 = vld [vmem:[%s1639_s12 + $0x28] ss:$16 sps:$4 sm:$0xff]   ;;  %v1459_v61 = vld [vmem:[%s1639_s12 + $0x44] ss:$16 sps:$4 sm:$0xff]  }
  0x3e   : > { %1287 = vmatpush3.bf16.msra.mxu0 %v1429_v35  ;;  %v1461_v62 = vld [vmem:[%s1639_s12 + $0x4c] ss:$16 sps:$4 sm:$0xff]   ;;  %v1463_v63 = vld [vmem:[%s1639_s12 + $0x40] ss:$16 sps:$4 sm:$0xff]   ;;  %v1464_v0 = vld [vmem:[%s1639_s12 + $0x48] ss:$16 sps:$4 sm:$0xff]  }
  0x3f   : > { %1333 = vmatpush3.bf16.msra.mxu1 %v1430_v36  ;;  %1288 = vmatprep.subr.bf16.mxu0 %v1431_v37  ;;  %v1465_v1 = vld [vmem:[%s1639_s12 + $0x64] ss:$16 sps:$4 sm:$0xff]   ;;  %v1467_v2 = vld [vmem:[%s1639_s12 + $0x6c] ss:$16 sps:$4 sm:$0xff]   ;;  %v1469_v3 = vld [vmem:[%s1639_s12 + $0x60] ss:$16 sps:$4 sm:$0xff]  }
  0x40   : > { %1334 = vmatprep.subr.bf16.mxu1 %v1432_v38  ;;  %v1470_v4 = vld [vmem:[%s1639_s12 + $0x68] ss:$16 sps:$4 sm:$0xff]   ;;  %v1471_v5 = vld [vmem:[%s1639_s12 + $0x84] ss:$16 sps:$4 sm:$0xff]   ;;  %v1473_v6 = vld [vmem:[%s1639_s12 + $0x8c] ss:$16 sps:$4 sm:$0xff]  }
  0x41   : > { %v1475_v7 = vld [vmem:[%s1639_s12 + $0x80] ss:$16 sps:$4 sm:$0xff]   ;;  %v1476_v8 = vld [vmem:[%s1639_s12 + $0x88] ss:$16 sps:$4 sm:$0xff]  }
  0x42   : > { %1289 = vmatpush3.bf16.msra.mxu0 %v1433_v39  ;;  %v389_v36 = vld [vmem:[#allocation2 + $0x10] sm:$0xff]  ;;  %v391_v54 = vld [vmem:[#allocation2 + $0x20] sm:$0xff] }
  0x43   : > { %1335 = vmatpush3.bf16.msra.mxu1 %v1434_v40  ;;  %1290 = vmatprep.subr.bf16.mxu0 %v1435_v41  ;;  %v390_v41 = vld [vmem:[#allocation2 + $0x18] sm:$0xff] }
  0x44   : > { %1336 = vmatprep.subr.bf16.mxu1 %v1436_v42 }
  0x46   : > { %1291 = vmatpush3.bf16.msra.mxu0 %v1437_v43 }
  0x47   : > { %1337 = vmatpush3.bf16.msra.mxu1 %v1438_v44  ;;  %1292 = vmatprep.subr.bf16.mxu0 %v1439_v45 }
  0x48   : > { %1338 = vmatprep.subr.bf16.mxu1 %v1440_v46 }
  0x4a   : > { %1293 = vmatpush3.bf16.msra.mxu0 %v1441_v47 }
  0x4b   : > { %1339 = vmatpush3.bf16.msra.mxu1 %v1442_v48  ;;  %1294 = vmatprep.subr.bf16.mxu0 %v1443_v49 }
  0x4c   : > { %1340 = vmatprep.subr.bf16.mxu1 %v1444_v50 }
  0x4e   : > { %1295 = vmatpush3.bf16.msra.mxu0 %v1445_v51 }
  0x4f   : > { %1341 = vmatpush3.bf16.msra.mxu1 %v1446_v52 }
  0x51   : > { %786 = vmatmul.mubr.bf16.vlgmr.msra.gmra.mrb[0].mxu0 %v1447_v53 }
  0x52   : > { %859 = vmatmul.mubr.bf16.vlgmr.msra.gmra.mrb[0].mxu1 %v1450_v55  ;;  %793 = vmatprep.mubr.bf16.mxu0 %v1453_v57 }
  0x53   : > { %866 = vmatprep.mubr.bf16.mxu1 %v1455_v58 }
  0x59   : > { %794 = vmatmul.mubr.bf16.gmra.mrb[4].mxu0 %v1457_v59  ;;  %v392_v59 = vld [vmem:[#allocation2 + $0x28] sm:$0xff] }
  0x5a   : > { %867 = vmatmul.mubr.bf16.gmra.mrb[4].mxu1 %v1458_v60  ;;  %801 = vmatprep.mubr.bf16.mxu0 %v1459_v61 }
  0x5b   : > { %874 = vmatprep.mubr.bf16.mxu1 %v1461_v62 }
  0x61   : > { %802 = vmatmul.mubr.bf16.gmra.mrb[8].mxu0 %v1463_v63 }
  0x62   : > { %875 = vmatmul.mubr.bf16.gmra.mrb[8].mxu1 %v1464_v0  ;;  %809 = vmatprep.mubr.bf16.mxu0 %v1465_v1 }
  0x63   : > { %882 = vmatprep.mubr.bf16.mxu1 %v1467_v2 }
  0x69   : > { %810 = vmatmul.mubr.bf16.gmra.mrb[12].mxu0 %v1469_v3 }
  0x6a   : > { %883 = vmatmul.mubr.bf16.gmra.mrb[12].mxu1 %v1470_v4  ;;  %817 = vmatprep.mubr.bf16.mxu0 %v1471_v5 }
  0x6b   : > { %890 = vmatprep.mubr.bf16.mxu1 %v1473_v6 }
  0x71   : > { %818 = vmatmul.mubr.bf16.gmra.mrb[16].mxu0 %v1475_v7 }
  0x72   : > { %891 = vmatmul.mubr.bf16.gmra.mrb[16].mxu1 %v1476_v8  ;;  %v393_v8 = vld [vmem:[#allocation2 + $0x30] sm:$0xff] }
 0x124   : > { %v1296_v9 = vpop.f32.mrb[0].mxu0 }
 0x125   : > { %v1342_v10 = vpop.f32.mrb[0].mxu1  ;;  %v1297_v11 = vpop.f32.mrb[1].mxu0 }
 0x126   : > { %v1298_v12 = vadd.f32 %v1297_v11, %v1296_v9  ;;  %v1343_v13 = vpop.f32.mrb[1].mxu1  ;;  %v1299_v14 = vpop.f32.mrb[2].mxu0 }
 0x127   : > { %v1344_v15 = vadd.f32 %v1343_v13, %v1342_v10  ;;  %v1345_v16 = vpop.f32.mrb[2].mxu1  ;;  %v1300_v17 = vpop.f32.mrb[3].mxu0  ;;  %v394_v13 = vld [vmem:[#allocation2 + $0x38] sm:$0xff] }
 0x128   : > { %v1301_v19 = vadd.f32 %v1300_v17, %v1299_v14  ;;  %v1346_v20 = vpop.f32.mrb[3].mxu1 }
 0x129   : > { %v861_v21 = vadd.f32 %v1344_v15, %v1298_v12  ;;  %v1347_v22 = vadd.f32 %v1346_v20, %v1345_v16 }
 0x12b   : > { %v899_v24 = vadd.f32 %v861_v21, %v387_v18  ;;  %v864_v25 = vadd.f32 %v1347_v22, %v1301_v19 }
 0x12c   : > { %v1302_v26 = vpop.f32.mrb[4].mxu0 }
 0x12d   : > { %909 = vst [vmem:[#allocation2] sm:$0xff] %v899_v24  ;;  %v900_v27 = vadd.f32 %v864_v25, %v388_v23  ;;  %v1348_v28 = vpop.f32.mrb[4].mxu1  ;;  %v1303_v29 = vpop.f32.mrb[5].mxu0 }
 0x12e   : > { %v1304_v30 = vadd.f32 %v1303_v29, %v1302_v26  ;;  %v1349_v31 = vpop.f32.mrb[5].mxu1  ;;  %v1305_v32 = vpop.f32.mrb[6].mxu0  ;;  %v395_v26 = vld [vmem:[#allocation2 + $0x40] sm:$0xff] }
 0x12f   : > { %910 = vst [vmem:[#allocation2 + $0x8] sm:$0xff] %v900_v27  ;;  %v1350_v33 = vadd.f32 %v1349_v31, %v1348_v28  ;;  %v1351_v34 = vpop.f32.mrb[6].mxu1  ;;  %v1306_v35 = vpop.f32.mrb[7].mxu0  ;;  %v396_v31 = vld [vmem:[#allocation2 + $0x48] sm:$0xff] }
 0x130   : > { %v1307_v37 = vadd.f32 %v1306_v35, %v1305_v32  ;;  %v1352_v38 = vpop.f32.mrb[7].mxu1 }
 0x131   : > { %v869_v39 = vadd.f32 %v1350_v33, %v1304_v30  ;;  %v1353_v40 = vadd.f32 %v1352_v38, %v1351_v34 }
 0x133   : > { %v901_v42 = vadd.f32 %v869_v39, %v389_v36  ;;  %v872_v43 = vadd.f32 %v1353_v40, %v1307_v37  ;;  %v1224_v37 = vld [vmem:[%s1733_s2] ss:$0 sm:$0xff] (!%p1223_p11) }
 0x134   : > { %v1308_v44 = vpop.f32.mrb[8].mxu0  ;;  %v923_v35 = vld [vmem:[#allocation2] sm:$0xff] (!%p1223_p11) }
 0x135   : > { %911 = vst [vmem:[#allocation2 + $0x10] sm:$0xff] %v901_v42  ;;  %v902_v45 = vadd.f32 %v872_v43, %v390_v41  ;;  %v1354_v46 = vpop.f32.mrb[8].mxu1  ;;  %v1309_v47 = vpop.f32.mrb[9].mxu0  ;;  %v940_v38 = vmul.f32 (!%p1223_p11), %v1224_v37, %v923_v35  ;;  %v1225_v40 = vld [vmem:[%s1734_s3] ss:$0 sm:$0xff] (!%p1223_p11) }
 0x136   : > { %v1310_v48 = vadd.f32 %v1309_v47, %v1308_v44  ;;  %v1355_v49 = vpop.f32.mrb[9].mxu1  ;;  %v1311_v50 = vpop.f32.mrb[10].mxu0  ;;  %v924_v36 = vld [vmem:[#allocation2 + $0x8] sm:$0xff] (!%p1223_p11) }
 0x137   : > { %912 = vst [vmem:[#allocation2 + $0x18] sm:$0xff] %v902_v45  ;;  %v1356_v51 = vadd.f32 %v1355_v49, %v1354_v46  ;;  %v1357_v52 = vpop.f32.mrb[10].mxu1  ;;  %v1312_v53 = vpop.f32.mrb[11].mxu0  ;;  %v941_v39 = vmul.f32 (!%p1223_p11), %v1224_v37, %v924_v36 }
 0x138   : > { %v1313_v55 = vadd.f32 %v1312_v53, %v1311_v50  ;;  %v1358_v56 = vpop.f32.mrb[11].mxu1 }
 0x139   : > { %v877_v57 = vadd.f32 %v1356_v51, %v1310_v48  ;;  %v1359_v58 = vadd.f32 %v1358_v56, %v1357_v52  ;;  %v957_v48 = vadd.f32 (!%p1223_p11), %v1225_v40, %v940_v38  ;;  %v958_v49 = vadd.f32 (!%p1223_p11), %v1225_v40, %v941_v39 }
 0x13b   : > { %v903_v60 = vadd.f32 %v877_v57, %v391_v54  ;;  %v880_v61 = vadd.f32 %v1359_v58, %v1313_v55  ;;  %v967_v57 = vmax.f32 (!%p1223_p11), %v957_v48, 0.0  ;;  %v968_v58 = vmax.f32 (!%p1223_p11), %v958_v49, 0.0 }
 0x13c   : > { %v1314_v62 = vpop.f32.mrb[12].mxu0  ;;  %v925_v41 = vld [vmem:[#allocation2 + $0x10] sm:$0xff] (!%p1223_p11) }
 0x13d   : > { %913 = vst [vmem:[#allocation2 + $0x20] sm:$0xff] %v903_v60  ;;  %v904_v63 = vadd.f32 %v880_v61, %v392_v59  ;;  %v1360_v0 = vpop.f32.mrb[12].mxu1  ;;  %v1315_v1 = vpop.f32.mrb[13].mxu0  ;;  %v942_v43 = vmul.f32 (!%p1223_p11), %v1224_v37, %v925_v41 }
 0x13e   : > { %v1316_v2 = vadd.f32 %v1315_v1, %v1314_v62  ;;  %v1361_v3 = vpop.f32.mrb[13].mxu1  ;;  %v1317_v4 = vpop.f32.mrb[14].mxu0  ;;  %v926_v42 = vld [vmem:[#allocation2 + $0x18] sm:$0xff] (!%p1223_p11) }
 0x13f   : > { %914 = vst [vmem:[#allocation2 + $0x28] sm:$0xff] %v904_v63  ;;  %v1362_v5 = vadd.f32 %v1361_v3, %v1360_v0  ;;  %v1363_v6 = vpop.f32.mrb[14].mxu1  ;;  %v1318_v7 = vpop.f32.mrb[15].mxu0  ;;  %v943_v44 = vmul.f32 (!%p1223_p11), %v1224_v37, %v926_v42  ;;  %v959_v53 = vadd.f32 (!%p1223_p11), %v1225_v40, %v942_v43  ;;  %v978_v3 = vmin.f32 (!%p1223_p11), %v968_v58, 20.0 }
 0x140   : > { %v1319_v9 = vadd.f32 %v1318_v7, %v1317_v4  ;;  %v1364_v10 = vpop.f32.mrb[15].mxu1 }
 0x141   : > { %v885_v11 = vadd.f32 %v1362_v5, %v1316_v2  ;;  %v1365_v12 = vadd.f32 %v1364_v10, %v1363_v6  ;;  %v960_v54 = vadd.f32 (!%p1223_p11), %v1225_v40, %v943_v44  ;;  %v969_v61 = vmax.f32 (!%p1223_p11), %v959_v53, 0.0 }
 0x142   : > { %v977_v2 = vmin.f32 (!%p1223_p11), %v967_v57, 20.0 }
 0x143   : > { %v905_v14 = vadd.f32 %v885_v11, %v393_v8  ;;  %v888_v15 = vadd.f32 %v1365_v12, %v1319_v9  ;;  %v970_v62 = vmax.f32 (!%p1223_p11), %v960_v54, 0.0  ;;  %v979_v7 = vmin.f32 (!%p1223_p11), %v969_v61, 20.0 }
 0x144   : > { %v1320_v16 = vpop.f32.mrb[16].mxu0  ;;  %v927_v45 = vld [vmem:[#allocation2 + $0x20] sm:$0xff] (!%p1223_p11)  ;;  %v1254_v11 = vpack.c.bf16 (!%p1223_p11), %v978_v3, %v977_v2 }
 0x145   : > { %915 = vst [vmem:[#allocation2 + $0x30] sm:$0xff] %v905_v14  ;;  %v906_v17 = vadd.f32 %v888_v15, %v394_v13  ;;  %v1366_v18 = vpop.f32.mrb[16].mxu1  ;;  %v1321_v19 = vpop.f32.mrb[17].mxu0  ;;  %v944_v50 = vmul.f32 (!%p1223_p11), %v1224_v37, %v927_v45  ;;  %v980_v8 = vmin.f32 (!%p1223_p11), %v970_v62, 20.0 }
 0x146   : > { %v1322_v20 = vadd.f32 %v1321_v19, %v1320_v16  ;;  %v1367_v21 = vpop.f32.mrb[17].mxu1  ;;  %v1323_v22 = vpop.f32.mrb[18].mxu0  ;;  %v928_v46 = vld [vmem:[#allocation2 + $0x28] sm:$0xff] (!%p1223_p11)  ;;  %1255 = vst [vmem:[%s1735_s4] sm:$0xff] (!%p1223_p11), %v1254_v11  }
 0x147   : > { %916 = vst [vmem:[#allocation2 + $0x38] sm:$0xff] %v906_v17  ;;  %v1368_v23 = vadd.f32 %v1367_v21, %v1366_v18  ;;  %v1369_v24 = vpop.f32.mrb[18].mxu1  ;;  %v1324_v25 = vpop.f32.mrb[19].mxu0  ;;  %v945_v51 = vmul.f32 (!%p1223_p11), %v1224_v37, %v928_v46  ;;  %v961_v59 = vadd.f32 (!%p1223_p11), %v1225_v40, %v944_v50  ;;  %v1259_v15 = vpack.c.bf16 (!%p1223_p11), %v980_v8, %v979_v7 }
 0x148   : > { %v1325_v27 = vadd.f32 %v1324_v25, %v1323_v22  ;;  %v1370_v28 = vpop.f32.mrb[19].mxu1 }
 0x149   : > { %v893_v29 = vadd.f32 %v1368_v23, %v1322_v20  ;;  %v1371_v30 = vadd.f32 %v1370_v28, %v1369_v24  ;;  %922 = sbr.rel (%p1223_p11) target bundleno = 354 (0x162), region = 67  ;;  %v962_v60 = vadd.f32 (!%p1223_p11), %v1225_v40, %v945_v51  ;;  %v971_v4 = vmax.f32 (!%p1223_p11), %v961_v59, 0.0  ;;  %1276 = vst [vmem:[%s1735_s4 + $0x8] sm:$0xff] (!%p1223_p11), %v1259_v15  }
 0x14b   : > { %v907_v32 = vadd.f32 %v893_v29, %v395_v26  ;;  %v896_v33 = vadd.f32 %v1371_v30, %v1325_v27  ;;  %v972_v5 = vmax.f32 (!%p1223_p11), %v962_v60, 0.0  ;;  %v981_v12 = vmin.f32 (!%p1223_p11), %v971_v4, 20.0 }
 0x14c   : > { %v929_v47 = vld [vmem:[#allocation2 + $0x30] sm:$0xff] (!%p1223_p11) }
 0x14d   : > { %917 = vst [vmem:[#allocation2 + $0x40] sm:$0xff] %v907_v32  ;;  %v908_v34 = vadd.f32 %v896_v33, %v396_v31  ;;  %v946_v55 = vmul.f32 (!%p1223_p11), %v1224_v37, %v929_v47  ;;  %v982_v13 = vmin.f32 (!%p1223_p11), %v972_v5, 20.0 }
 0x14e   : > { %v930_v52 = vld [vmem:[#allocation2 + $0x38] sm:$0xff] (!%p1223_p11) }
 0x14f   : > { %918 = vst [vmem:[#allocation2 + $0x48] sm:$0xff] %v908_v34  ;;  %v947_v56 = vmul.f32 (!%p1223_p11), %v1224_v37, %v930_v52  ;;  %v963_v63 = vadd.f32 (!%p1223_p11), %v1225_v40, %v946_v55  ;;  %v1264_v19 = vpack.c.bf16 (!%p1223_p11), %v982_v13, %v981_v12 }
 0x151   : > { %v964_v0 = vadd.f32 %v1225_v40, %v947_v56  ;;  %v973_v9 = vmax.f32 %v963_v63, 0.0  ;;  %1277 = vst [vmem:[%s1735_s4 + $0x10] sm:$0xff] %v1264_v19  }
 0x153   : > { %v974_v10 = vmax.f32 %v964_v0, 0.0  ;;  %v983_v16 = vmin.f32 %v973_v9, 20.0 }
 0x154   : > { %v931_v1 = vld [vmem:[#allocation2 + $0x40] sm:$0xff] }
 0x155   : > { %v948_v14 = vmul.f32 %v1224_v37, %v931_v1  ;;  %v984_v17 = vmin.f32 %v974_v10, 20.0 }
 0x156   : > { %v932_v6 = vld [vmem:[#allocation2 + $0x48] sm:$0xff] }
 0x157   : > { %v949_v18 = vmul.f32 %v1224_v37, %v932_v6  ;;  %v965_v20 = vadd.f32 %v1225_v40, %v948_v14  ;;  %v1269_v21 = vpack.c.bf16 %v984_v17, %v983_v16 }
 0x159   : > { %v966_v22 = vadd.f32 %v1225_v40, %v949_v18  ;;  %v975_v23 = vmax.f32 %v965_v20, 0.0  ;;  %1278 = vst [vmem:[%s1735_s4 + $0x18] sm:$0xff] %v1269_v21  }
 0x15b   : > { %v976_v24 = vmax.f32 %v966_v22, 0.0  ;;  %v985_v25 = vmin.f32 %v975_v23, 20.0 }
 0x15d   : > { %v986_v26 = vmin.f32 %v976_v24, 20.0 }
 0x15f   : > { %v1274_v27 = vpack.c.bf16 %v986_v26, %v985_v25 }
 0x161   : > { %1279 = vst [vmem:[%s1735_s4 + $0x20] sm:$0xff] %v1274_v27  }
 0x162 PF: > { %s14_s19 = sadd.s32 1, %s1515_s19   ;;  %s1736_s15 = smov %s1503_s16 }
 0x163   : > { %p11_p12 = scmp.ge.s32.totalorder %s14_s19, 17   ;;  %s1737_s16 = smov %s1578_s23 }
 0x164   : > { %s1738_s17 = smov %s1511_s18  ;;  %s1739_s18 = smov %s1741_s20 }
 0x165   :  { %13 = sbr.rel (!%p11_p12) target bundleno = 3 (0x3), region = 111 }

// kernel: deepspeech2_forward.9
= control target key start
LH: loop header
LB: loop body
LE: loop exit
PB: predicated region body
PF: predicated region fallthrough
CT: control target
= control target key end

     0   :  { %v36_v8 = vlaneseq  ;;  %s596_s1 = inlined_call_operand.vmem [shape: bf16[256,256], index: 1, kind: input, shape index: {}]   ;;  %s597_s0 = inlined_call_operand.vmem [shape: bf16[16,256], index: 0, kind: input, shape index: {}]   ;;  %s598_s2 = inlined_call_operand.vmem [shape: f32[1,256], index: 2, kind: input, shape index: {}]   ;;  %s599_s3 = inlined_call_operand.vmem [shape: f32[1,256], index: 3, kind: input, shape index: {}]   ;;  %s600_s4 = inlined_call_operand.vmem [shape: f32[1,256], index: 4, kind: input, shape index: {}]   ;;  %s601_s5 = inlined_call_operand.vmem [shape: bf16[16,256], index: 5, kind: output, shape index: {}]  }
   0x1   :  { %v396_v0 = vld [vmem:[%s596_s1 + $0x4] ss:$8 sps:$4 sm:$0xff]   ;;  %v398_v1 = vld [vmem:[%s596_s1] ss:$8 sps:$4 sm:$0xff]   ;;  %v399_v2 = vld [vmem:[%s596_s1 + $0x14] ss:$8 sps:$4 sm:$0xff]  }
   0x2   :  { %268 = vmatprep.subr.bf16.mxu0 %v396_v0  ;;  %v401_v3 = vld [vmem:[%s596_s1 + $0x10] ss:$8 sps:$4 sm:$0xff]   ;;  %v402_v4 = vld [vmem:[%s596_s1 + $0x24] ss:$8 sps:$4 sm:$0xff]   ;;  %v404_v5 = vld [vmem:[%s596_s1 + $0x20] ss:$8 sps:$4 sm:$0xff]  }
   0x3   :  { %269 = vmatpush1.bf16.msra.mxu0 %v398_v1  ;;  %v405_v6 = vld [vmem:[%s596_s1 + $0x34] ss:$8 sps:$4 sm:$0xff]   ;;  %v407_v7 = vld [vmem:[%s596_s1 + $0x30] ss:$8 sps:$4 sm:$0xff]   ;;  %v408_v9 = vld [vmem:[%s596_s1 + $0x44] ss:$8 sps:$4 sm:$0xff]  }
   0x4   :  { %270 = vmatprep.subr.bf16.mxu0 %v399_v2  ;;  %v410_v10 = vld [vmem:[%s596_s1 + $0x40] ss:$8 sps:$4 sm:$0xff]   ;;  %v37_v11 = vshrl.u32 %v36_v8, 7  ;;  %v411_v12 = vld [vmem:[%s596_s1 + $0x54] ss:$8 sps:$4 sm:$0xff]  }
   0x5   :  { %v413_v13 = vld [vmem:[%s596_s1 + $0x50] ss:$8 sps:$4 sm:$0xff]   ;;  %v414_v15 = vld [vmem:[%s596_s1 + $0x64] ss:$8 sps:$4 sm:$0xff]   ;;  %v34_v20 = vld [vmem:[%s598_s2] sm:$0x3] }
   0x6   :  { %v510_v14 = vsub.s32 1, %v37_v11  ;;  %v28_v16 = vld [vmem:[%s597_s0] sm:$0xff]  ;;  %v29_v17 = vld [vmem:[%s597_s0 + $0x8] sm:$0xff]  ;;  %v417_v25 = vld [vmem:[%s596_s1 + $0x74] ss:$8 sps:$4 sm:$0xff]   ;;  %v38_v41 = vsub.s32 0, %v37_v11 }
   0x7   :  { %271 = vmatpush1.bf16.msra.mxu0 %v401_v3  ;;  %v31_v18 = vunpack.c.h.bf16 %v28_v16  ;;  %v33_v19 = vunpack.c.h.bf16 %v29_v17  ;;  %v50_v21 = vld [vmem:[%s599_s3] sm:$0x3]  ;;  %v419_v28 = vld [vmem:[%s596_s1 + $0x70] ss:$8 sps:$4 sm:$0xff]   ;;  %v420_v31 = vld [vmem:[%s596_s1 + $0x84] ss:$8 sps:$4 sm:$0xff]   ;;  %v30_v44 = vunpack.c.l.bf16 %v28_v16  ;;  %v32_v45 = vunpack.c.l.bf16 %v29_v17 }
   0x8   :  { %272 = vmatprep.subr.bf16.mxu0 %v402_v4  ;;  %v416_v22 = vld [vmem:[%s596_s1 + $0x60] ss:$8 sps:$4 sm:$0xff]   ;;  %v43_v23 = vrot.slane %v34_v20, %v510_v14  ;;  %v59_v24 = vrot.slane %v50_v21, %v510_v14  ;;  %v423_v36 = vld [vmem:[%s596_s1 + $0x94] ss:$8 sps:$4 sm:$0xff]   ;;  %v425_v37 = vld [vmem:[%s596_s1 + $0x90] ss:$8 sps:$4 sm:$0xff]   ;;  %v39_v46 = vrot.slane %v34_v20, %v38_v41  ;;  %v55_v49 = vrot.slane %v50_v21, %v38_v41 }
   0x9   :  { %v422_v34 = vld [vmem:[%s596_s1 + $0x80] ss:$8 sps:$4 sm:$0xff]   ;;  %v426_v38 = vld [vmem:[%s596_s1 + $0xa4] ss:$8 sps:$4 sm:$0xff]   ;;  %v429_v40 = vld [vmem:[%s596_s1 + $0xb4] ss:$8 sps:$4 sm:$0xff]  }
   0xa   :  { %v47_v26 = vmul.f32 %v43_v23, %v31_v18  ;;  %v49_v27 = vmul.f32 %v43_v23, %v33_v19  ;;  %v428_v39 = vld [vmem:[%s596_s1 + $0xa0] ss:$8 sps:$4 sm:$0xff]   ;;  %v431_v42 = vld [vmem:[%s596_s1 + $0xb0] ss:$8 sps:$4 sm:$0xff]   ;;  %v432_v43 = vld [vmem:[%s596_s1 + $0xc4] ss:$8 sps:$4 sm:$0xff]   ;;  %v46_v50 = vmul.f32 %v39_v46, %v30_v44  ;;  %v48_v51 = vmul.f32 %v39_v46, %v32_v45 }
   0xb   :  { %273 = vmatpush1.bf16.msra.mxu0 %v404_v5  ;;  %v434_v47 = vld [vmem:[%s596_s1 + $0xc0] ss:$8 sps:$4 sm:$0xff]   ;;  %v435_v48 = vld [vmem:[%s596_s1 + $0xd4] ss:$8 sps:$4 sm:$0xff]   ;;  %v437_v52 = vld [vmem:[%s596_s1 + $0xd0] ss:$8 sps:$4 sm:$0xff]  }
   0xc   :  { %274 = vmatprep.subr.bf16.mxu0 %v405_v6  ;;  %v63_v29 = vadd.f32 %v59_v24, %v47_v26  ;;  %v65_v30 = vadd.f32 %v59_v24, %v49_v27  ;;  %v438_v53 = vld [vmem:[%s596_s1 + $0xe4] ss:$8 sps:$4 sm:$0xff]   ;;  %v62_v54 = vadd.f32 %v55_v49, %v46_v50  ;;  %v64_v55 = vadd.f32 %v55_v49, %v48_v51  ;;  %v440_v56 = vld [vmem:[%s596_s1 + $0xe0] ss:$8 sps:$4 sm:$0xff]   ;;  %v441_v57 = vld [vmem:[%s596_s1 + $0xf4] ss:$8 sps:$4 sm:$0xff]  }
   0xd   :  { %v443_v60 = vld [vmem:[%s596_s1 + $0xf0] ss:$8 sps:$4 sm:$0xff]   ;;  %v326_v62 = vld [vmem:[%s600_s4] sm:$0x3] }
   0xe   :  { %v67_v32 = vmax.f32 %v63_v29, 0.0  ;;  %v69_v33 = vmax.f32 %v65_v30, 0.0  ;;  %v66_v58 = vmax.f32 %v62_v54, 0.0  ;;  %v68_v59 = vmax.f32 %v64_v55, 0.0 }
   0xf   :  { %275 = vmatpush1.bf16.msra.mxu0 %v407_v7  ;;  %v331_v63 = vrot.slane %v326_v62, %v38_v41  ;;  %v335_v0 = vrot.slane %v326_v62, %v510_v14 }
  0x10   :  { %276 = vmatprep.subr.bf16.mxu0 %v408_v9  ;;  %v71_v35 = vpack.c.bf16 %v69_v33, %v67_v32  ;;  %v70_v61 = vpack.c.bf16 %v68_v59, %v66_v58 }
  0x12   :  { %300 = vmatprep.mubr.bf16.mxu0 %v71_v35 }
  0x13   :  { %277 = vmatpush1.bf16.msra.mxu0 %v410_v10 }
  0x14   :  { %278 = vmatprep.subr.bf16.mxu0 %v411_v12 }
  0x17   :  { %279 = vmatpush1.bf16.msra.mxu0 %v413_v13 }
  0x18   :  { %280 = vmatprep.subr.bf16.mxu0 %v414_v15 }
  0x1b   :  { %281 = vmatpush1.bf16.msra.mxu0 %v416_v22 }
  0x1c   :  { %282 = vmatprep.subr.bf16.mxu0 %v417_v25 }
  0x1f   :  { %283 = vmatpush1.bf16.msra.mxu0 %v419_v28 }
  0x20   :  { %284 = vmatprep.subr.bf16.mxu0 %v420_v31 }
  0x23   :  { %285 = vmatpush1.bf16.msra.mxu0 %v422_v34 }
  0x24   :  { %286 = vmatprep.subr.bf16.mxu0 %v423_v36 }
  0x27   :  { %287 = vmatpush1.bf16.msra.mxu0 %v425_v37 }
  0x28   :  { %288 = vmatprep.subr.bf16.mxu0 %v426_v38 }
  0x2b   :  { %289 = vmatpush1.bf16.msra.mxu0 %v428_v39 }
  0x2c   :  { %290 = vmatprep.subr.bf16.mxu0 %v429_v40 }
  0x2f   :  { %291 = vmatpush1.bf16.msra.mxu0 %v431_v42 }
  0x30   :  { %292 = vmatprep.subr.bf16.mxu0 %v432_v43 }
  0x33   :  { %293 = vmatpush1.bf16.msra.mxu0 %v434_v47 }
  0x34   :  { %294 = vmatprep.subr.bf16.mxu0 %v435_v48 }
  0x37   :  { %295 = vmatpush1.bf16.msra.mxu0 %v437_v52 }
  0x38   :  { %296 = vmatprep.subr.bf16.mxu0 %v438_v53 }
  0x3b   :  { %297 = vmatpush1.bf16.msra.mxu0 %v440_v56 }
  0x3c   :  { %298 = vmatprep.subr.bf16.mxu0 %v441_v57 }
  0x3f   :  { %299 = vmatpush1.bf16.msra.mxu0 %v443_v60 }
  0x42   :  { %301 = vmatmul.mubr.bf16.vlgmr.msra.gmra.mrb[0].mxu0 %v70_v61 }
 0x115   :  { %v302_v1 = vpop.f32.mrb[0].mxu0 }
 0x116   :  { %v338_v2 = vadd.f32 %v331_v63, %v302_v1  ;;  %v304_v3 = vpop.f32.mrb[1].mxu0 }
 0x117   :  { %v339_v4 = vadd.f32 %v335_v0, %v304_v3  ;;  %v306_v5 = vpop.f32.mrb[2].mxu0 }
 0x118   :  { %v340_v6 = vadd.f32 %v331_v63, %v306_v5  ;;  %v308_v7 = vpop.f32.mrb[3].mxu0 }
 0x119   :  { %v394_v8 = vpack.c.bf16 %v339_v4, %v338_v2  ;;  %v341_v9 = vadd.f32 %v335_v0, %v308_v7 }
 0x11b   :  { %354 = vst [vmem:[%s601_s5] sm:$0xff] %v394_v8  ;;  %v395_v10 = vpack.c.bf16 %v341_v9, %v340_v6 }
 0x11d   :  { %355 = vst [vmem:[%s601_s5 + $0x8] sm:$0xff] %v395_v10 }

// kernel: deepspeech2_forward.11
= control target key start
LH: loop header
LB: loop body
LE: loop exit
PB: predicated region body
PF: predicated region fallthrough
CT: control target
= control target key end

     0   :  { %v297_v1 = vmov 0   ;;  %v214_v29 = vlaneseq  ;;  %s394_s1 = inlined_call_operand.vmem [shape: bf16[128,256], index: 1, kind: input, shape index: {}]   ;;  %s395_s0 = inlined_call_operand.vmem [shape: bf16[16,128], index: 0, kind: input, shape index: {}]   ;;  %s396_s2 = inlined_call_operand.vmem [shape: f32[1,128], index: 2, kind: input, shape index: {}]   ;;  %s397_s3 = inlined_call_operand.vmem [shape: f32[1,128], index: 3, kind: input, shape index: {}]   ;;  %s398_s4 = inlined_call_operand.vmem [shape: f32[1,256], index: 4, kind: input, shape index: {}]   ;;  %s399_s5 = inlined_call_operand.vmem [shape: bf16[16,256], index: 5, kind: output, shape index: {}]  }
   0x1   :  { %v273_v0 = vld [vmem:[%s394_s1 + $0x4] ss:$8 sps:$4 sm:$0xff]   ;;  %186 = vmatprep.mubr.bf16.mxu0 %v297_v1  ;;  %v275_v2 = vld [vmem:[%s394_s1] ss:$8 sps:$4 sm:$0xff]   ;;  %v276_v3 = vld [vmem:[%s394_s1 + $0x14] ss:$8 sps:$4 sm:$0xff]  }
   0x2   :  { %154 = vmatprep.subr.bf16.mxu0 %v273_v0  ;;  %v278_v4 = vld [vmem:[%s394_s1 + $0x10] ss:$8 sps:$4 sm:$0xff]   ;;  %v279_v5 = vld [vmem:[%s394_s1 + $0x24] ss:$8 sps:$4 sm:$0xff]   ;;  %v281_v6 = vld [vmem:[%s394_s1 + $0x20] ss:$8 sps:$4 sm:$0xff]  }
   0x3   :  { %155 = vmatpush1.bf16.msra.mxu0 %v275_v2  ;;  %v282_v7 = vld [vmem:[%s394_s1 + $0x34] ss:$8 sps:$4 sm:$0xff]   ;;  %v284_v8 = vld [vmem:[%s394_s1 + $0x30] ss:$8 sps:$4 sm:$0xff]   ;;  %v269_v9 = vld [vmem:[%s395_s0] sm:$0xff]   ;;  %v215_v30 = vshrl.u32 %v214_v29, 7 }
   0x4   :  { %156 = vmatprep.subr.bf16.mxu0 %v276_v3  ;;  %v285_v10 = vld [vmem:[%s394_s1 + $0x44] ss:$8 sps:$4 sm:$0xff]   ;;  %v270_v11 = vunpack.c.l.bf16 %v269_v9  ;;  %v271_v12 = vunpack.c.h.bf16 %v269_v9  ;;  %v287_v13 = vld [vmem:[%s394_s1 + $0x40] ss:$8 sps:$4 sm:$0xff]   ;;  %v288_v15 = vld [vmem:[%s394_s1 + $0x54] ss:$8 sps:$4 sm:$0xff]  }
   0x5   :  { %v246_v14 = vld [vmem:[%s396_s2] ss:$0 sm:$0xff]  ;;  %v290_v18 = vld [vmem:[%s394_s1 + $0x50] ss:$8 sps:$4 sm:$0xff]   ;;  %v291_v20 = vld [vmem:[%s394_s1 + $0x64] ss:$8 sps:$4 sm:$0xff]  }
   0x6   :  { %v40_v16 = vmul.f32 %v270_v11, %v246_v14  ;;  %v41_v17 = vmul.f32 %v271_v12, %v246_v14  ;;  %v247_v19 = vld [vmem:[%s397_s3] ss:$0 sm:$0xff]  ;;  %v294_v24 = vld [vmem:[%s394_s1 + $0x74] ss:$8 sps:$4 sm:$0xff]   ;;  %v296_v27 = vld [vmem:[%s394_s1 + $0x70] ss:$8 sps:$4 sm:$0xff]  }
   0x7   :  { %157 = vmatpush1.bf16.msra.mxu0 %v278_v4  ;;  %v293_v23 = vld [vmem:[%s394_s1 + $0x60] ss:$8 sps:$4 sm:$0xff]   ;;  %v216_v31 = vsub.s32 0, %v215_v30  ;;  %v220_v33 = vsub.s32 1, %v215_v30 }
   0x8   :  { %158 = vmatprep.subr.bf16.mxu0 %v279_v5  ;;  %v49_v21 = vadd.f32 %v247_v19, %v40_v16  ;;  %v50_v22 = vadd.f32 %v247_v19, %v41_v17  ;;  %v212_v32 = vld [vmem:[%s398_s4] sm:$0x3] }
   0x9   :  { %v217_v34 = vrot.slane %v212_v32, %v216_v31  ;;  %v221_v35 = vrot.slane %v212_v32, %v220_v33 }
   0xa   :  { %v51_v25 = vmax.f32 %v49_v21, 0.0  ;;  %v52_v26 = vmax.f32 %v50_v22, 0.0 }
   0xb   :  { %159 = vmatpush1.bf16.msra.mxu0 %v281_v6 }
   0xc   :  { %160 = vmatprep.subr.bf16.mxu0 %v282_v7  ;;  %v53_v28 = vpack.c.bf16 %v52_v26, %v51_v25 }
   0xf   :  { %161 = vmatpush1.bf16.msra.mxu0 %v284_v8 }
  0x10   :  { %162 = vmatprep.subr.bf16.mxu0 %v285_v10 }
  0x13   :  { %163 = vmatpush1.bf16.msra.mxu0 %v287_v13 }
  0x14   :  { %164 = vmatprep.subr.bf16.mxu0 %v288_v15 }
  0x17   :  { %165 = vmatpush1.bf16.msra.mxu0 %v290_v18 }
  0x18   :  { %166 = vmatprep.subr.bf16.mxu0 %v291_v20 }
  0x1b   :  { %167 = vmatpush1.bf16.msra.mxu0 %v293_v23 }
  0x1c   :  { %168 = vmatprep.subr.bf16.mxu0 %v294_v24 }
  0x1f   :  { %169 = vmatpush1.bf16.msra.mxu0 %v296_v27 }
  0x22   :  { %187 = vmatmul.mubr.bf16.vlgmr.msra.gmra.mrb[0].mxu0 %v53_v28 }
  0xf5   :  { %v188_v36 = vpop.f32.mrb[0].mxu0 }
  0xf6   :  { %v224_v37 = vadd.f32 %v217_v34, %v188_v36  ;;  %v190_v38 = vpop.f32.mrb[1].mxu0 }
  0xf7   :  { %v225_v39 = vadd.f32 %v221_v35, %v190_v38  ;;  %v192_v40 = vpop.f32.mrb[2].mxu0 }
  0xf8   :  { %v226_v41 = vadd.f32 %v217_v34, %v192_v40  ;;  %v194_v42 = vpop.f32.mrb[3].mxu0 }
  0xf9   :  { %v266_v43 = vpack.c.bf16 %v225_v39, %v224_v37  ;;  %v227_v44 = vadd.f32 %v221_v35, %v194_v42 }
  0xfb   :  { %240 = vst [vmem:[%s399_s5] sm:$0xff] %v266_v43  ;;  %v267_v45 = vpack.c.bf16 %v227_v44, %v226_v41 }
  0xfd   :  { %241 = vst [vmem:[%s399_s5 + $0x8] sm:$0xff] %v267_v45 }

// kernel: deepspeech2_forward.13
= control target key start
LH: loop header
LB: loop body
LE: loop exit
PB: predicated region body
PF: predicated region fallthrough
CT: control target
= control target key end

     0   :  { %v267_v0 = vmov 0.0   ;;  %vm268_vm0 = vmmov 0   ;;  %vm67_vm1 = vcmask 523264   ;;  %vm138_vm2 = vcmask 261120   ;;  %s332_s1 = inlined_call_operand.vmem [shape: bf16[64,32], index: 1, kind: input, shape index: {}]   ;;  %s333_s0 = inlined_call_operand.vmem [shape: bf16[16,64], index: 0, kind: input, shape index: {}]   ;;  %s334_s3 = inlined_call_operand.vmem [shape: bf16[32,128], index: 3, kind: input, shape index: {}]   ;;  %s335_s2 = inlined_call_operand.vmem [shape: f32[1,32], index: 2, kind: input, shape index: {}]   ;;  %s336_s4 = inlined_call_operand.vmem [shape: f32[1,128], index: 4, kind: input, shape index: {}]   ;;  %s337_s5 = inlined_call_operand.vmem [shape: f32[16,128], index: 5, kind: output, shape index: {}]  }
   0x1   :  { %230 = vmatprep.subr.bf16.mxu0 %v267_v0  ;;  %v252_v1 = vld [vmem:[%s332_s1] sm:$0xff]   ;;  %238 = vmatprep.mubr.msk.bf16.mxu0 %vm268_vm0, %v267_v0  ;;  %v253_v2 = vld [vmem:[%s332_s1 + $0x8] sm:$0xff]   ;;  %v254_v3 = vld [vmem:[%s332_s1 + $0x10] sm:$0xff]  }
   0x2   :  { %242 = vmatprep.subr.bf16.mxu1 %v267_v0  ;;  %246 = vmatprep.mubr.msk.bf16.mxu1 %vm268_vm0, %v267_v0  ;;  %v255_v4 = vld [vmem:[%s332_s1 + $0x18] sm:$0xff]   ;;  %v256_v5 = vld [vmem:[%s333_s0] sm:$0xff]   ;;  %v258_v7 = vld [vmem:[%s334_s3 + $0x8] sm:$0xff]  }
   0x3   :  { %231 = vmatpush3.bf16.msra.mxu0 %v252_v1  ;;  %v257_v6 = vld [vmem:[%s334_s3] sm:$0xff]  }
   0x4   :  { %232 = vmatprep.subr.bf16.mxu0 %v267_v0  ;;  %243 = vmatpush3.bf16.msra.mxu1 %v257_v6  ;;  %v211_v8 = vld [vmem:[%s335_s2] ss:$0 sm:$0xff] }
   0x5   :  { %244 = vmatprep.subr.bf16.mxu1 %v267_v0  ;;  %v218_v18 = vld [vmem:[%s336_s4] ss:$0 sm:$0xff] }
   0x7   :  { %233 = vmatpush3.bf16.msra.mxu0 %v253_v2 }
   0x8   :  { %234 = vmatprep.subr.bf16.mxu0 %v267_v0  ;;  %245 = vmatpush3.bf16.msra.mxu1 %v258_v7 }
   0xb   :  { %235 = vmatpush3.bf16.msra.mxu0 %v254_v3 }
   0xc   :  { %236 = vmatprep.subr.bf16.mxu0 %v267_v0 }
   0xf   :  { %237 = vmatpush3.bf16.msra.mxu0 %v255_v4 }
  0x12   :  { %239 = vmatmul.mubr.msk.bf16.vlgmr.msra.gmra.mrb[0].mxu0 %vm67_vm1, %v256_v5 }
  0xe5   :  { %v105_v9 = vpop.f32.mrb[0].mxu0 }
  0xe6   :  { %v106_v10 = vadd.f32 %v211_v8, %v105_v9  ;;  %v240_v11 = vpop.f32.mrb[1].mxu0 }
  0xe7   :  { %v108_v12 = vpop.f32.mrb[2].mxu0 }
  0xe8   :  { %v109_v13 = vadd.f32 %v211_v8, %v108_v12  ;;  %v241_v14 = vpop.f32.mrb[3].mxu0  ;;  %v112_v15 = vmax.f32 %v106_v10, 0.0 }
  0xea   :  { %v113_v16 = vmax.f32 %v109_v13, 0.0 }
  0xec   :  { %v114_v17 = vpack.c.bf16 %v113_v16, %v112_v15 }
  0xee   :  { %247 = vmatmul.mubr.msk.bf16.vlgmr.msra.gmra.mrb[0].mxu1 %vm138_vm2, %v114_v17 }
 0x1c1   :  { %v176_v19 = vpop.f32.mrb[0].mxu1 }
 0x1c2   :  { %v177_v20 = vadd.f32 %v218_v18, %v176_v19  ;;  %v248_v21 = vpop.f32.mrb[1].mxu1 }
 0x1c3   :  { %v179_v22 = vpop.f32.mrb[2].mxu1 }
 0x1c4   :  { %183 = vmax.xlane.f32.xlu0 %v177_v20  ;;  %v249_v23 = vpop.f32.mrb[3].mxu1  ;;  %v180_v24 = vadd.f32 %v218_v18, %v179_v22 }
 0x1c8   :  { %185 = vmax.xlane.f32.xlu0 %v180_v24 }
 0x251   :  { %v184_v25 = vpop.xlane.xlu0 %183 }
 0x252   :  { %v187_v26 = vsub.f32 %v177_v20, %v184_v25 }
 0x254   :  { %v189_v27 = vmul.f32 1.442695, %v187_v26 }
 0x255   :  { %v186_v28 = vpop.xlane.xlu0 %185 }
 0x256   :  { %v188_v29 = vsub.f32 %v180_v24, %v186_v28  ;;  %259 = vpow2.f32 %v189_v27 }
 0x258   :  { %v191_v30 = vmul.f32 1.442695, %v188_v29 }
 0x25a   :  { %261 = vpow2.f32 %v191_v30 }
 0x260   :  { %v260_v31 = vpop.eup %259 }
 0x261   :  { %193 = vadd.xlane.f32.xlu1 %v260_v31 }
 0x264   :  { %v262_v32 = vpop.eup %261 }
 0x265   :  { %195 = vadd.xlane.f32.xlu1 %v262_v32 }
 0x2ee   :  { %v194_v33 = vpop.xlane.xlu1 %193 }
 0x2ef   :  { %263 = vlog2.f32 %v194_v33 }
 0x2f2   :  { %v196_v34 = vpop.xlane.xlu1 %195 }
 0x2f3   :  { %265 = vlog2.f32 %v196_v34 }
 0x2f9   :  { %v264_v35 = vpop.eup %263 }
 0x2fa   :  { %v198_v36 = vmul.f32 0.6931472, %v264_v35 }
 0x2fc   :  { %v201_v37 = vadd.f32 %v198_v36, %v184_v25 }
 0x2fd   :  { %v266_v38 = vpop.eup %265 }
 0x2fe   :  { %v203_v39 = vsub.f32 %v177_v20, %v201_v37  ;;  %v200_v40 = vmul.f32 0.6931472, %v266_v38 }
 0x300   :  { %205 = vst [vmem:[%s337_s5] sm:$0xff] %v203_v39  ;;  %v202_v41 = vadd.f32 %v200_v40, %v186_v28 }
 0x302   :  { %v204_v42 = vsub.f32 %v180_v24, %v202_v41 }
 0x304   :  { %206 = vst [vmem:[%s337_s5 + $0x8] sm:$0xff] %v204_v42 }

// kernel: deepspeech2_forward.10
= control target key start
LH: loop header
LB: loop body
LE: loop exit
PB: predicated region body
PF: predicated region fallthrough
CT: control target
= control target key end

     0   :  { %vm61_vm0 = vcmask 254976   ;;  %v2882_v0 = vmov 0.0   ;;  %vm2883_vm1 = vmmov 0   ;;  %vm85_vm2 = vcmask 261120   ;;  %s2884_s27 = smov 64   ;;  %s2886_s28 = smov 32   ;;  %s3477_s3 = inlined_call_operand.vmem [shape: bf16[2,32,96], index: 3, kind: input, shape index: {}]   ;;  %s3478_s4 = inlined_call_operand.vmem [shape: f32[2,1,32], index: 4, kind: input, shape index: {}]   ;;  %s3479_s0 = inlined_call_operand.vmem [shape: bf16[8,2,192], index: 0, kind: input, shape index: {}, may-alias: {0,1}]   ;;  %s3480_s2 = inlined_call_operand.vmem [shape: s32[2,1], index: 2, kind: input, shape index: {}]   ;;  %s3481_s5 = inlined_call_operand.vmem [shape: bf16[8,2,32], index: 5, kind: output, shape index: {0}]   ;;  %s3482_s1 = inlined_call_operand.vmem [shape: bf16[8,2,192], index: 1, kind: input, shape index: {}, may-alias: {0,1}]   ;;  %s3483_s6 = inlined_call_operand.vmem [shape: bf16[8,2,32], index: 6, kind: output, shape index: {1}]  }
   0x1   :  { %2585 = vmatprep.subr.bf16.mxu0 %v2882_v0  ;;  %v2722_v1 = vld [vmem:[%s3477_s3] sm:$0xff]   ;;  %2589 = vmatprep.mubr.msk.bf16.mxu0 %vm2883_vm1, %v2882_v0  ;;  %62 = vst.msk [vmem:[#allocation2] sm:$0x3] %vm61_vm0, %v2882_v0  ;;  %63 = vst.msk [vmem:[#allocation3] sm:$0x3] %vm61_vm0, %v2882_v0  ;;  %v2723_v2 = vld [vmem:[%s3477_s3 + $0x8] sm:$0xff]   ;;  %v151_v8 = vlaneseq }
   0x2   :  { %2593 = vmatprep.subr.bf16.mxu1 %v2882_v0  ;;  %2597 = vmatprep.mubr.msk.bf16.mxu1 %vm2883_vm1, %v2882_v0  ;;  %v2943_v3 = vld [vmem:[%s3478_s4] ss:$0 sm:$0xff]  ;;  %v2885_v6 = vmov 1983009808   ;;  %v2887_v29 = vmov 0   ;;  %s2888_s11 = smov 96  }
   0x3   :  { %2586 = vmatpush3.bf16.msra.mxu0 %v2722_v1  ;;  %143 = vrot.lane.b32.xlu0 %v2943_v3, %s2884_s27  ;;  %v149_v7 = vunpack.c.l.s4 %v2885_v6  ;;  %v152_v10 = vshrl.u32 %v151_v8, 7  ;;  %v67_v20 = vld [vmem:[%s3479_s0] sm:$0x3]  ;;  %v2725_v36 = vld [vmem:[%s3477_s3 + $0x8] sm:$0xff]   ;;  %vm205_vm5 = vcmask 253952  }
   0x4   :  { %2587 = vmatprep.subr.bf16.mxu0 %v2882_v0  ;;  %v129_v21 = vunpack.c.l.bf16 %v67_v20  ;;  %2720 = vset.pattern.permute.xlu1 %v2887_v29  ;;  %v2724_v32 = vld [vmem:[%s3477_s3] sm:$0xff]  }
   0x5   :  { %v150_v9 = vunpack.c.0.s8 %v149_v7  ;;  %2721 = vset.pattern.permute.xlu0 %v2887_v29  ;;  %v2975_v33 = vld [vmem:[%s3480_s2] sm:$0x3]  ;;  %2594 = vmatpush3.bf16.msra.mxu1 %v2724_v32  ;;  %v2371_v57 = vld [vmem:[%s3479_s0 + $0x2] sm:$0x3] }
   0x6   :  { %2595 = vmatprep.subr.bf16.mxu1 %v2882_v0  ;;  %vm2370_vm3 = vcmp.gt.s32.totalorder %v2975_v33, 0  ;;  %v269_v58 = vunpack.c.l.bf16 %v2371_v57  ;;  %v2726_v7 = vld [vmem:[%s3477_s3] sm:$0xff]   ;;  %vm2377_vm6 = vcmp.gt.s32.totalorder %v2975_v33, 1  ;;  %vm2385_vm8 = vcmp.gt.s32.totalorder %v2975_v33, 2 }
   0x7   :  { %2588 = vmatpush3.bf16.msra.mxu0 %v2723_v2  ;;  %v2956_v12 = vsub.s32 %v150_v9, %v152_v10  ;;  %v2981_v35 = vsel %vm2370_vm3, 1, %v2887_v29  ;;  %v3015_v9 = vsel %vm2377_vm6, 1, %v2887_v29  ;;  %v2727_v10 = vld [vmem:[%s3477_s3 + $0x8] sm:$0xff]   ;;  %vm2393_vm10 = vcmp.gt.s32.totalorder %v2975_v33, 3 }
   0x8   :  { %v2948_v4 = vld [vmem:[#allocation2] sm:$0x3]  ;;  %2601 = vmatprep.subr.bf16.mxu0 %v2882_v0  ;;  %vm2401_vm12 = vcmp.gt.s32.totalorder %v2975_v33, 4  ;;  %vm2409_vm14 = vcmp.gt.s32.totalorder %v2975_v33, 5  ;;  %vm2417_vm3 = vcmp.gt.s32.totalorder %v2975_v33, 6 }
   0x9   :  { %v68_v5 = vpack.c.bf16 %v2948_v4, %v2948_v4  ;;  %v178_v19 = vrot.slane %v2948_v4, %v2956_v12  ;;  %2596 = vmatpush3.bf16.msra.mxu1 %v2725_v36 }
   0xa   :  { %2609 = vmatprep.subr.bf16.mxu1 %v2882_v0 }
   0xb   :  { %2590 = vmatmul.mubr.msk.bf16.vlgmr.msra.gmra.mrb[0].mxu0 %vm85_vm2, %v68_v5 }
   0xc   :  { %2605 = vmatprep.mubr.msk.bf16.mxu0 %vm2883_vm1, %v2882_v0  ;;  %2602 = vmatpush3.bf16.msra.mxu0 %v2726_v7 }
   0xd   :  { %2603 = vmatprep.subr.bf16.mxu0 %v2882_v0 }
  0x10   :  { %2604 = vmatpush3.bf16.msra.mxu0 %v2727_v10  ;;  %v2387_v10 = vld [vmem:[%s3479_s0 + $0x6] sm:$0x3] }
  0x11   :  { %2617 = vmatprep.subr.bf16.mxu0 %v2882_v0 }
  0x75   :  { %v144_v11 = vpop.permute.xlu0 %143 }
  0xde   :  { %v123_v13 = vpop.f32.mrb[0].mxu0 }
  0xdf   :  { %v146_v14 = vadd.f32 %v144_v11, %v123_v13  ;;  %v2591_v15 = vpop.f32.mrb[1].mxu0  ;;  %v130_v22 = vadd.f32 %v129_v21, %v123_v13 }
  0xe0   :  { %v126_v16 = vpop.f32.mrb[2].mxu0 }
  0xe1   :  { %v154_v17 = vrot.slane %v146_v14, %v2956_v12  ;;  %v2592_v18 = vpop.f32.mrb[3].mxu0  ;;  %v2368_v23 = vmul.f32 -1.442695, %v130_v22 }
  0xe3   :  { %155 = vrot.lane.b32.xlu0 %v154_v17, %s2884_s27  ;;  %2754 = vpow2.f32 %v2368_v23 }
  0xe7   :  { %179 = vrot.lane.b32.xlu0 %v178_v19, %s2886_s28 }
  0xed   :  { %v2755_v24 = vpop.eup %2754 }
  0xee   :  { %v134_v25 = vadd.f32 1.0, %v2755_v24 }
  0xf0   :  { %2756 = vrcp.f32 %v134_v25 }
  0xfa   :  { %v2757_v26 = vpop.eup %2756 }
  0xfb   :  { %v165_v38 = vsub.f32 1.0, %v2757_v26 }
 0x155   :  { %v156_v27 = vpop.permute.xlu0 %155 }
 0x156   :  { %v158_v28 = vmul.f32 %v2757_v26, %v156_v27 }
 0x158   :  { %160 = vrot.lane.b32.xlu1 %v158_v28, %s2884_s27 }
 0x159   :  { %v180_v37 = vpop.permute.xlu0 %179 }
 0x15a   :  { %v182_v40 = vmul.f32 %v2757_v26, %v180_v37 }
 0x1ca   :  { %v161_v30 = vpop.permute.xlu1 %160 }
 0x1cb   :  { %v163_v31 = vadd.f32 %v161_v30, %v129_v21 }
 0x1cd   :  { %2758 = vtanh.f32 %v163_v31 }
 0x1d7   :  { %v2759_v34 = vpop.eup %2758 }
 0x1d8   :  { %167 = vrot.lane.b32.xlu1 %v2759_v34, %s2888_s11  ;;  %v2379_v34 = vld [vmem:[%s3479_s0 + $0x4] sm:$0x3] }
 0x1d9   :  { %v410_v36 = vunpack.c.l.bf16 %v2379_v34 }
 0x1dc   :  { %188 = vperm.xlu1 %2720, %v2981_v35  }
 0x1e0   :  { %283 = vrot.lane.b32.xlu1 %v2943_v3, %s2884_s27 }
 0x24a   :  { %v168_v39 = vpop.permute.xlu1 %167 }
 0x24b   :  { %v170_v41 = vmul.f32 %v168_v39, %v165_v38 }
 0x24d   :  { %v183_v42 = vadd.f32 %v182_v40, %v170_v41 }
 0x24f   :  { %v198_v43 = vrot.slane %v183_v42, %v2956_v12 }
 0x251   :  { %199 = vrot.lane.b32.xlu0 %v198_v43, %s2888_s11 }
 0x25b   :  { %v189_v44 = vpop.permute.xlu1 %188 }
 0x25c   :  { %vm190_vm4 = vcmp.eq.s32.totalorder %v189_v44, 1 }
 0x25f   :  { %v284_v50 = vpop.permute.xlu1 %283 }
 0x2c3   :  { %v200_v45 = vpop.permute.xlu0 %199 }
 0x2c4   :  { %v202_v46 = vsel %vm190_vm4, %v200_v45, %v2948_v4  ;;  %v203_v47 = vsel %vm190_vm4, %v200_v45, 0.0  ;;  %vm2425_vm4 = vcmp.gt.s32.totalorder %v2975_v33, 7  ;;  %v2739_v33 = vld [vmem:[%s3477_s3 + $0x8] sm:$0xff]  }
 0x2c5   :  { %v204_v48 = vpack.c.bf16 %v203_v47, %v203_v47  ;;  %v209_v49 = vpack.c.bf16 %v202_v46, %v202_v46  ;;  %v318_v4 = vrot.slane %v202_v46, %v2956_v12 }
 0x2c7   :  { %206 = vst.msk [vmem:[%s3481_s5] sm:$0x1] %vm205_vm5, %v204_v48  ;;  %2598 = vmatmul.mubr.msk.bf16.vlgmr.msra.gmra.mrb[0].mxu1 %vm85_vm2, %v209_v49  ;;  %v3044_v48 = vsel %vm2385_vm8, 1, %v2887_v29  ;;  %v2728_v49 = vld [vmem:[%s3477_s3] sm:$0xff]  }
 0x2c8   :  { %2613 = vmatprep.mubr.msk.bf16.mxu1 %vm2883_vm1, %v2882_v0  ;;  %2610 = vmatpush3.bf16.msra.mxu1 %v2728_v49 }
 0x2c9   :  { %2611 = vmatprep.subr.bf16.mxu1 %v2882_v0 }
 0x39a   :  { %v263_v51 = vpop.f32.mrb[0].mxu1 }
 0x39b   :  { %v286_v52 = vadd.f32 %v284_v50, %v263_v51  ;;  %v2599_v53 = vpop.f32.mrb[1].mxu1  ;;  %v270_v59 = vadd.f32 %v269_v58, %v263_v51  ;;  %v2729_v50 = vld [vmem:[%s3477_s3 + $0x8] sm:$0xff]  }
 0x39c   :  { %v266_v54 = vpop.f32.mrb[2].mxu1  ;;  %2612 = vmatpush3.bf16.msra.mxu1 %v2729_v50 }
 0x39d   :  { %v294_v55 = vrot.slane %v286_v52, %v2956_v12  ;;  %v2600_v56 = vpop.f32.mrb[3].mxu1  ;;  %v2375_v60 = vmul.f32 -1.442695, %v270_v59  ;;  %2625 = vmatprep.subr.bf16.mxu1 %v2882_v0 }
 0x39f   :  { %295 = vrot.lane.b32.xlu0 %v294_v55, %s2884_s27  ;;  %2760 = vpow2.f32 %v2375_v60 }
 0x3a9   :  { %v2761_v61 = vpop.eup %2760 }
 0x3aa   :  { %v274_v62 = vadd.f32 1.0, %v2761_v61 }
 0x3ac   :  { %2762 = vrcp.f32 %v274_v62 }
 0x3b6   :  { %v2763_v63 = vpop.eup %2762 }
 0x3b7   :  { %v305_v13 = vsub.f32 1.0, %v2763_v63 }
 0x411   :  { %v296_v1 = vpop.permute.xlu0 %295 }
 0x412   :  { %v298_v2 = vmul.f32 %v2763_v63, %v296_v1 }
 0x414   :  { %300 = vrot.lane.b32.xlu1 %v298_v2, %s2884_s27 }
 0x418   :  { %319 = vrot.lane.b32.xlu1 %v318_v4, %s2886_s28 }
 0x486   :  { %v301_v5 = vpop.permute.xlu1 %300 }
 0x487   :  { %v303_v6 = vadd.f32 %v301_v5, %v269_v58 }
 0x489   :  { %2764 = vtanh.f32 %v303_v6 }
 0x48a   :  { %v320_v11 = vpop.permute.xlu1 %319 }
 0x48b   :  { %v322_v15 = vmul.f32 %v2763_v63, %v320_v11  ;;  %v551_v11 = vunpack.c.l.bf16 %v2387_v10 }
 0x493   :  { %v2765_v8 = vpop.eup %2764 }
 0x494   :  { %307 = vrot.lane.b32.xlu0 %v2765_v8, %s2888_s11 }
 0x498   :  { %329 = vperm.xlu0 %2721, %v3015_v9  }
 0x506   :  { %v308_v14 = vpop.permute.xlu0 %307 }
 0x507   :  { %v310_v16 = vmul.f32 %v308_v14, %v305_v13 }
 0x509   :  { %v323_v17 = vadd.f32 %v322_v15, %v310_v16 }
 0x50b   :  { %v339_v18 = vrot.slane %v323_v17, %v2956_v12 }
 0x50d   :  { %340 = vrot.lane.b32.xlu1 %v339_v18, %s2888_s11 }
 0x511   :  { %424 = vrot.lane.b32.xlu1 %v2943_v3, %s2884_s27 }
 0x517   :  { %v330_v19 = vpop.permute.xlu0 %329 }
 0x518   :  { %vm331_vm7 = vcmp.eq.s32.totalorder %v330_v19, 1 }
 0x57f   :  { %v341_v20 = vpop.permute.xlu1 %340 }
 0x580   :  { %v343_v21 = vsel %vm331_vm7, %v341_v20, %v202_v46  ;;  %v344_v22 = vsel %vm331_vm7, %v341_v20, 0.0 }
 0x581   :  { %v345_v23 = vpack.c.bf16 %v344_v22, %v344_v22  ;;  %v350_v24 = vpack.c.bf16 %v343_v21, %v343_v21  ;;  %v459_v44 = vrot.slane %v343_v21, %v2956_v12 }
 0x583   :  { %2378 = vst.msk [vmem:[%s3481_s5 + $0x1] sm:$0x1] %vm205_vm5, %v345_v23  ;;  %2606 = vmatmul.mubr.msk.bf16.vlgmr.msra.gmra.mrb[4].mxu0 %vm85_vm2, %v350_v24  ;;  %v425_v25 = vpop.permute.xlu1 %424  ;;  %v3077_v24 = vsel %vm2393_vm10, 1, %v2887_v29 }
 0x584   :  { %2621 = vmatprep.mubr.msk.bf16.mxu0 %vm2883_vm1, %v2882_v0 }
 0x656   :  { %v404_v26 = vpop.f32.mrb[4].mxu0 }
 0x657   :  { %v427_v27 = vadd.f32 %v425_v25, %v404_v26  ;;  %v2607_v28 = vpop.f32.mrb[5].mxu0  ;;  %v411_v37 = vadd.f32 %v410_v36, %v404_v26  ;;  %v2730_v25 = vld [vmem:[%s3477_s3] sm:$0xff]   ;;  %v2731_v26 = vld [vmem:[%s3477_s3 + $0x8] sm:$0xff]  }
 0x658   :  { %v407_v30 = vpop.f32.mrb[6].mxu0  ;;  %2618 = vmatpush3.bf16.msra.mxu0 %v2730_v25 }
 0x659   :  { %v435_v31 = vrot.slane %v427_v27, %v2956_v12  ;;  %v2608_v32 = vpop.f32.mrb[7].mxu0  ;;  %v2383_v38 = vmul.f32 -1.442695, %v411_v37  ;;  %2619 = vmatprep.subr.bf16.mxu0 %v2882_v0 }
 0x65b   :  { %436 = vrot.lane.b32.xlu0 %v435_v31, %s2884_s27  ;;  %2766 = vpow2.f32 %v2383_v38 }
 0x65c   :  { %2620 = vmatpush3.bf16.msra.mxu0 %v2731_v26 }
 0x65d   :  { %2633 = vmatprep.subr.bf16.mxu0 %v2882_v0 }
 0x665   :  { %v2767_v39 = vpop.eup %2766 }
 0x666   :  { %v415_v40 = vadd.f32 1.0, %v2767_v39 }
 0x668   :  { %2768 = vrcp.f32 %v415_v40 }
 0x672   :  { %v2769_v41 = vpop.eup %2768 }
 0x673   :  { %v446_v52 = vsub.f32 1.0, %v2769_v41 }
 0x6cd   :  { %v437_v42 = vpop.permute.xlu0 %436 }
 0x6ce   :  { %v439_v43 = vmul.f32 %v2769_v41, %v437_v42 }
 0x6d0   :  { %441 = vrot.lane.b32.xlu1 %v439_v43, %s2884_s27 }
 0x6d4   :  { %460 = vrot.lane.b32.xlu1 %v459_v44, %s2886_s28 }
 0x742   :  { %v442_v45 = vpop.permute.xlu1 %441 }
 0x743   :  { %v444_v46 = vadd.f32 %v442_v45, %v410_v36 }
 0x745   :  { %2770 = vtanh.f32 %v444_v46 }
 0x746   :  { %v461_v51 = vpop.permute.xlu1 %460 }
 0x747   :  { %v463_v54 = vmul.f32 %v2769_v41, %v461_v51  ;;  %v2395_v51 = vld [vmem:[%s3479_s0 + $0x8] sm:$0x3] }
 0x74f   :  { %v2771_v47 = vpop.eup %2770 }
 0x750   :  { %448 = vrot.lane.b32.xlu0 %v2771_v47, %s2888_s11 }
 0x754   :  { %470 = vperm.xlu0 %2721, %v3044_v48  }
 0x758   :  { %565 = vrot.lane.b32.xlu0 %v2943_v3, %s2884_s27 }
 0x7c2   :  { %v449_v53 = vpop.permute.xlu0 %448 }
 0x7c3   :  { %v451_v55 = vmul.f32 %v449_v53, %v446_v52  ;;  %v692_v52 = vunpack.c.l.bf16 %v2395_v51 }
 0x7c5   :  { %v464_v56 = vadd.f32 %v463_v54, %v451_v55 }
 0x7c7   :  { %v480_v57 = vrot.slane %v464_v56, %v2956_v12 }
 0x7c9   :  { %481 = vrot.lane.b32.xlu1 %v480_v57, %s2888_s11 }
 0x7d3   :  { %v471_v58 = vpop.permute.xlu0 %470 }
 0x7d4   :  { %vm472_vm9 = vcmp.eq.s32.totalorder %v471_v58, 1 }
 0x7d7   :  { %v566_v1 = vpop.permute.xlu0 %565 }
 0x83b   :  { %v482_v59 = vpop.permute.xlu1 %481 }
 0x83c   :  { %v484_v60 = vsel %vm472_vm9, %v482_v59, %v343_v21  ;;  %v485_v61 = vsel %vm472_vm9, %v482_v59, 0.0 }
 0x83d   :  { %v486_v62 = vpack.c.bf16 %v485_v61, %v485_v61  ;;  %v491_v63 = vpack.c.bf16 %v484_v60, %v484_v60  ;;  %v600_v20 = vrot.slane %v484_v60, %v2956_v12 }
 0x83f   :  { %2386 = vst.msk [vmem:[%s3481_s5 + $0x2] sm:$0x1] %vm205_vm5, %v486_v62  ;;  %2614 = vmatmul.mubr.msk.bf16.vlgmr.msra.gmra.mrb[4].mxu1 %vm85_vm2, %v491_v63 }
 0x840   :  { %2629 = vmatprep.mubr.msk.bf16.mxu1 %vm2883_vm1, %v2882_v0 }
 0x912   :  { %v545_v2 = vpop.f32.mrb[4].mxu1 }
 0x913   :  { %v568_v4 = vadd.f32 %v566_v1, %v545_v2  ;;  %v2615_v5 = vpop.f32.mrb[5].mxu1  ;;  %v552_v13 = vadd.f32 %v551_v11, %v545_v2  ;;  %v3110_v1 = vsel %vm2401_vm12, 1, %v2887_v29  ;;  %v2732_v2 = vld [vmem:[%s3477_s3] sm:$0xff]  }
 0x914   :  { %v548_v6 = vpop.f32.mrb[6].mxu1  ;;  %2626 = vmatpush3.bf16.msra.mxu1 %v2732_v2 }
 0x915   :  { %v576_v7 = vrot.slane %v568_v4, %v2956_v12  ;;  %v2616_v8 = vpop.f32.mrb[7].mxu1  ;;  %v2391_v14 = vmul.f32 -1.442695, %v552_v13  ;;  %v2733_v4 = vld [vmem:[%s3477_s3 + $0x8] sm:$0xff]   ;;  %2627 = vmatprep.subr.bf16.mxu1 %v2882_v0 }
 0x917   :  { %577 = vrot.lane.b32.xlu1 %v576_v7, %s2884_s27  ;;  %2772 = vpow2.f32 %v2391_v14 }
 0x918   :  { %2628 = vmatpush3.bf16.msra.mxu1 %v2733_v4 }
 0x919   :  { %2641 = vmatprep.subr.bf16.mxu1 %v2882_v0 }
 0x921   :  { %v2773_v15 = vpop.eup %2772 }
 0x922   :  { %v556_v16 = vadd.f32 1.0, %v2773_v15 }
 0x924   :  { %2774 = vrcp.f32 %v556_v16 }
 0x92e   :  { %v2775_v17 = vpop.eup %2774 }
 0x92f   :  { %v587_v28 = vsub.f32 1.0, %v2775_v17 }
 0x989   :  { %v578_v18 = vpop.permute.xlu1 %577 }
 0x98a   :  { %v580_v19 = vmul.f32 %v2775_v17, %v578_v18 }
 0x98c   :  { %582 = vrot.lane.b32.xlu0 %v580_v19, %s2884_s27 }
 0x990   :  { %601 = vrot.lane.b32.xlu0 %v600_v20, %s2886_s28 }
 0x9fe   :  { %v583_v21 = vpop.permute.xlu0 %582 }
 0x9ff   :  { %v585_v22 = vadd.f32 %v583_v21, %v551_v11 }
 0xa01   :  { %2776 = vtanh.f32 %v585_v22 }
 0xa02   :  { %v602_v27 = vpop.permute.xlu0 %601 }
 0xa03   :  { %v604_v31 = vmul.f32 %v2775_v17, %v602_v27 }
 0xa0b   :  { %v2777_v23 = vpop.eup %2776 }
 0xa0c   :  { %589 = vrot.lane.b32.xlu1 %v2777_v23, %s2888_s11 }
 0xa10   :  { %611 = vperm.xlu1 %2720, %v3077_v24  }
 0xa14   :  { %706 = vrot.lane.b32.xlu1 %v2943_v3, %s2884_s27 }
 0xa7e   :  { %v590_v30 = vpop.permute.xlu1 %589 }
 0xa7f   :  { %v592_v32 = vmul.f32 %v590_v30, %v587_v28  ;;  %v2403_v28 = vld [vmem:[%s3479_s0 + $0xa] sm:$0x3] }
 0xa80   :  { %v833_v30 = vunpack.c.l.bf16 %v2403_v28 }
 0xa81   :  { %v605_v34 = vadd.f32 %v604_v31, %v592_v32 }
 0xa83   :  { %v621_v36 = vrot.slane %v605_v34, %v2956_v12 }
 0xa85   :  { %622 = vrot.lane.b32.xlu0 %v621_v36, %s2888_s11 }
 0xa8f   :  { %v612_v37 = vpop.permute.xlu1 %611 }
 0xa90   :  { %vm613_vm11 = vcmp.eq.s32.totalorder %v612_v37, 1 }
 0xa93   :  { %v707_v43 = vpop.permute.xlu1 %706 }
 0xaf7   :  { %v623_v38 = vpop.permute.xlu0 %622 }
 0xaf8   :  { %v625_v39 = vsel %vm613_vm11, %v623_v38, %v484_v60  ;;  %v626_v40 = vsel %vm613_vm11, %v623_v38, 0.0 }
 0xaf9   :  { %v627_v41 = vpack.c.bf16 %v626_v40, %v626_v40  ;;  %v632_v42 = vpack.c.bf16 %v625_v39, %v625_v39  ;;  %v741_v60 = vrot.slane %v625_v39, %v2956_v12 }
 0xafb   :  { %2394 = vst.msk [vmem:[%s3481_s5 + $0x3] sm:$0x1] %vm205_vm5, %v627_v41  ;;  %2622 = vmatmul.mubr.msk.bf16.vlgmr.msra.gmra.mrb[8].mxu0 %vm85_vm2, %v632_v42 }
 0xafc   :  { %2637 = vmatprep.mubr.msk.bf16.mxu0 %vm2883_vm1, %v2882_v0 }
 0xbce   :  { %v686_v44 = vpop.f32.mrb[8].mxu0 }
 0xbcf   :  { %v709_v45 = vadd.f32 %v707_v43, %v686_v44  ;;  %v2623_v46 = vpop.f32.mrb[9].mxu0  ;;  %v693_v53 = vadd.f32 %v692_v52, %v686_v44  ;;  %v3143_v44 = vsel %vm2409_vm14, 1, %v2887_v29 }
 0xbd0   :  { %v689_v47 = vpop.f32.mrb[10].mxu0  ;;  %v2735_v46 = vld [vmem:[%s3477_s3 + $0x8] sm:$0xff]  }
 0xbd1   :  { %v717_v49 = vrot.slane %v709_v45, %v2956_v12  ;;  %v2624_v50 = vpop.f32.mrb[11].mxu0  ;;  %v2399_v54 = vmul.f32 -1.442695, %v693_v53  ;;  %v2734_v45 = vld [vmem:[%s3477_s3] sm:$0xff]  }
 0xbd2   :  { %2634 = vmatpush3.bf16.msra.mxu0 %v2734_v45  ;;  %v3211_v45 = vsel %vm2417_vm3, 1, %v2887_v29 }
 0xbd3   :  { %718 = vrot.lane.b32.xlu0 %v717_v49, %s2884_s27  ;;  %2778 = vpow2.f32 %v2399_v54  ;;  %2635 = vmatprep.subr.bf16.mxu0 %v2882_v0 }
 0xbd6   :  { %2636 = vmatpush3.bf16.msra.mxu0 %v2735_v46 }
 0xbd7   :  { %2649 = vmatprep.subr.bf16.mxu0 %v2882_v0 }
 0xbdd   :  { %v2779_v55 = vpop.eup %2778 }
 0xbde   :  { %v697_v56 = vadd.f32 1.0, %v2779_v55 }
 0xbe0   :  { %2780 = vrcp.f32 %v697_v56 }
 0xbea   :  { %v2781_v57 = vpop.eup %2780 }
 0xbeb   :  { %v728_v6 = vsub.f32 1.0, %v2781_v57 }
 0xc45   :  { %v719_v58 = vpop.permute.xlu0 %718 }
 0xc46   :  { %v721_v59 = vmul.f32 %v2781_v57, %v719_v58 }
 0xc48   :  { %723 = vrot.lane.b32.xlu1 %v721_v59, %s2884_s27 }
 0xc4c   :  { %742 = vrot.lane.b32.xlu1 %v741_v60, %s2886_s28 }
 0xcba   :  { %v724_v61 = vpop.permute.xlu1 %723 }
 0xcbb   :  { %v726_v62 = vadd.f32 %v724_v61, %v692_v52  ;;  %v2737_v61 = vld [vmem:[%s3477_s3 + $0x18] sm:$0xff]  }
 0xcbd   :  { %2782 = vtanh.f32 %v726_v62  ;;  %v3175_v62 = vld [vmem:[#allocation3] sm:$0x3] }
 0xcbe   :  { %v743_v5 = vpop.permute.xlu1 %742 }
 0xcbf   :  { %v745_v8 = vmul.f32 %v2781_v57, %v743_v5 }
 0xcc7   :  { %v2783_v63 = vpop.eup %2782 }
 0xcc8   :  { %730 = vrot.lane.b32.xlu0 %v2783_v63, %s2888_s11  ;;  %v1201_v63 = vpack.c.bf16 %v3175_v62, %v3175_v62 }
 0xccc   :  { %752 = vperm.xlu0 %2721, %v3110_v1  }
 0xcd0   :  { %847 = vrot.lane.b32.xlu0 %v2943_v3, %s2884_s27 }
 0xd3a   :  { %v731_v7 = vpop.permute.xlu0 %730 }
 0xd3b   :  { %v733_v10 = vmul.f32 %v731_v7, %v728_v6 }
 0xd3d   :  { %v746_v11 = vadd.f32 %v745_v8, %v733_v10 }
 0xd3f   :  { %v762_v13 = vrot.slane %v746_v11, %v2956_v12  ;;  %v3189_v11 = vld [vmem:[%s3478_s4 + $0x1] ss:$0 sm:$0xff] }
 0xd41   :  { %763 = vrot.lane.b32.xlu1 %v762_v13, %s2888_s11 }
 0xd4b   :  { %v753_v14 = vpop.permute.xlu0 %752 }
 0xd4c   :  { %vm754_vm13 = vcmp.eq.s32.totalorder %v753_v14, 1 }
 0xd4f   :  { %v848_v20 = vpop.permute.xlu0 %847 }
 0xdb3   :  { %v764_v15 = vpop.permute.xlu1 %763 }
 0xdb4   :  { %v766_v16 = vsel %vm754_vm13, %v764_v15, %v625_v39  ;;  %v767_v17 = vsel %vm754_vm13, %v764_v15, 0.0 }
 0xdb5   :  { %v768_v18 = vpack.c.bf16 %v767_v17, %v767_v17  ;;  %v773_v19 = vpack.c.bf16 %v766_v16, %v766_v16  ;;  %v882_v40 = vrot.slane %v766_v16, %v2956_v12  ;;  %v2411_v17 = vld [vmem:[%s3479_s0 + $0xc] sm:$0x3] }
 0xdb7   :  { %2402 = vst.msk [vmem:[%s3481_s5 + $0x4] sm:$0x1] %vm205_vm5, %v768_v18  ;;  %2630 = vmatmul.mubr.msk.bf16.vlgmr.msra.gmra.mrb[8].mxu1 %vm85_vm2, %v773_v19  ;;  %v974_v18 = vunpack.c.l.bf16 %v2411_v17 }
 0xdb8   :  { %2645 = vmatprep.mubr.msk.bf16.mxu1 %vm2883_vm1, %v2882_v0 }
 0xe8a   :  { %v827_v21 = vpop.f32.mrb[8].mxu1 }
 0xe8b   :  { %v850_v22 = vadd.f32 %v848_v20, %v827_v21  ;;  %v2631_v23 = vpop.f32.mrb[9].mxu1  ;;  %v834_v31 = vadd.f32 %v833_v30, %v827_v21 }
 0xe8c   :  { %v830_v25 = vpop.f32.mrb[10].mxu1 }
 0xe8d   :  { %v858_v26 = vrot.slane %v850_v22, %v2956_v12  ;;  %v2632_v27 = vpop.f32.mrb[11].mxu1  ;;  %v2407_v32 = vmul.f32 -1.442695, %v834_v31 }
 0xe8f   :  { %859 = vrot.lane.b32.xlu1 %v858_v26, %s2884_s27  ;;  %2784 = vpow2.f32 %v2407_v32 }
 0xe99   :  { %v2785_v34 = vpop.eup %2784 }
 0xe9a   :  { %v838_v36 = vadd.f32 1.0, %v2785_v34  ;;  %v2427_v34 = vld [vmem:[%s3482_s1 + $0xe] sm:$0x3] }
 0xe9c   :  { %2786 = vrcp.f32 %v838_v36 }
 0xea6   :  { %v2787_v37 = vpop.eup %2786 }
 0xea7   :  { %v869_v49 = vsub.f32 1.0, %v2787_v37 }
 0xf01   :  { %v860_v38 = vpop.permute.xlu1 %859 }
 0xf02   :  { %v862_v39 = vmul.f32 %v2787_v37, %v860_v38  ;;  %v1262_v38 = vunpack.c.l.bf16 %v2427_v34 }
 0xf04   :  { %864 = vrot.lane.b32.xlu0 %v862_v39, %s2884_s27 }
 0xf08   :  { %883 = vrot.lane.b32.xlu0 %v882_v40, %s2886_s28 }
 0xf76   :  { %v865_v41 = vpop.permute.xlu0 %864 }
 0xf77   :  { %v867_v42 = vadd.f32 %v865_v41, %v833_v30 }
 0xf79   :  { %2788 = vtanh.f32 %v867_v42 }
 0xf7a   :  { %v884_v47 = vpop.permute.xlu0 %883 }
 0xf7b   :  { %v886_v51 = vmul.f32 %v2787_v37, %v884_v47  ;;  %v3216_v47 = vsel %vm2425_vm4, 1, %v2887_v29  ;;  %v1264_v29 = vrot.slane %v2427_v34, 1 }
 0xf83   :  { %v2789_v43 = vpop.eup %2788 }
 0xf84   :  { %871 = vrot.lane.b32.xlu1 %v2789_v43, %s2888_s11 }
 0xf88   :  { %893 = vperm.xlu1 %2720, %v3143_v44  }
 0xf8c   :  { %988 = vrot.lane.b32.xlu1 %v2943_v3, %s2884_s27  ;;  %v2736_v3 = vld [vmem:[%s3477_s3 + $0x10] sm:$0xff]  }
 0xff6   :  { %v872_v50 = vpop.permute.xlu1 %871 }
 0xff7   :  { %v874_v52 = vmul.f32 %v872_v50, %v869_v49 }
 0xff9   :  { %v887_v53 = vadd.f32 %v886_v51, %v874_v52  ;;  %v2738_v52 = vld [vmem:[%s3477_s3] sm:$0xff]  }
 0xffa   :  { %2642 = vmatpush3.bf16.msra.mxu1 %v2738_v52 }
 0xffb   :  { %v903_v54 = vrot.slane %v887_v53, %v2956_v12  ;;  %2643 = vmatprep.subr.bf16.mxu1 %v2882_v0  ;;  %v1266_v53 = vunpack.c.l.bf16 %v1264_v29 }
 0xffd   :  { %904 = vrot.lane.b32.xlu0 %v903_v54, %s2888_s11 }
 0xffe   :  { %2644 = vmatpush3.bf16.msra.mxu1 %v2739_v33 }
 0xfff   :  { %2657 = vmatprep.subr.bf16.mxu1 %v2882_v0 }
0x1007   :  { %v894_v55 = vpop.permute.xlu1 %893 }
0x1008   :  { %vm895_vm15 = vcmp.eq.s32.totalorder %v894_v55, 1 }
0x100b   :  { %v989_v2 = vpop.permute.xlu1 %988 }
0x106f   :  { %v905_v56 = vpop.permute.xlu0 %904 }
0x1070   :  { %v3158_v57 = vsel %vm895_vm15, %v905_v56, %v766_v16  ;;  %v908_v58 = vsel %vm895_vm15, %v905_v56, 0.0 }
0x1071   :  { %v909_v59 = vpack.c.bf16 %v908_v58, %v908_v58  ;;  %v914_v60 = vpack.c.bf16 %v3158_v57, %v3158_v57  ;;  %v1023_v32 = vrot.slane %v3158_v57, %v2956_v12 }
0x1073   :  { %2410 = vst.msk [vmem:[%s3481_s5 + $0x5] sm:$0x1] %vm205_vm5, %v909_v59  ;;  %2638 = vmatmul.mubr.msk.bf16.vlgmr.msra.gmra.mrb[12].mxu0 %vm85_vm2, %v914_v60 }
0x1074   :  { %2650 = vmatpush3.bf16.msra.mxu0 %v2736_v3  ;;  %2653 = vmatprep.mubr.msk.bf16.mxu0 %vm2883_vm1, %v2882_v0 }
0x1075   :  { %2651 = vmatprep.subr.bf16.mxu0 %v2882_v0 }
0x1078   :  { %2652 = vmatpush3.bf16.msra.mxu0 %v2737_v61 }
0x1079   :  { %2665 = vmatprep.subr.bf16.mxu0 %v2882_v0 }
0x107b   :  { %2654 = vmatmul.mubr.msk.bf16.vlgmr.msra.gmra.mrb[16].mxu0 %vm85_vm2, %v1201_v63 }
0x107c   :  { %2669 = vmatprep.mubr.msk.bf16.mxu0 %vm2883_vm1, %v2882_v0 }
0x1146   :  { %v968_v4 = vpop.f32.mrb[12].mxu0 }
0x1147   :  { %v991_v5 = vadd.f32 %v989_v2, %v968_v4  ;;  %v2639_v6 = vpop.f32.mrb[13].mxu0  ;;  %v975_v19 = vadd.f32 %v974_v18, %v968_v4 }
0x1148   :  { %v971_v7 = vpop.f32.mrb[14].mxu0 }
0x1149   :  { %v999_v8 = vrot.slane %v991_v5, %v2956_v12  ;;  %v2640_v10 = vpop.f32.mrb[15].mxu0  ;;  %v2415_v20 = vmul.f32 -1.442695, %v975_v19 }
0x114b   :  { %1000 = vrot.lane.b32.xlu0 %v999_v8, %s2884_s27  ;;  %2790 = vpow2.f32 %v2415_v20 }
0x114e   :  { %v1256_v13 = vpop.f32.mrb[16].mxu0 }
0x114f   :  { %1304 = vrot.lane.b32.xlu0 %v3189_v11, %s2884_s27  ;;  %v2655_v14 = vpop.f32.mrb[17].mxu0  ;;  %v1279_v27 = vrot.slane %v1256_v13, %v2956_v12 }
0x1150   :  { %v1259_v15 = vpop.f32.mrb[18].mxu0 }
0x1151   :  { %v2656_v16 = vpop.f32.mrb[19].mxu0 }
0x1155   :  { %v2791_v21 = vpop.eup %2790 }
0x1156   :  { %v979_v22 = vadd.f32 1.0, %v2791_v21 }
0x1158   :  { %2792 = vrcp.f32 %v979_v22 }
0x1162   :  { %v2793_v23 = vpop.eup %2792 }
0x1163   :  { %v1010_v58 = vsub.f32 1.0, %v2793_v23 }
0x11bd   :  { %v1001_v25 = vpop.permute.xlu0 %1000 }
0x11be   :  { %v1003_v26 = vmul.f32 %v2793_v23, %v1001_v25 }
0x11c0   :  { %1005 = vrot.lane.b32.xlu1 %v1003_v26, %s2884_s27 }
0x11c1   :  { %v1305_v28 = vpop.permute.xlu0 %1304 }
0x11c2   :  { %v1307_v30 = vadd.f32 %v1305_v28, %v1256_v13  ;;  %v2740_v28 = vld [vmem:[%s3477_s3 + $0x10] sm:$0xff]  }
0x11c4   :  { %v1315_v31 = vrot.slane %v1307_v30, %v2956_v12  ;;  %1280 = vrot.lane.b32.xlu1 %v1279_v27, %s2888_s11 }
0x11c6   :  { %1316 = vrot.lane.b32.xlu0 %v1315_v31, %s2886_s28 }
0x11ca   :  { %1024 = vrot.lane.b32.xlu0 %v1023_v32, %s2886_s28 }
0x1232   :  { %v1006_v36 = vpop.permute.xlu1 %1005 }
0x1233   :  { %v1008_v37 = vadd.f32 %v1006_v36, %v974_v18 }
0x1235   :  { %2794 = vtanh.f32 %v1008_v37 }
0x1236   :  { %v1281_v39 = vpop.permute.xlu1 %1280 }
0x1237   :  { %v1283_v40 = vadd.f32 %v1281_v39, %v1262_v38  ;;  %v1290_v54 = vadd.f32 %v1281_v39, %v1266_v53 }
0x1238   :  { %v1317_v50 = vpop.permute.xlu0 %1316 }
0x1239   :  { %v2435_v41 = vmul.f32 -1.442695, %v1283_v40  ;;  %v2436_v56 = vmul.f32 -1.442695, %v1290_v54 }
0x123b   :  { %2796 = vpow2.f32 %v2435_v41 }
0x123c   :  { %v1025_v55 = vpop.permute.xlu0 %1024 }
0x123d   :  { %v1027_v59 = vmul.f32 %v2793_v23, %v1025_v55 }
0x123f   :  { %v2795_v42 = vpop.eup %2794 }
0x1240   :  { %1012 = vrot.lane.b32.xlu1 %v2795_v42, %s2888_s11 }
0x1244   :  { %1267 = vrot.lane.b32.xlu1 %v2427_v34, %s2888_s11 }
0x1245   :  { %v2797_v43 = vpop.eup %2796 }
0x1246   :  { %v1287_v46 = vadd.f32 1.0, %v2797_v43 }
0x1248   :  { %2798 = vrcp.f32 %v1287_v46  ;;  %1034 = vperm.xlu1 %2720, %v3211_v45  }
0x1249   :  { %2800 = vpow2.f32 %v2436_v56 }
0x124c   :  { %1335 = vperm.xlu1 %2720, %v3216_v47  }
0x1252   :  { %v2799_v49 = vpop.eup %2798 }
0x1253   :  { %v1319_v51 = vmul.f32 %v2799_v49, %v1317_v50  ;;  %v2801_v4 = vpop.eup %2800  ;;  %v2441_v50 = vld [vmem:[%s3482_s1 + $0xc] sm:$0x3] }
0x1254   :  { %v1294_v6 = vadd.f32 1.0, %v2801_v4 }
0x1255   :  { %1321 = vrot.lane.b32.xlu0 %v1319_v51, %s2886_s28  ;;  %v1405_v51 = vunpack.c.l.bf16 %v2441_v50 }
0x1256   :  { %2802 = vrcp.f32 %v1294_v6 }
0x1260   :  { %v2803_v14 = vpop.eup %2802 }
0x1261   :  { %v1326_v15 = vsub.f32 1.0, %v2803_v14  ;;  %v1328_v18 = vmul.f32 %v2803_v14, %v3175_v62 }
0x12b2   :  { %v1013_v3 = vpop.permute.xlu1 %1012 }
0x12b3   :  { %v1015_v60 = vmul.f32 %v1013_v3, %v1010_v58  ;;  %v2742_v3 = vld [vmem:[%s3477_s3 + $0x10] sm:$0xff]  }
0x12b4   :  { %2666 = vmatpush3.bf16.msra.mxu0 %v2742_v3 }
0x12b5   :  { %v1028_v61 = vadd.f32 %v1027_v59, %v1015_v60  ;;  %2667 = vmatprep.subr.bf16.mxu0 %v2882_v0  ;;  %v1407_v59 = vrot.slane %v2441_v50, 1 }
0x12b6   :  { %v1268_v2 = vpop.permute.xlu1 %1267 }
0x12b7   :  { %v1044_v63 = vrot.slane %v1028_v61, %v2956_v12  ;;  %v1269_v5 = vrot.slane %v1268_v2, 1  ;;  %v1409_v60 = vunpack.c.l.bf16 %v1407_v59 }
0x12b9   :  { %1045 = vrot.lane.b32.xlu0 %v1044_v63, %s2888_s11  ;;  %v1271_v7 = vunpack.c.l.bf16 %v1269_v5 }
0x12bd   :  { %1446 = vrot.lane.b32.xlu0 %v3189_v11, %s2884_s27 }
0x12c7   :  { %v1322_v8 = vpop.permute.xlu0 %1321  ;;  %v1035_v13 = vpop.permute.xlu1 %1034 }
0x12c8   :  { %v1324_v10 = vadd.f32 %v1322_v8, %v1271_v7  ;;  %vm1036_vm7 = vcmp.eq.s32.totalorder %v1035_v13, 1 }
0x12ca   :  { %2804 = vtanh.f32 %v1324_v10 }
0x12cb   :  { %v1336_v19 = vpop.permute.xlu1 %1335 }
0x12cc   :  { %vm1337_vm6 = vcmp.eq.s32.totalorder %v1336_v19, 1 }
0x12d4   :  { %v2805_v16 = vpop.eup %2804 }
0x12d5   :  { %v1327_v17 = vmul.f32 %v2805_v16, %v1326_v15 }
0x12d7   :  { %v1329_v20 = vadd.f32 %v1328_v18, %v1327_v17 }
0x12d9   :  { %v3234_v21 = vsel %vm1337_vm6, %v1329_v20, %v3175_v62  ;;  %v1339_v22 = vsel %vm1337_vm6, %v1329_v20, 0.0 }
0x12da   :  { %v1340_v23 = vpack.c.bf16 %v1339_v22, %v1339_v22  ;;  %v1345_v31 = vpack.c.bf16 %v3234_v21, %v3234_v21 }
0x12dc   :  { %2440 = vst.msk [vmem:[%s3483_s6 + $0x7] sm:$0x1] %vm205_vm5, %v1340_v23 }
0x132b   :  { %v1046_v25 = vpop.permute.xlu0 %1045 }
0x132c   :  { %v3241_v26 = vsel %vm1036_vm7, %v1046_v25, %v3158_v57  ;;  %v1049_v27 = vsel %vm1036_vm7, %v1046_v25, 0.0  ;;  %v2741_v57 = vld [vmem:[%s3477_s3 + $0x18] sm:$0xff]  }
0x132d   :  { %v1050_v30 = vpack.c.bf16 %v1049_v27, %v1049_v27  ;;  %v1055_v62 = vpack.c.bf16 %v3241_v26, %v3241_v26 }
0x132f   :  { %2418 = vst.msk [vmem:[%s3481_s5 + $0x6] sm:$0x1] %vm205_vm5, %v1050_v30  ;;  %2646 = vmatmul.mubr.msk.bf16.vlgmr.msra.gmra.mrb[12].mxu1 %vm85_vm2, %v1055_v62  ;;  %v1447_v38 = vpop.permute.xlu0 %1446 }
0x1330   :  { %2658 = vmatpush3.bf16.msra.mxu1 %v2740_v28  ;;  %2661 = vmatprep.mubr.msk.bf16.mxu1 %vm2883_vm1, %v2882_v0 }
0x1331   :  { %2659 = vmatprep.subr.bf16.mxu1 %v2882_v0 }
0x1334   :  { %2660 = vmatpush3.bf16.msra.mxu1 %v2741_v57 }
0x1335   :  { %2673 = vmatprep.subr.bf16.mxu1 %v2882_v0 }
0x1337   :  { %2662 = vmatmul.mubr.msk.bf16.vlgmr.msra.gmra.mrb[16].mxu1 %vm85_vm2, %v1345_v31 }
0x1338   :  { %2677 = vmatprep.mubr.msk.bf16.mxu1 %vm2883_vm1, %v2882_v0 }
0x1402   :  { %v3265_v32 = vpop.f32.mrb[12].mxu1 }
0x1403   :  { %v2647_v34 = vpop.f32.mrb[13].mxu1 }
0x1404   :  { %v1112_v36 = vpop.f32.mrb[14].mxu1 }
0x1405   :  { %v2648_v37 = vpop.f32.mrb[15].mxu1  ;;  %v2455_v36 = vld [vmem:[%s3482_s1 + $0xa] sm:$0x3] }
0x1406   :  { %v1547_v37 = vunpack.c.l.bf16 %v2455_v36 }
0x140a   :  { %v1399_v39 = vpop.f32.mrb[16].mxu1 }
0x140b   :  { %v1422_v40 = vrot.slane %v1399_v39, %v2956_v12  ;;  %v1449_v41 = vadd.f32 %v1447_v38, %v1399_v39  ;;  %v2663_v42 = vpop.f32.mrb[17].mxu1 }
0x140c   :  { %v1402_v43 = vpop.f32.mrb[18].mxu1 }
0x140d   :  { %v1457_v46 = vrot.slane %v1449_v41, %v2956_v12  ;;  %1423 = vrot.lane.b32.xlu1 %v1422_v40, %s2888_s11  ;;  %v2664_v49 = vpop.f32.mrb[19].mxu1 }
0x140f   :  { %1458 = vrot.lane.b32.xlu0 %v1457_v46, %s2886_s28 }
0x1411   :  { %1410 = vrot.lane.b32.xlu1 %v2441_v50, %s2888_s11  ;;  %v2744_v50 = vld [vmem:[%s3477_s3 + $0x10] sm:$0xff]  }
0x1412   :  { %2674 = vmatpush3.bf16.msra.mxu1 %v2744_v50 }
0x1413   :  { %2675 = vmatprep.subr.bf16.mxu1 %v2882_v0 }
0x1415   :  { %1477 = vperm.xlu1 %2720, %v3211_v45   ;;  %v2743_v45 = vld [vmem:[%s3477_s3 + $0x18] sm:$0xff]  }
0x1416   :  { %2668 = vmatpush3.bf16.msra.mxu0 %v2743_v45 }
0x1417   :  { %2681 = vmatprep.subr.bf16.mxu0 %v2882_v0 }
0x147f   :  { %v1424_v52 = vpop.permute.xlu1 %1423 }
0x1480   :  { %v1426_v33 = vadd.f32 %v1424_v52, %v1405_v51  ;;  %v1433_v61 = vadd.f32 %v1424_v52, %v1409_v60  ;;  %v1549_v51 = vrot.slane %v2455_v36, 1 }
0x1481   :  { %v1459_v56 = vpop.permute.xlu0 %1458 }
0x1482   :  { %v2449_v29 = vmul.f32 -1.442695, %v1426_v33  ;;  %v2450_v63 = vmul.f32 -1.442695, %v1433_v61  ;;  %v1551_v52 = vunpack.c.l.bf16 %v1549_v51 }
0x1483   :  { %v1411_v4 = vpop.permute.xlu1 %1410 }
0x1484   :  { %2806 = vpow2.f32 %v2449_v29  ;;  %v1412_v5 = vrot.slane %v1411_v4, 1 }
0x1486   :  { %v1414_v7 = vunpack.c.l.bf16 %v1412_v5 }
0x148e   :  { %v2807_v53 = vpop.eup %2806 }
0x148f   :  { %v1430_v54 = vadd.f32 1.0, %v2807_v53 }
0x1491   :  { %2808 = vrcp.f32 %v1430_v54 }
0x1492   :  { %2810 = vpow2.f32 %v2450_v63 }
0x1494   :  { %v1478_v16 = vpop.permute.xlu1 %1477 }
0x1495   :  { %vm1479_vm8 = vcmp.eq.s32.totalorder %v1478_v16, 1 }
0x149b   :  { %v2809_v55 = vpop.eup %2808 }
0x149c   :  { %v1461_v58 = vmul.f32 %v2809_v55, %v1459_v56  ;;  %v2811_v2 = vpop.eup %2810 }
0x149d   :  { %v1437_v6 = vadd.f32 1.0, %v2811_v2 }
0x149e   :  { %1463 = vrot.lane.b32.xlu0 %v1461_v58, %s2886_s28 }
0x149f   :  { %2812 = vrcp.f32 %v1437_v6 }
0x14a2   :  { %1588 = vrot.lane.b32.xlu0 %v3189_v11, %s2884_s27 }
0x14a9   :  { %v2813_v13 = vpop.eup %2812 }
0x14aa   :  { %v1468_v14 = vsub.f32 1.0, %v2813_v13  ;;  %v1470_v17 = vmul.f32 %v2813_v13, %v3234_v21 }
0x1510   :  { %v1464_v8 = vpop.permute.xlu0 %1463 }
0x1511   :  { %v1466_v10 = vadd.f32 %v1464_v8, %v1414_v7 }
0x1513   :  { %2814 = vtanh.f32 %v1466_v10 }
0x1514   :  { %v1589_v27 = vpop.permute.xlu0 %1588 }
0x151d   :  { %v2815_v15 = vpop.eup %2814 }
0x151e   :  { %v1469_v18 = vmul.f32 %v2815_v15, %v1468_v14 }
0x1520   :  { %v1471_v19 = vadd.f32 %v1470_v17, %v1469_v18 }
0x1522   :  { %v1481_v20 = vsel %vm1479_vm8, %v1471_v19, 0.0  ;;  %v1480_v22 = vsel %vm1479_vm8, %v1471_v19, %v3234_v21 }
0x1523   :  { %v1482_v23 = vpack.c.bf16 %v1481_v20, %v1481_v20  ;;  %v1487_v25 = vpack.c.bf16 %v1480_v22, %v1480_v22 }
0x1525   :  { %2454 = vst.msk [vmem:[%s3483_s6 + $0x6] sm:$0x1] %vm205_vm5, %v1482_v23  ;;  %2670 = vmatmul.mubr.msk.bf16.vlgmr.msra.gmra.mrb[20].mxu0 %vm85_vm2, %v1487_v25 }
0x1526   :  { %2685 = vmatprep.mubr.msk.bf16.mxu0 %vm2883_vm1, %v2882_v0 }
0x15f8   :  { %v1541_v28 = vpop.f32.mrb[20].mxu0 }
0x15f9   :  { %v1564_v30 = vrot.slane %v1541_v28, %v2956_v12  ;;  %v1591_v62 = vadd.f32 %v1589_v27, %v1541_v28  ;;  %v2671_v57 = vpop.f32.mrb[21].mxu0 }
0x15fa   :  { %v1544_v31 = vpop.f32.mrb[22].mxu0 }
0x15fb   :  { %v1599_v21 = vrot.slane %v1591_v62, %v2956_v12  ;;  %1565 = vrot.lane.b32.xlu1 %v1564_v30, %s2888_s11  ;;  %v2672_v34 = vpop.f32.mrb[23].mxu0 }
0x15fc   :  { %v2746_v34 = vld [vmem:[%s3477_s3 + $0x10] sm:$0xff]  }
0x15fd   :  { %1600 = vrot.lane.b32.xlu0 %v1599_v21, %s2886_s28  ;;  %2682 = vmatpush3.bf16.msra.mxu0 %v2746_v34 }
0x15fe   :  { %2683 = vmatprep.subr.bf16.mxu0 %v2882_v0 }
0x15ff   :  { %1552 = vrot.lane.b32.xlu1 %v2455_v36, %s2888_s11 }
0x1603   :  { %1619 = vperm.xlu1 %2720, %v3143_v44   ;;  %v2745_v44 = vld [vmem:[%s3477_s3 + $0x18] sm:$0xff]  }
0x1604   :  { %2676 = vmatpush3.bf16.msra.mxu1 %v2745_v44 }
0x1605   :  { %2689 = vmatprep.subr.bf16.mxu1 %v2882_v0 }
0x166d   :  { %v1566_v38 = vpop.permute.xlu1 %1565 }
0x166e   :  { %v1568_v39 = vadd.f32 %v1566_v38, %v1547_v37  ;;  %v1575_v33 = vadd.f32 %v1566_v38, %v1551_v52 }
0x166f   :  { %v1601_v46 = vpop.permute.xlu0 %1600 }
0x1670   :  { %v2463_v40 = vmul.f32 -1.442695, %v1568_v39  ;;  %v2464_v29 = vmul.f32 -1.442695, %v1575_v33 }
0x1671   :  { %v1553_v54 = vpop.permute.xlu1 %1552 }
0x1672   :  { %2816 = vpow2.f32 %v2463_v40  ;;  %v1554_v55 = vrot.slane %v1553_v54, 1 }
0x1674   :  { %v1556_v58 = vunpack.c.l.bf16 %v1554_v55 }
0x167c   :  { %v2817_v41 = vpop.eup %2816 }
0x167d   :  { %v1572_v42 = vadd.f32 1.0, %v2817_v41 }
0x167f   :  { %2818 = vrcp.f32 %v1572_v42 }
0x1680   :  { %2820 = vpow2.f32 %v2464_v29 }
0x1682   :  { %v1620_v63 = vpop.permute.xlu1 %1619 }
0x1683   :  { %vm1621_vm9 = vcmp.eq.s32.totalorder %v1620_v63, 1 }
0x1689   :  { %v2819_v43 = vpop.eup %2818 }
0x168a   :  { %v1603_v49 = vmul.f32 %v2819_v43, %v1601_v46  ;;  %v2821_v53 = vpop.eup %2820 }
0x168b   :  { %v1579_v56 = vadd.f32 1.0, %v2821_v53 }
0x168c   :  { %1605 = vrot.lane.b32.xlu0 %v1603_v49, %s2886_s28 }
0x168d   :  { %2822 = vrcp.f32 %v1579_v56 }
0x1690   :  { %1730 = vrot.lane.b32.xlu0 %v3189_v11, %s2884_s27 }
0x1697   :  { %v2823_v59 = vpop.eup %2822 }
0x1698   :  { %v1610_v60 = vsub.f32 1.0, %v2823_v59  ;;  %v1612_v2 = vmul.f32 %v2823_v59, %v1480_v22 }
0x16fe   :  { %v1606_v3 = vpop.permute.xlu0 %1605 }
0x16ff   :  { %v1608_v45 = vadd.f32 %v1606_v3, %v1556_v58 }
0x1701   :  { %2824 = vtanh.f32 %v1608_v45 }
0x1702   :  { %v1731_v13 = vpop.permute.xlu0 %1730 }
0x170b   :  { %v2825_v61 = vpop.eup %2824 }
0x170c   :  { %v1611_v4 = vmul.f32 %v2825_v61, %v1610_v60 }
0x170e   :  { %v1613_v5 = vadd.f32 %v1612_v2, %v1611_v4 }
0x1710   :  { %v1623_v6 = vsel %vm1621_vm9, %v1613_v5, 0.0  ;;  %v1622_v7 = vsel %vm1621_vm9, %v1613_v5, %v1480_v22  ;;  %v2469_v22 = vld [vmem:[%s3482_s1 + $0x8] sm:$0x3] }
0x1711   :  { %v1624_v8 = vpack.c.bf16 %v1623_v6, %v1623_v6  ;;  %v1629_v10 = vpack.c.bf16 %v1622_v7, %v1622_v7  ;;  %v1689_v23 = vunpack.c.l.bf16 %v2469_v22  ;;  %v1691_v36 = vrot.slane %v2469_v22, 1  ;;  %v2483_v6 = vld [vmem:[%s3482_s1 + $0x6] sm:$0x3] }
0x1713   :  { %2468 = vst.msk [vmem:[%s3483_s6 + $0x5] sm:$0x1] %vm205_vm5, %v1624_v8  ;;  %2678 = vmatmul.mubr.msk.bf16.vlgmr.msra.gmra.mrb[20].mxu1 %vm85_vm2, %v1629_v10  ;;  %v1693_v37 = vunpack.c.l.bf16 %v1691_v36 }
0x1714   :  { %2693 = vmatprep.mubr.msk.bf16.mxu1 %vm2883_vm1, %v2882_v0 }
0x17e6   :  { %v1683_v14 = vpop.f32.mrb[20].mxu1 }
0x17e7   :  { %v1706_v15 = vrot.slane %v1683_v14, %v2956_v12  ;;  %v1733_v16 = vadd.f32 %v1731_v13, %v1683_v14  ;;  %v2679_v17 = vpop.f32.mrb[21].mxu1 }
0x17e8   :  { %v1686_v18 = vpop.f32.mrb[22].mxu1 }
0x17e9   :  { %v1741_v19 = vrot.slane %v1733_v16, %v2956_v12  ;;  %1707 = vrot.lane.b32.xlu1 %v1706_v15, %s2888_s11  ;;  %v2680_v20 = vpop.f32.mrb[23].mxu1 }
0x17ea   :  { %v1833_v20 = vrot.slane %v2483_v6, 1 }
0x17eb   :  { %1742 = vrot.lane.b32.xlu0 %v1741_v19, %s2886_s28  ;;  %v2748_v19 = vld [vmem:[%s3477_s3 + $0x10] sm:$0xff]  }
0x17ec   :  { %2690 = vmatpush3.bf16.msra.mxu1 %v2748_v19 }
0x17ed   :  { %1694 = vrot.lane.b32.xlu1 %v2469_v22, %s2888_s11  ;;  %2691 = vmatprep.subr.bf16.mxu1 %v2882_v0  ;;  %v1835_v22 = vunpack.c.l.bf16 %v1833_v20 }
0x17f1   :  { %1761 = vperm.xlu1 %2720, %v3110_v1   ;;  %v2747_v1 = vld [vmem:[%s3477_s3 + $0x18] sm:$0xff]  }
0x17f2   :  { %2684 = vmatpush3.bf16.msra.mxu0 %v2747_v1 }
0x17f3   :  { %2697 = vmatprep.subr.bf16.mxu0 %v2882_v0 }
0x185b   :  { %v1708_v25 = vpop.permute.xlu1 %1707 }
0x185c   :  { %v1710_v27 = vadd.f32 %v1708_v25, %v1689_v23  ;;  %v1717_v38 = vadd.f32 %v1708_v25, %v1693_v37 }
0x185d   :  { %v1743_v31 = vpop.permute.xlu0 %1742 }
0x185e   :  { %v2477_v28 = vmul.f32 -1.442695, %v1710_v27  ;;  %v2478_v39 = vmul.f32 -1.442695, %v1717_v38 }
0x185f   :  { %v1695_v41 = vpop.permute.xlu1 %1694 }
0x1860   :  { %2826 = vpow2.f32 %v2477_v28  ;;  %v1696_v42 = vrot.slane %v1695_v41, 1 }
0x1862   :  { %v1698_v46 = vunpack.c.l.bf16 %v1696_v42 }
0x186a   :  { %v2827_v30 = vpop.eup %2826 }
0x186b   :  { %v1714_v62 = vadd.f32 1.0, %v2827_v30 }
0x186d   :  { %2828 = vrcp.f32 %v1714_v62 }
0x186e   :  { %2830 = vpow2.f32 %v2478_v39 }
0x1870   :  { %v1762_v33 = vpop.permute.xlu1 %1761 }
0x1871   :  { %vm1763_vm10 = vcmp.eq.s32.totalorder %v1762_v33, 1 }
0x1877   :  { %v2829_v57 = vpop.eup %2828 }
0x1878   :  { %v1745_v21 = vmul.f32 %v2829_v57, %v1743_v31  ;;  %v2831_v40 = vpop.eup %2830 }
0x1879   :  { %v1721_v43 = vadd.f32 1.0, %v2831_v40 }
0x187a   :  { %1747 = vrot.lane.b32.xlu0 %v1745_v21, %s2886_s28 }
0x187b   :  { %2832 = vrcp.f32 %v1721_v43 }
0x187e   :  { %1872 = vrot.lane.b32.xlu0 %v3189_v11, %s2884_s27 }
0x1885   :  { %v2833_v44 = vpop.eup %2832 }
0x1886   :  { %v1752_v51 = vsub.f32 1.0, %v2833_v44  ;;  %v1754_v29 = vmul.f32 %v2833_v44, %v1622_v7 }
0x18ec   :  { %v1748_v49 = vpop.permute.xlu0 %1747 }
0x18ed   :  { %v1750_v50 = vadd.f32 %v1748_v49, %v1698_v46 }
0x18ef   :  { %2834 = vtanh.f32 %v1750_v50 }
0x18f0   :  { %v1873_v45 = vpop.permute.xlu0 %1872 }
0x18f9   :  { %v2835_v52 = vpop.eup %2834 }
0x18fa   :  { %v1753_v53 = vmul.f32 %v2835_v52, %v1752_v51 }
0x18fc   :  { %v1755_v54 = vadd.f32 %v1754_v29, %v1753_v53 }
0x18fe   :  { %v1765_v55 = vsel %vm1763_vm10, %v1755_v54, 0.0  ;;  %v1764_v56 = vsel %vm1763_vm10, %v1755_v54, %v1622_v7  ;;  %v1831_v7 = vunpack.c.l.bf16 %v2483_v6  ;;  %v2497_v54 = vld [vmem:[%s3482_s1 + $0x4] sm:$0x3] }
0x18ff   :  { %v1766_v58 = vpack.c.bf16 %v1765_v55, %v1765_v55  ;;  %v1771_v3 = vpack.c.bf16 %v1764_v56, %v1764_v56  ;;  %v1973_v55 = vunpack.c.l.bf16 %v2497_v54 }
0x1901   :  { %2482 = vst.msk [vmem:[%s3483_s6 + $0x4] sm:$0x1] %vm205_vm5, %v1766_v58  ;;  %2686 = vmatmul.mubr.msk.bf16.vlgmr.msra.gmra.mrb[24].mxu0 %vm85_vm2, %v1771_v3 }
0x1902   :  { %2701 = vmatprep.mubr.msk.bf16.mxu0 %vm2883_vm1, %v2882_v0 }
0x19d4   :  { %v1825_v59 = vpop.f32.mrb[24].mxu0 }
0x19d5   :  { %v1848_v60 = vrot.slane %v1825_v59, %v2956_v12  ;;  %v1875_v61 = vadd.f32 %v1873_v45, %v1825_v59  ;;  %v2687_v63 = vpop.f32.mrb[25].mxu0 }
0x19d6   :  { %v1828_v2 = vpop.f32.mrb[26].mxu0 }
0x19d7   :  { %v1883_v4 = vrot.slane %v1875_v61, %v2956_v12  ;;  %1849 = vrot.lane.b32.xlu1 %v1848_v60, %s2888_s11  ;;  %v2688_v5 = vpop.f32.mrb[27].mxu0  ;;  %v2750_v2 = vld [vmem:[%s3477_s3 + $0x10] sm:$0xff]  }
0x19d8   :  { %2698 = vmatpush3.bf16.msra.mxu0 %v2750_v2 }
0x19d9   :  { %1884 = vrot.lane.b32.xlu0 %v1883_v4, %s2886_s28  ;;  %2699 = vmatprep.subr.bf16.mxu0 %v2882_v0  ;;  %v1975_v4 = vrot.slane %v2497_v54, 1 }
0x19db   :  { %1836 = vrot.lane.b32.xlu1 %v2483_v6, %s2888_s11  ;;  %v1977_v5 = vunpack.c.l.bf16 %v1975_v4 }
0x19df   :  { %1903 = vperm.xlu1 %2720, %v3077_v24   ;;  %v2749_v24 = vld [vmem:[%s3477_s3 + $0x18] sm:$0xff]  }
0x19e0   :  { %2692 = vmatpush3.bf16.msra.mxu1 %v2749_v24 }
0x19e1   :  { %2705 = vmatprep.subr.bf16.mxu1 %v2882_v0 }
0x1a49   :  { %v1850_v8 = vpop.permute.xlu1 %1849 }
0x1a4a   :  { %v1852_v10 = vadd.f32 %v1850_v8, %v1831_v7  ;;  %v1859_v23 = vadd.f32 %v1850_v8, %v1835_v22 }
0x1a4b   :  { %v1885_v17 = vpop.permute.xlu0 %1884 }
0x1a4c   :  { %v2491_v13 = vmul.f32 -1.442695, %v1852_v10  ;;  %v2492_v25 = vmul.f32 -1.442695, %v1859_v23 }
0x1a4d   :  { %v1837_v28 = vpop.permute.xlu1 %1836 }
0x1a4e   :  { %2836 = vpow2.f32 %v2491_v13  ;;  %v1838_v30 = vrot.slane %v1837_v28, 1 }
0x1a50   :  { %v1840_v57 = vunpack.c.l.bf16 %v1838_v30 }
0x1a58   :  { %v2837_v14 = vpop.eup %2836 }
0x1a59   :  { %v1856_v15 = vadd.f32 1.0, %v2837_v14 }
0x1a5b   :  { %2838 = vrcp.f32 %v1856_v15 }
0x1a5c   :  { %2840 = vpow2.f32 %v2492_v25 }
0x1a5e   :  { %v1904_v37 = vpop.permute.xlu1 %1903 }
0x1a5f   :  { %vm1905_vm11 = vcmp.eq.s32.totalorder %v1904_v37, 1 }
0x1a65   :  { %v2839_v16 = vpop.eup %2838 }
0x1a66   :  { %v1887_v18 = vmul.f32 %v2839_v16, %v1885_v17  ;;  %v2841_v27 = vpop.eup %2840 }
0x1a67   :  { %v1863_v62 = vadd.f32 1.0, %v2841_v27 }
0x1a68   :  { %1889 = vrot.lane.b32.xlu0 %v1887_v18, %s2886_s28 }
0x1a69   :  { %2842 = vrcp.f32 %v1863_v62 }
0x1a6c   :  { %2014 = vrot.lane.b32.xlu0 %v3189_v11, %s2884_s27 }
0x1a73   :  { %v2843_v34 = vpop.eup %2842 }
0x1a74   :  { %v1894_v1 = vsub.f32 1.0, %v2843_v34  ;;  %v1896_v38 = vmul.f32 %v2843_v34, %v1764_v56 }
0x1ada   :  { %v1890_v31 = vpop.permute.xlu0 %1889 }
0x1adb   :  { %v1892_v21 = vadd.f32 %v1890_v31, %v1840_v57 }
0x1add   :  { %2844 = vtanh.f32 %v1892_v21 }
0x1ade   :  { %v2015_v49 = vpop.permute.xlu0 %2014 }
0x1ae7   :  { %v2845_v36 = vpop.eup %2844 }
0x1ae8   :  { %v1895_v39 = vmul.f32 %v2845_v36, %v1894_v1 }
0x1aea   :  { %v1897_v40 = vadd.f32 %v1896_v38, %v1895_v39  ;;  %v2511_v39 = vld [vmem:[%s3482_s1 + $0x2] sm:$0x3] }
0x1aec   :  { %v1907_v41 = vsel %vm1905_vm11, %v1897_v40, 0.0  ;;  %v1906_v42 = vsel %vm1905_vm11, %v1897_v40, %v1764_v56  ;;  %v2115_v40 = vunpack.c.l.bf16 %v2511_v39 }
0x1aed   :  { %v1908_v43 = vpack.c.bf16 %v1907_v41, %v1907_v41  ;;  %v1913_v46 = vpack.c.bf16 %v1906_v42, %v1906_v42 }
0x1aef   :  { %2496 = vst.msk [vmem:[%s3483_s6 + $0x3] sm:$0x1] %vm205_vm5, %v1908_v43  ;;  %2694 = vmatmul.mubr.msk.bf16.vlgmr.msra.gmra.mrb[24].mxu1 %vm85_vm2, %v1913_v46 }
0x1af0   :  { %2709 = vmatprep.mubr.msk.bf16.mxu1 %vm2883_vm1, %v2882_v0 }
0x1bc2   :  { %v1967_v50 = vpop.f32.mrb[24].mxu1 }
0x1bc3   :  { %v1990_v44 = vrot.slane %v1967_v50, %v2956_v12  ;;  %v2017_v51 = vadd.f32 %v2015_v49, %v1967_v50  ;;  %v2695_v52 = vpop.f32.mrb[25].mxu1 }
0x1bc4   :  { %v1970_v33 = vpop.f32.mrb[26].mxu1  ;;  %v2752_v52 = vld [vmem:[%s3477_s3 + $0x10] sm:$0xff]  }
0x1bc5   :  { %v2025_v29 = vrot.slane %v2017_v51, %v2956_v12  ;;  %1991 = vrot.lane.b32.xlu1 %v1990_v44, %s2888_s11  ;;  %v2696_v53 = vpop.f32.mrb[27].mxu1  ;;  %2706 = vmatpush3.bf16.msra.mxu1 %v2752_v52  ;;  %v2753_v33 = vld [vmem:[%s3477_s3 + $0x18] sm:$0xff]  }
0x1bc6   :  { %2707 = vmatprep.subr.bf16.mxu1 %v2882_v0 }
0x1bc7   :  { %2026 = vrot.lane.b32.xlu0 %v2025_v29, %s2886_s28  ;;  %v2117_v29 = vrot.slane %v2511_v39, 1 }
0x1bc9   :  { %1978 = vrot.lane.b32.xlu1 %v2497_v54, %s2888_s11  ;;  %2708 = vmatpush3.bf16.msra.mxu1 %v2753_v33  ;;  %v2119_v53 = vunpack.c.l.bf16 %v2117_v29 }
0x1bcd   :  { %2045 = vperm.xlu1 %2720, %v3044_v48   ;;  %v2751_v48 = vld [vmem:[%s3477_s3 + $0x18] sm:$0xff]  }
0x1bce   :  { %2700 = vmatpush3.bf16.msra.mxu0 %v2751_v48 }
0x1c37   :  { %v1992_v56 = vpop.permute.xlu1 %1991 }
0x1c38   :  { %v1994_v58 = vadd.f32 %v1992_v56, %v1973_v55  ;;  %v2001_v6 = vadd.f32 %v1992_v56, %v1977_v5 }
0x1c39   :  { %v2027_v61 = vpop.permute.xlu0 %2026 }
0x1c3a   :  { %v2505_v3 = vmul.f32 -1.442695, %v1994_v58  ;;  %v2506_v7 = vmul.f32 -1.442695, %v2001_v6 }
0x1c3b   :  { %v1979_v10 = vpop.permute.xlu1 %1978 }
0x1c3c   :  { %2846 = vpow2.f32 %v2505_v3  ;;  %v1980_v13 = vrot.slane %v1979_v10, 1 }
0x1c3e   :  { %v1982_v15 = vunpack.c.l.bf16 %v1980_v13 }
0x1c46   :  { %v2847_v45 = vpop.eup %2846 }
0x1c47   :  { %v1998_v59 = vadd.f32 1.0, %v2847_v45 }
0x1c49   :  { %2848 = vrcp.f32 %v1998_v59 }
0x1c4a   :  { %2850 = vpow2.f32 %v2506_v7 }
0x1c4c   :  { %v2046_v20 = vpop.permute.xlu1 %2045 }
0x1c4d   :  { %vm2047_vm1 = vcmp.eq.s32.totalorder %v2046_v20, 1 }
0x1c53   :  { %v2849_v60 = vpop.eup %2848 }
0x1c54   :  { %v2029_v63 = vmul.f32 %v2849_v60, %v2027_v61  ;;  %v2851_v8 = vpop.eup %2850 }
0x1c55   :  { %v2005_v14 = vadd.f32 1.0, %v2851_v8 }
0x1c56   :  { %2031 = vrot.lane.b32.xlu0 %v2029_v63, %s2886_s28 }
0x1c57   :  { %2852 = vrcp.f32 %v2005_v14 }
0x1c5a   :  { %2156 = vrot.lane.b32.xlu0 %v3189_v11, %s2884_s27 }
0x1c61   :  { %v2853_v18 = vpop.eup %2852 }
0x1c62   :  { %v2036_v19 = vsub.f32 1.0, %v2853_v18  ;;  %v2038_v22 = vmul.f32 %v2853_v18, %v1906_v42 }
0x1cc8   :  { %v2032_v16 = vpop.permute.xlu0 %2031 }
0x1cc9   :  { %v2034_v17 = vadd.f32 %v2032_v16, %v1982_v15  ;;  %v2419_v16 = vld [vmem:[%s3479_s0 + $0xe] sm:$0x3] }
0x1ccb   :  { %2854 = vtanh.f32 %v2034_v17  ;;  %v1115_v17 = vunpack.c.l.bf16 %v2419_v16 }
0x1ccc   :  { %v2157_v57 = vpop.permute.xlu0 %2156 }
0x1ccd   :  { %v1116_v18 = vadd.f32 %v1115_v17, %v3265_v32 }
0x1cd5   :  { %v2855_v24 = vpop.eup %2854 }
0x1cd6   :  { %v2037_v23 = vmul.f32 %v2855_v24, %v2036_v19  ;;  %v2423_v19 = vmul.f32 -1.442695, %v1116_v18 }
0x1cd8   :  { %v2039_v25 = vadd.f32 %v2038_v22, %v2037_v23 }
0x1cda   :  { %v2049_v27 = vsel %vm2047_vm1, %v2039_v25, 0.0  ;;  %v3396_v28 = vsel %vm2047_vm1, %v2039_v25, %v1906_v42 }
0x1cdb   :  { %v2050_v30 = vpack.c.bf16 %v2049_v27, %v2049_v27  ;;  %v2055_v62 = vpack.c.bf16 %v3396_v28, %v3396_v28 }
0x1cdd   :  { %2510 = vst.msk [vmem:[%s3483_s6 + $0x2] sm:$0x1] %vm205_vm5, %v2050_v30  ;;  %2702 = vmatmul.mubr.msk.bf16.vlgmr.msra.gmra.mrb[28].mxu0 %vm85_vm2, %v2055_v62 }
0x1db0   :  { %v2109_v31 = vpop.f32.mrb[28].mxu0 }
0x1db1   :  { %v2132_v21 = vrot.slane %v2109_v31, %v2956_v12  ;;  %v2159_v34 = vadd.f32 %v2157_v57, %v2109_v31  ;;  %v2703_v1 = vpop.f32.mrb[29].mxu0 }
0x1db2   :  { %v2112_v36 = vpop.f32.mrb[30].mxu0 }
0x1db3   :  { %v2167_v37 = vrot.slane %v2159_v34, %v2956_v12  ;;  %2133 = vrot.lane.b32.xlu1 %v2132_v21, %s2888_s11  ;;  %v2704_v38 = vpop.f32.mrb[31].mxu0  ;;  %v1164_v34 = vrot.slane %v3241_v26, %v2956_v12 }
0x1db4   :  { %v2195_v38 = vld [vmem:[%s3482_s1] sm:$0x3] }
0x1db5   :  { %2168 = vrot.lane.b32.xlu0 %v2167_v37, %s2886_s28 }
0x1db7   :  { %2120 = vrot.lane.b32.xlu1 %v2511_v39, %s2888_s11  ;;  %v2256_v39 = vunpack.c.l.bf16 %v2195_v38 }
0x1dbb   :  { %2187 = vperm.xlu1 %2720, %v3015_v9   ;;  %v2424_v9 = vld [vmem:[%s3478_s4] ss:$0 sm:$0xff] }
0x1e25   :  { %v2134_v41 = vpop.permute.xlu1 %2133 }
0x1e26   :  { %v2136_v42 = vadd.f32 %v2134_v41, %v2115_v40  ;;  %v2143_v54 = vadd.f32 %v2134_v41, %v2119_v53 }
0x1e27   :  { %v2169_v44 = vpop.permute.xlu0 %2168 }
0x1e28   :  { %v2519_v43 = vmul.f32 -1.442695, %v2136_v42  ;;  %v2520_v55 = vmul.f32 -1.442695, %v2143_v54  ;;  %v2258_v54 = vrot.slane %v2195_v38, 1 }
0x1e29   :  { %v2121_v58 = vpop.permute.xlu1 %2120 }
0x1e2a   :  { %2856 = vpow2.f32 %v2519_v43  ;;  %v2122_v3 = vrot.slane %v2121_v58, 1 }
0x1e2c   :  { %v2124_v0 = vunpack.c.l.bf16 %v2122_v3 }
0x1e34   :  { %v2857_v46 = vpop.eup %2856 }
0x1e35   :  { %v2140_v49 = vadd.f32 1.0, %v2857_v46 }
0x1e37   :  { %2858 = vrcp.f32 %v2140_v49 }
0x1e38   :  { %2860 = vpow2.f32 %v2520_v55  ;;  %v2260_v55 = vunpack.c.l.bf16 %v2258_v54 }
0x1e3a   :  { %v2188_v5 = vpop.permute.xlu1 %2187 }
0x1e3b   :  { %vm2189_vm12 = vcmp.eq.s32.totalorder %v2188_v5, 1 }
0x1e41   :  { %v2859_v50 = vpop.eup %2858 }
0x1e42   :  { %v2171_v51 = vmul.f32 %v2859_v50, %v2169_v44  ;;  %v2861_v56 = vpop.eup %2860 }
0x1e43   :  { %v2147_v45 = vadd.f32 1.0, %v2861_v56 }
0x1e44   :  { %2173 = vrot.lane.b32.xlu0 %v2171_v51, %s2886_s28 }
0x1e45   :  { %2862 = vrcp.f32 %v2147_v45 }
0x1e48   :  { %1129 = vrot.lane.b32.xlu0 %v2424_v9, %s2884_s27 }
0x1e4c   :  { %2297 = vrot.lane.b32.xlu0 %v3189_v11, %s2884_s27 }
0x1e4f   :  { %v2863_v11 = vpop.eup %2862 }
0x1e50   :  { %v2178_v48 = vsub.f32 1.0, %v2863_v11  ;;  %v2180_v6 = vmul.f32 %v2863_v11, %v3396_v28 }
0x1eb6   :  { %v2174_v59 = vpop.permute.xlu0 %2173 }
0x1eb7   :  { %v2176_v60 = vadd.f32 %v2174_v59, %v2124_v0 }
0x1eb9   :  { %2864 = vtanh.f32 %v2176_v60 }
0x1eba   :  { %v1130_v61 = vpop.permute.xlu0 %1129  ;;  %2866 = vpow2.f32 %v2423_v19 }
0x1ebb   :  { %v1132_v63 = vadd.f32 %v1130_v61, %v3265_v32 }
0x1ebd   :  { %v1140_v2 = vrot.slane %v1132_v63, %v2956_v12 }
0x1ebe   :  { %v2298_v27 = vpop.permute.xlu0 %2297 }
0x1ebf   :  { %1141 = vrot.lane.b32.xlu1 %v1140_v2, %s2884_s27 }
0x1ec3   :  { %v2865_v4 = vpop.eup %2864 }
0x1ec4   :  { %v2179_v7 = vmul.f32 %v2865_v4, %v2178_v48  ;;  %v2867_v24 = vpop.eup %2866 }
0x1ec5   :  { %v1120_v20 = vadd.f32 1.0, %v2867_v24 }
0x1ec6   :  { %v2181_v8 = vadd.f32 %v2180_v6, %v2179_v7 }
0x1ec7   :  { %2868 = vrcp.f32 %v1120_v20 }
0x1ec8   :  { %v2191_v10 = vsel %vm2189_vm12, %v2181_v8, 0.0  ;;  %v3433_v13 = vsel %vm2189_vm12, %v2181_v8, %v3396_v28 }
0x1ec9   :  { %v2192_v14 = vpack.c.bf16 %v2191_v10, %v2191_v10  ;;  %v2196_v15 = vpack.c.bf16 %v3433_v13, %v3433_v13 }
0x1ecb   :  { %2524 = vst.msk [vmem:[%s3483_s6 + $0x1] sm:$0x1] %vm205_vm5, %v2192_v14  ;;  %2710 = vmatmul.mubr.msk.bf16.vlgmr.msra.gmra.mrb[28].mxu1 %vm85_vm2, %v2196_v15 }
0x1ed1   :  { %v2869_v22 = vpop.eup %2868 }
0x1ed2   :  { %v1151_v44 = vsub.f32 1.0, %v2869_v22 }
0x1f31   :  { %v1142_v23 = vpop.permute.xlu1 %1141 }
0x1f32   :  { %v1144_v25 = vmul.f32 %v2869_v22, %v1142_v23 }
0x1f34   :  { %1146 = vrot.lane.b32.xlu1 %v1144_v25, %s2884_s27 }
0x1f9e   :  { %v2250_v28 = vpop.f32.mrb[28].mxu1 }
0x1f9f   :  { %v2273_v30 = vrot.slane %v2250_v28, %v2956_v12  ;;  %v2300_v62 = vadd.f32 %v2298_v27, %v2250_v28  ;;  %v2711_v57 = vpop.f32.mrb[29].mxu1 }
0x1fa0   :  { %v2253_v31 = vpop.f32.mrb[30].mxu1 }
0x1fa1   :  { %v2308_v21 = vrot.slane %v2300_v62, %v2956_v12  ;;  %2274 = vrot.lane.b32.xlu0 %v2273_v30, %s2888_s11  ;;  %v2712_v32 = vpop.f32.mrb[31].mxu1 }
0x1fa3   :  { %2309 = vrot.lane.b32.xlu1 %v2308_v21, %s2886_s28 }
0x1fa6   :  { %v1147_v1 = vpop.permute.xlu1 %1146 }
0x1fa7   :  { %v1149_v36 = vadd.f32 %v1147_v1, %v1115_v17  ;;  %1165 = vrot.lane.b32.xlu1 %v1164_v34, %s2886_s28 }
0x1fa9   :  { %2870 = vtanh.f32 %v1149_v36 }
0x1fb3   :  { %v2871_v37 = vpop.eup %2870 }
0x1fb4   :  { %1153 = vrot.lane.b32.xlu0 %v2871_v37, %s2888_s11 }
0x1fb8   :  { %2261 = vrot.lane.b32.xlu0 %v2195_v38, %s2888_s11 }
0x1fbc   :  { %1175 = vperm.xlu0 %2721, %v3216_v47  }
0x2013   :  { %v2275_v40 = vpop.permute.xlu0 %2274 }
0x2014   :  { %v2277_v41 = vadd.f32 %v2275_v40, %v2256_v39  ;;  %v2284_v56 = vadd.f32 %v2275_v40, %v2260_v55 }
0x2015   :  { %v2310_v43 = vpop.permute.xlu1 %2309 }
0x2016   :  { %v2532_v42 = vmul.f32 -1.442695, %v2277_v41  ;;  %v2533_v58 = vmul.f32 -1.442695, %v2284_v56 }
0x2018   :  { %2872 = vpow2.f32 %v2532_v42 }
0x2019   :  { %v1166_v50 = vpop.permute.xlu1 %1165 }
0x201a   :  { %v1168_v52 = vmul.f32 %v2869_v22, %v1166_v50 }
0x2022   :  { %v2873_v46 = vpop.eup %2872 }
0x2023   :  { %v2281_v49 = vadd.f32 1.0, %v2873_v46 }
0x2025   :  { %2874 = vrcp.f32 %v2281_v49 }
0x2026   :  { %v1154_v51 = vpop.permute.xlu0 %1153  ;;  %2876 = vpow2.f32 %v2533_v58 }
0x2027   :  { %v1156_v9 = vmul.f32 %v1154_v51, %v1151_v44 }
0x2029   :  { %v1169_v33 = vadd.f32 %v1168_v52, %v1156_v9 }
0x202a   :  { %v2262_v3 = vpop.permute.xlu0 %2261 }
0x202b   :  { %v1185_v29 = vrot.slane %v1169_v33, %v2956_v12  ;;  %v2263_v59 = vrot.slane %v2262_v3, 1 }
0x202d   :  { %1186 = vrot.lane.b32.xlu0 %v1185_v29, %s2888_s11  ;;  %v2265_v2 = vunpack.c.l.bf16 %v2263_v59 }
0x202f   :  { %v2875_v47 = vpop.eup %2874 }
0x2030   :  { %v2312_v53 = vmul.f32 %v2875_v47, %v2310_v43  ;;  %v2877_v0 = vpop.eup %2876 }
0x2031   :  { %v2288_v60 = vadd.f32 1.0, %v2877_v0 }
0x2032   :  { %2314 = vrot.lane.b32.xlu1 %v2312_v53, %s2886_s28 }
0x2033   :  { %2878 = vrcp.f32 %v2288_v60 }
0x2036   :  { %2327 = vperm.xlu1 %2720, %v2981_v35  }
0x203b   :  { %v1176_v45 = vpop.permute.xlu0 %1175 }
0x203c   :  { %vm1177_vm2 = vcmp.eq.s32.totalorder %v1176_v45, 1 }
0x203d   :  { %v2879_v4 = vpop.eup %2878 }
0x203e   :  { %v2319_v5 = vsub.f32 1.0, %v2879_v4  ;;  %v2321_v7 = vmul.f32 %v2879_v4, %v3433_v13 }
0x209f   :  { %v1187_v12 = vpop.permute.xlu0 %1186 }
0x20a0   :  { %v1189_v61 = vsel %vm1177_vm2, %v1187_v12, %v3241_v26  ;;  %v1190_v63 = vsel %vm1177_vm2, %v1187_v12, 0.0 }
0x20a1   :  { %v1191_v11 = vpack.c.bf16 %v1190_v63, %v1190_v63  ;;  %1195 = vst.msk [vmem:[#allocation2] sm:$0x3] %vm61_vm0, %v1189_v61 }
0x20a3   :  { %2426 = vst.msk [vmem:[%s3481_s5 + $0x7] sm:$0x1] %vm205_vm5, %v1191_v11 }
0x20a4   :  { %v2315_v35 = vpop.permute.xlu1 %2314 }
0x20a5   :  { %v2317_v48 = vadd.f32 %v2315_v35, %v2265_v2 }
0x20a7   :  { %2880 = vtanh.f32 %v2317_v48 }
0x20b1   :  { %v2881_v6 = vpop.eup %2880 }
0x20b2   :  { %v2320_v26 = vmul.f32 %v2881_v6, %v2319_v5 }
0x20b4   :  { %v2322_v8 = vadd.f32 %v2321_v7, %v2320_v26 }
0x20b5   :  { %v2328_v10 = vpop.permute.xlu1 %2327 }
0x20b6   :  { %vm2329_vm13 = vcmp.eq.s32.totalorder %v2328_v10, 1 }
0x20b7   :  { %v2330_v14 = vsel %vm2329_vm13, %v2322_v8, %v3433_v13  ;;  %v2331_v15 = vsel %vm2329_vm13, %v2322_v8, 0.0 }
0x20b8   :  { %v2332_v16 = vpack.c.bf16 %v2331_v15, %v2331_v15  ;;  %2334 = vst.msk [vmem:[#allocation3] sm:$0x3] %vm61_vm0, %v2330_v14 }
0x20ba   :  { %2333 = vst.msk [vmem:[%s3483_s6] sm:$0x1] %vm205_vm5, %v2332_v16 }

</bundles_post_ra>
